<compile_context>
chip_gen: v7x
topology: tpu7x:2x2x1
jax: 0.10.0
libtpu: 0.0.40
codegen_flags: <defaults>
</compile_context>

<pallas_src>
import jax
import jax.numpy as jnp
from jax.experimental import pallas as pl
from jax.experimental.pallas import tpu as pltpu


# ----------------------------- Pallas kernel -------------------------------

def make_vit_kernel(num_heads, num_blocks, batch, seq_pad, seq_valid, hidden,
                    scale, eps=1e-5):
    nh = num_heads
    d = hidden // nh
    B, S, H = batch, seq_pad, hidden
    bf16, f32 = jnp.bfloat16, jnp.float32

    def kernel(patches_ref, wconv_ref, add_ref,
               gamma_ref, beta_ref, wqkv_ref, bqkv_ref,
               w1_ref, b1_ref, w2_ref, b2_ref,
               hw1_ref, hb1_ref, hw2_ref, hb2_ref,
               o_ref,
               x_scr, attn_scr):
        lyr = pl.program_id(0)

        # ---- grid step 0: patch-embed matmul + (pos + conv-bias + cls) add --
        @pl.when(lyr == 0)
        def _():
            p2 = patches_ref[...].reshape(B * S, patches_ref.shape[-1])
            pe = jnp.dot(p2, wconv_ref[...], preferred_element_type=f32)
            x_scr[...] = pe.reshape(B, S, H) + add_ref[...]

        # ---- one transformer block per grid step (weights streamed for lyr) -
        x = x_scr[...]
        gamma = gamma_ref[0]            # (1, H)
        beta = beta_ref[0]

        def layernorm(z):
            mu = jnp.mean(z, axis=-1, keepdims=True)
            var = jnp.mean((z - mu) ** 2, axis=-1, keepdims=True)
            return (z - mu) * jax.lax.rsqrt(var + eps) * gamma + beta

        xn = layernorm(x)                                        # (B, S, H) f32

        # fused q|k|v projection: one shared-weight rank-2 bf16 matmul
        qkv = jnp.dot(xn.reshape(B * S, H).astype(bf16), wqkv_ref[0],
                      preferred_element_type=f32) + bqkv_ref[0]
        qkv = qkv.reshape(B, S, 3 * H)
        q = qkv[:, :, 0:H].astype(bf16)
        k = qkv[:, :, H:2 * H].astype(bf16)
        v = qkv[:, :, 2 * H:3 * H].astype(bf16)

        # key-padding mask: padded seq slots must carry zero attention weight
        kmask = (jax.lax.broadcasted_iota(jnp.int32, (1, 1, S), 2)
                 < seq_valid).astype(f32)

        # per-head attention; each head is written into a lane slice of a
        # VMEM scratch (avoids a lane-axis concatenate)
        for hh in range(nh):
            lo, hi = hh * d, (hh + 1) * d
            sc = jnp.einsum("bqd,bkd->bqk", q[:, :, lo:hi], k[:, :, lo:hi],
                            preferred_element_type=f32) * scale
            sc = sc - jnp.max(sc, axis=-1, keepdims=True)
            e = jnp.exp(sc) * kmask
            w = e * pl.reciprocal(jnp.sum(e, axis=-1, keepdims=True),
                                  approx=True)
            attn_scr[:, :, pl.ds(lo, d)] = jnp.einsum(
                "bqk,bkd->bqd", w.astype(bf16), v[:, :, lo:hi],
                preferred_element_type=f32)

        y = attn_scr[...] + xn          # residual onto the *normalized* input
        yn = layernorm(y)               # same LayerNorm params applied twice
        # TODO(synk): the two nn.Dropout(0.5) layers are identity (eval mode).
        h1 = jnp.dot(yn.reshape(B * S, H).astype(bf16), w1_ref[0],
                     preferred_element_type=f32) + b1_ref[0]
        h1 = jax.nn.gelu(h1, approximate=True)          # tanh form -> EUP slot
        h2 = jnp.dot(h1.astype(bf16), w2_ref[0],
                     preferred_element_type=f32) + b2_ref[0]
        x_new = y + h2.reshape(B, S, H)
        x_scr[...] = x_new

        # ---- last grid step: fused classification head ----------------------
        @pl.when(lyr == num_blocks - 1)
        def _():
            xb = x_new.astype(bf16)
            dim = hb1_ref.shape[-1]
            acc = jnp.zeros((B, dim), f32)
            # flatten(S,H) @ head_w1  ==  sum_s x[:, s, :] @ head_w1[s]
            # (static loop keeps everything plain rank-2 MXU matmuls; the
            #  zero-padded rows of head_w1 contribute nothing)
            for s in range(seq_valid):
                acc = acc + jnp.dot(xb[:, s, :], hw1_ref[s],
                                    preferred_element_type=f32)
            hd = jax.nn.gelu(acc + hb1_ref[...], approximate=True)
            o_ref[...] = jnp.dot(hd.astype(bf16), hw2_ref[...],
                                 preferred_element_type=f32) + hb2_ref[...]

    return kernel


# ----------------------------- wrapper --------------------------------------

def vit_forward(img, params, patch_shape, num_heads):
    B, C, Hi, Wi = img.shape
    ph, pw = patch_shape
    Hp, Wp = Hi // ph, Wi // pw
    P = Hp * Wp
    S = P + 1
    S_pad = ((S + 7) // 8) * 8                     # 17 -> 24 (sublane multiple)
    Hd = params["conv_w"].shape[0]
    K = C * ph * pw
    blocks = params["blocks"]
    L = blocks["wq"].shape[0]
    dim = params["head_w1"].shape[1]
    nclass = params["head_w2"].shape[1]
    f32, bf16 = jnp.float32, jnp.bfloat16

    # conv(kernel=stride=patch) == per-patch flatten + matmul (layout glue)
    xp = img.reshape(B, C, Hp, ph, Wp, pw).transpose(0, 2, 4, 1, 3, 5)
    patches = xp.reshape(B, P, K)
    patches = jnp.pad(patches, ((0, 0), (0, S_pad - P), (0, 0))).astype(bf16)

    w_conv = params["conv_w"].reshape(Hd, K).T.astype(bf16)          # (K, Hd)

    # pos-embedding + conv-bias + cls-token folded into one additive term;
    # padded rows stay exactly zero (one-time parameter prep, not data compute)
    add = jnp.zeros((S_pad, Hd), f32)
    add = add.at[:P].set(params["pos"][0, :P] + params["conv_b"])
    add = add.at[P].set(params["pos"][0, P] + params["cls"][0, 0])

    # fused Q|K|V weights: one (H, 3H) matmul per block
    wqkv = jnp.concatenate([blocks["wq"], blocks["wk"], blocks["wv"]],
                           axis=-1).astype(bf16)                      # (L,H,3H)
    bqkv = jnp.concatenate([blocks["bq"], blocks["bk"], blocks["bv"]],
                           axis=-1)                                   # (L,1,3H)
    w1 = blocks["w1"].astype(bf16)
    w2 = blocks["w2"].astype(bf16)

    # classification head: (S*H, dim) -> (S_pad, H, dim), padded rows are zero
    hw1 = params["head_w1"].reshape(S, Hd, dim)
    hw1 = jnp.pad(hw1, ((0, S_pad - S), (0, 0), (0, 0))).astype(bf16)
    hw2 = params["head_w2"].astype(bf16)

    scale = 1.0 / (float(ph) ** 0.5)               # 1/sqrt(valid_lens)

    kernel = make_vit_kernel(num_heads=num_heads, num_blocks=L, batch=B,
                             seq_pad=S_pad, seq_valid=S, hidden=Hd, scale=scale)

    grid_spec = pltpu.PrefetchScalarGridSpec(
        num_scalar_prefetch=0,
        grid=(L,),
        in_specs=[
            pl.BlockSpec((B, S_pad, K), lambda l: (0, 0, 0)),      # patches
            pl.BlockSpec((K, Hd), lambda l: (0, 0)),               # conv weight
            pl.BlockSpec((S_pad, Hd), lambda l: (0, 0)),           # pos+bias+cls
            pl.BlockSpec((1, 1, Hd), lambda l: (l, 0, 0)),         # gamma
            pl.BlockSpec((1, 1, Hd), lambda l: (l, 0, 0)),         # beta
            pl.BlockSpec((1, Hd, 3 * Hd), lambda l: (l, 0, 0)),    # wqkv
            pl.BlockSpec((1, 1, 3 * Hd), lambda l: (l, 0, 0)),     # bqkv
            pl.BlockSpec((1, Hd, Hd), lambda l: (l, 0, 0)),        # w1
            pl.BlockSpec((1, 1, Hd), lambda l: (l, 0, 0)),         # b1
            pl.BlockSpec((1, Hd, Hd), lambda l: (l, 0, 0)),        # w2
            pl.BlockSpec((1, 1, Hd), lambda l: (l, 0, 0)),         # b2
            pl.BlockSpec((S_pad, Hd, dim), lambda l: (0, 0, 0)),   # head w1
            pl.BlockSpec((1, dim), lambda l: (0, 0)),              # head b1
            pl.BlockSpec((dim, nclass), lambda l: (0, 0)),         # head w2
            pl.BlockSpec((1, nclass), lambda l: (0, 0)),           # head b2
        ],
        out_specs=pl.BlockSpec((B, nclass), lambda l: (0, 0)),
        scratch_shapes=[pltpu.VMEM((B, S_pad, Hd), jnp.float32),   # activation carry
                        pltpu.VMEM((B, S_pad, Hd), jnp.float32)],  # attn assembly
    )

    return pl.pallas_call(
        kernel,
        out_shape=jax.ShapeDtypeStruct((B, nclass), jnp.float32),
        grid_spec=grid_spec,
        compiler_params=pltpu.CompilerParams(
            dimension_semantics=("arbitrary",)),
    )(patches, w_conv, add,
      blocks["gamma"], blocks["beta"], wqkv, bqkv,
      w1, blocks["b1"], w2, blocks["b2"],
      hw1, params["head_b1"], hw2, params["head_b2"])


# ----------------------------- pure-JAX reference ---------------------------

def vit_reference(img, params, patch_shape, num_heads):
    B, C, Hi, Wi = img.shape
    ph, pw = patch_shape
    Hp, Wp = Hi // ph, Wi // pw
    Hd = params["conv_w"].shape[0]
    x = img.reshape(B, C, Hp, ph, Wp, pw).transpose(0, 2, 4, 1, 3, 5)
    patches = x.reshape(B, Hp * Wp, C * ph * pw)
    w_mat = params["conv_w"].reshape(Hd, -1).T
    pe = patches @ w_mat + params["conv_b"]
    cls = jnp.broadcast_to(params["cls"], (B, 1, Hd))
    re = jnp.concatenate([pe, cls], axis=1) + params["pos"]
    scale = 1.0 / (float(ph) ** 0.5)
    d = Hd // num_heads
    blocks = params["blocks"]
    L = blocks["wq"].shape[0]
    S = re.shape[1]
    for i in range(L):
        gamma, beta = blocks["gamma"][i], blocks["beta"][i]

        def ln(z, gamma=gamma, beta=beta):
            mu = jnp.mean(z, -1, keepdims=True)
            var = jnp.mean((z - mu) ** 2, -1, keepdims=True)
            return (z - mu) / jnp.sqrt(var + 1e-5) * gamma + beta

        xn = ln(re)
        q = xn @ blocks["wq"][i] + blocks["bq"][i]
        k = xn @ blocks["wk"][i] + blocks["bk"][i]
        v = xn @ blocks["wv"][i] + blocks["bv"][i]
        qh = q.reshape(B, S, num_heads, d).transpose(0, 2, 1, 3)
        kh = k.reshape(B, S, num_heads, d).transpose(0, 2, 1, 3)
        vh = v.reshape(B, S, num_heads, d).transpose(0, 2, 1, 3)
        s = jnp.einsum("bhqd,bhkd->bhqk", qh, kh) * scale
        w = jax.nn.softmax(s, axis=-1)
        attn = jnp.einsum("bhqk,bhkd->bhqd", w, vh).transpose(0, 2, 1, 3)
        attn = attn.reshape(B, S, Hd)
        y = attn + xn
        yn = ln(y)
        h1 = jax.nn.gelu(yn @ blocks["w1"][i] + blocks["b1"][i], approximate=False)
        re = y + (h1 @ blocks["w2"][i] + blocks["b2"][i])
    flat = re.reshape(B, -1)
    h = jax.nn.gelu(flat @ params["head_w1"] + params["head_b1"], approximate=False)
    return h @ params["head_w2"] + params["head_b2"]


# ----------------------------- parameters -----------------------------------

def init_params(key, img_shape, patch_shape, channels, hidden_dim, dim,
                num_class, num_heads, block_num):
    ph, pw = patch_shape
    P = (img_shape[0] // ph) * (img_shape[1] // pw)
    S = P + 1
    L = block_num
    H = hidden_dim
    sw = 0.02
    keys = jax.random.split(key, 20)
    params = {
        "conv_w": jax.random.normal(keys[0], (H, channels, ph, pw), jnp.float32) * sw,
        "conv_b": jax.random.normal(keys[1], (H,), jnp.float32) * sw,
        "cls":    jax.random.normal(keys[2], (1, 1, H), jnp.float32),
        "pos":    jax.random.normal(keys[3], (1, S, H), jnp.float32),
        "head_w1": jax.random.normal(keys[4], (S * H, dim), jnp.float32) * sw,
        "head_b1": jax.random.normal(keys[5], (1, dim), jnp.float32) * sw,
        "head_w2": jax.random.normal(keys[6], (dim, num_class), jnp.float32) * sw,
        "head_b2": jax.random.normal(keys[7], (1, num_class), jnp.float32) * sw,
        # per-block parameters stacked along a leading block axis
        "blocks": {
            "gamma": 1.0 + 0.1 * jax.random.normal(keys[8], (L, 1, H), jnp.float32),
            "beta":  0.1 * jax.random.normal(keys[9], (L, 1, H), jnp.float32),
            "wq": jax.random.normal(keys[10], (L, H, H), jnp.float32) * sw,
            "bq": jax.random.normal(keys[11], (L, 1, H), jnp.float32) * sw,
            "wk": jax.random.normal(keys[12], (L, H, H), jnp.float32) * sw,
            "bk": jax.random.normal(keys[13], (L, 1, H), jnp.float32) * sw,
            "wv": jax.random.normal(keys[14], (L, H, H), jnp.float32) * sw,
            "bv": jax.random.normal(keys[15], (L, 1, H), jnp.float32) * sw,
            # weight_o of the PyTorch module is never applied in forward -> skipped
            "w1": jax.random.normal(keys[16], (L, H, H), jnp.float32) * sw,
            "b1": jax.random.normal(keys[17], (L, 1, H), jnp.float32) * sw,
            "w2": jax.random.normal(keys[18], (L, H, H), jnp.float32) * sw,
            "b2": jax.random.normal(keys[19], (L, 1, H), jnp.float32) * sw,
        },
    }
    return params


# ----------------------------- main ------------------------------------------

if __name__ == "__main__":
    img_shape = (16, 16)
    patch_shape = (4, 4)
    channels = 4
    hidden_dim = 32
    dim = 64
    num_class = 10
    num_heads = 4
    block_num = 2
    batch = 2

    key = jax.random.PRNGKey(0)
    kp, kx = jax.random.split(key)
    params = init_params(kp, img_shape, patch_shape, channels, hidden_dim, dim,
                         num_class, num_heads, block_num)
    img = jax.random.normal(kx, (batch, channels, *img_shape), jnp.float32)

    fwd = jax.jit(lambda im, pr: vit_forward(im, pr, patch_shape, num_heads))
    ref_fn = jax.jit(lambda im, pr: vit_reference(im, pr, patch_shape, num_heads))

    out = jax.block_until_ready(fwd(img, params))
    ref = jax.block_until_ready(ref_fn(img, params))

    assert out.shape == (batch, num_class), out.shape
    assert bool(jnp.all(jnp.isfinite(out)))
    assert bool(jnp.allclose(out, ref, atol=2e-2, rtol=2e-2)), (out, ref)
    print("KERNEL_OK")
</pallas_src>

<mosaic_0001>
module attributes {stable_mosaic.version = 11 : i64} {
  func.func @kernel(%arg0: i32, %arg1: memref<2x24x64xbf16, #tpu.memory_space<vmem>>, %arg2: memref<64x32xbf16, #tpu.memory_space<vmem>>, %arg3: memref<24x32xf32, #tpu.memory_space<vmem>>, %arg4: memref<1x1x32xf32, #tpu.memory_space<vmem>>, %arg5: memref<1x1x32xf32, #tpu.memory_space<vmem>>, %arg6: memref<1x32x96xbf16, #tpu.memory_space<vmem>>, %arg7: memref<1x1x96xf32, #tpu.memory_space<vmem>>, %arg8: memref<1x32x32xbf16, #tpu.memory_space<vmem>>, %arg9: memref<1x1x32xf32, #tpu.memory_space<vmem>>, %arg10: memref<1x32x32xbf16, #tpu.memory_space<vmem>>, %arg11: memref<1x1x32xf32, #tpu.memory_space<vmem>>, %arg12: memref<24x32x64xbf16, #tpu.memory_space<vmem>>, %arg13: memref<1x64xf32, #tpu.memory_space<vmem>>, %arg14: memref<64x10xbf16, #tpu.memory_space<vmem>>, %arg15: memref<1x10xf32, #tpu.memory_space<vmem>>, %arg16: memref<2x10xf32, #tpu.memory_space<vmem>>, %arg17: memref<2x24x32xf32, #tpu.memory_space<vmem>>, %arg18: memref<2x24x32xf32, #tpu.memory_space<vmem>>) attributes {dimension_semantics = [#tpu.dimension_semantics<arbitrary>], iteration_bounds = array<i64: 2>, scalar_prefetch = 0 : i64, scratch_operands = 2 : i64, tpu.core_type = #tpu.core_type<tc>, window_params = [{pipeline_mode = #tpu.pipeline_mode<synchronous>, transform_indices = @transform_0, window_bounds = array<i64: 2, 24, 64>}, {pipeline_mode = #tpu.pipeline_mode<synchronous>, transform_indices = @transform_1, window_bounds = array<i64: 64, 32>}, {pipeline_mode = #tpu.pipeline_mode<synchronous>, transform_indices = @transform_2, window_bounds = array<i64: 24, 32>}, {transform_indices = @transform_3, window_bounds = array<i64: 1, 1, 32>}, {transform_indices = @transform_4, window_bounds = array<i64: 1, 1, 32>}, {transform_indices = @transform_5, window_bounds = array<i64: 1, 32, 96>}, {transform_indices = @transform_6, window_bounds = array<i64: 1, 1, 96>}, {transform_indices = @transform_7, window_bounds = array<i64: 1, 32, 32>}, {transform_indices = @transform_8, window_bounds = array<i64: 1, 1, 32>}, {transform_indices = @transform_9, window_bounds = array<i64: 1, 32, 32>}, {transform_indices = @transform_10, window_bounds = array<i64: 1, 1, 32>}, {pipeline_mode = #tpu.pipeline_mode<synchronous>, transform_indices = @transform_11, window_bounds = array<i64: 24, 32, 64>}, {pipeline_mode = #tpu.pipeline_mode<synchronous>, transform_indices = @transform_12, window_bounds = array<i64: 1, 64>}, {pipeline_mode = #tpu.pipeline_mode<synchronous>, transform_indices = @transform_13, window_bounds = array<i64: 64, 10>}, {pipeline_mode = #tpu.pipeline_mode<synchronous>, transform_indices = @transform_14, window_bounds = array<i64: 1, 10>}, {pipeline_mode = #tpu.pipeline_mode<synchronous>, transform_indices = @transform_15, window_bounds = array<i64: 2, 10>}]} {
    %c0_i32 = arith.constant 0 : i32
    %0 = arith.cmpi eq, %arg0, %c0_i32 : i32
    %1 = arith.extui %0 : i1 to i32
    %c0_i32_0 = arith.constant 0 : i32
    %2 = arith.cmpi ne, %1, %c0_i32_0 : i32
    scf.if %2 {
      %c0_79 = arith.constant 0 : index
      %c0_80 = arith.constant 0 : index
      %c0_81 = arith.constant 0 : index
      %199 = vector.load %arg1[%c0_79, %c0_80, %c0_81] : memref<2x24x64xbf16, #tpu.memory_space<vmem>>, vector<2x24x64xbf16>
      %200 = vector.shape_cast %199 : vector<2x24x64xbf16> to vector<48x64xbf16>
      %c0_82 = arith.constant 0 : index
      %c0_83 = arith.constant 0 : index
      %201 = vector.load %arg2[%c0_82, %c0_83] : memref<64x32xbf16, #tpu.memory_space<vmem>>, vector<64x32xbf16>
      %cst_84 = arith.constant dense<0.000000e+00> : vector<48x32xf32>
      %202 = tpu.matmul %200, %201, %cst_84 {dimension_numbers = #tpu.dot_dimension_numbers<[1], [0], [0], [1], [0, 0, 1, 1], [], []>} : vector<48x64xbf16>, vector<64x32xbf16>, vector<48x32xf32> -> vector<48x32xf32>
      %203 = vector.shape_cast %202 : vector<48x32xf32> to vector<2x24x32xf32>
      %c0_85 = arith.constant 0 : index
      %c0_86 = arith.constant 0 : index
      %204 = vector.load %arg3[%c0_85, %c0_86] : memref<24x32xf32, #tpu.memory_space<vmem>>, vector<24x32xf32>
      %205 = vector.shape_cast %204 : vector<24x32xf32> to vector<1x24x32xf32>
      %206 = vector.broadcast %205 : vector<1x24x32xf32> to vector<2x24x32xf32>
      %207 = arith.addf %203, %206 : vector<2x24x32xf32>
      %c0_87 = arith.constant 0 : index
      %c0_88 = arith.constant 0 : index
      %c0_89 = arith.constant 0 : index
      %208 = vector.load %arg17[%c0_87, %c0_88, %c0_89] : memref<2x24x32xf32, #tpu.memory_space<vmem>>, vector<2x24x32xf32>
      tpu.vector_store %arg17[%c0_87, %c0_88, %c0_89], %207 {strides = array<i32>} : memref<2x24x32xf32, #tpu.memory_space<vmem>>, vector<2x24x32xf32>,
    } else {
    }
    %c0 = arith.constant 0 : index
    %c0_1 = arith.constant 0 : index
    %c0_2 = arith.constant 0 : index
    %3 = vector.load %arg17[%c0, %c0_1, %c0_2] : memref<2x24x32xf32, #tpu.memory_space<vmem>>, vector<2x24x32xf32>
    %c0_3 = arith.constant 0 : index
    %c0_4 = arith.constant 0 : index
    %c0_5 = arith.constant 0 : index
    %4 = vector.load %arg4[%c0_3, %c0_4, %c0_5] : memref<1x1x32xf32, #tpu.memory_space<vmem>>, vector<1x1x32xf32>
    %5 = vector.shape_cast %4 : vector<1x1x32xf32> to vector<1x32xf32>
    %c0_6 = arith.constant 0 : index
    %c0_7 = arith.constant 0 : index
    %c0_8 = arith.constant 0 : index
    %6 = vector.load %arg5[%c0_6, %c0_7, %c0_8] : memref<1x1x32xf32, #tpu.memory_space<vmem>>, vector<1x1x32xf32>
    %7 = vector.shape_cast %6 : vector<1x1x32xf32> to vector<1x32xf32>
    %cst = arith.constant dense<0.000000e+00> : vector<2x24xf32>
    %8 = vector.multi_reduction <add>, %3, %cst [2] : vector<2x24x32xf32> to vector<2x24xf32>
    %9 = vector.shape_cast %8 : vector<2x24xf32> to vector<2x24x1xf32>
    %cst_9 = arith.constant 3.200000e+01 : f32
    %10 = vector.broadcast %cst_9 : f32 to vector<2x24x1xf32>
    %11 = arith.divf %9, %10 : vector<2x24x1xf32>
    %12 = vector.broadcast %11 : vector<2x24x1xf32> to vector<2x24x32xf32>
    %13 = arith.subf %3, %12 : vector<2x24x32xf32>
    %14 = arith.mulf %13, %13 : vector<2x24x32xf32>
    %cst_10 = arith.constant dense<0.000000e+00> : vector<2x24xf32>
    %15 = vector.multi_reduction <add>, %14, %cst_10 [2] : vector<2x24x32xf32> to vector<2x24xf32>
    %16 = vector.shape_cast %15 : vector<2x24xf32> to vector<2x24x1xf32>
    %cst_11 = arith.constant 3.200000e+01 : f32
    %17 = vector.broadcast %cst_11 : f32 to vector<2x24x1xf32>
    %18 = arith.divf %16, %17 : vector<2x24x1xf32>
    %19 = vector.broadcast %11 : vector<2x24x1xf32> to vector<2x24x32xf32>
    %20 = arith.subf %3, %19 : vector<2x24x32xf32>
    %cst_12 = arith.constant 9.99999974E-6 : f32
    %21 = vector.broadcast %cst_12 : f32 to vector<2x24x1xf32>
    %22 = arith.addf %18, %21 : vector<2x24x1xf32>
    %23 = math.rsqrt %22 : vector<2x24x1xf32>
    %24 = vector.broadcast %23 : vector<2x24x1xf32> to vector<2x24x32xf32>
    %25 = arith.mulf %20, %24 : vector<2x24x32xf32>
    %26 = vector.shape_cast %5 : vector<1x32xf32> to vector<1x1x32xf32>
    %27 = vector.broadcast %26 : vector<1x1x32xf32> to vector<2x24x32xf32>
    %28 = arith.mulf %25, %27 : vector<2x24x32xf32>
    %29 = vector.shape_cast %7 : vector<1x32xf32> to vector<1x1x32xf32>
    %30 = vector.broadcast %29 : vector<1x1x32xf32> to vector<2x24x32xf32>
    %31 = arith.addf %28, %30 : vector<2x24x32xf32>
    %32 = vector.shape_cast %31 : vector<2x24x32xf32> to vector<48x32xf32>
    %33 = arith.truncf %32 : vector<48x32xf32> to vector<48x32xbf16>
    %c0_13 = arith.constant 0 : index
    %c0_14 = arith.constant 0 : index
    %c0_15 = arith.constant 0 : index
    %34 = vector.load %arg6[%c0_13, %c0_14, %c0_15] : memref<1x32x96xbf16, #tpu.memory_space<vmem>>, vector<1x32x96xbf16>
    %35 = vector.shape_cast %34 : vector<1x32x96xbf16> to vector<32x96xbf16>
    %cst_16 = arith.constant dense<0.000000e+00> : vector<48x96xf32>
    %36 = tpu.matmul %33, %35, %cst_16 {dimension_numbers = #tpu.dot_dimension_numbers<[1], [0], [0], [1], [0, 0, 1, 1], [], []>} : vector<48x32xbf16>, vector<32x96xbf16>, vector<48x96xf32> -> vector<48x96xf32>
    %c0_17 = arith.constant 0 : index
    %c0_18 = arith.constant 0 : index
    %c0_19 = arith.constant 0 : index
    %37 = vector.load %arg7[%c0_17, %c0_18, %c0_19] : memref<1x1x96xf32, #tpu.memory_space<vmem>>, vector<1x1x96xf32>
    %38 = vector.shape_cast %37 : vector<1x1x96xf32> to vector<1x96xf32>
    %39 = vector.broadcast %38 : vector<1x96xf32> to vector<48x96xf32>
    %40 = arith.addf %36, %39 : vector<48x96xf32>
    %41 = vector.shape_cast %40 : vector<48x96xf32> to vector<2x24x96xf32>
    %42 = vector.extract_strided_slice %41 {offsets = [0, 0, 0], sizes = [2, 24, 32], strides = [1, 1, 1]} : vector<2x24x96xf32> to vector<2x24x32xf32>
    %43 = arith.truncf %42 : vector<2x24x32xf32> to vector<2x24x32xbf16>
    %44 = vector.extract_strided_slice %41 {offsets = [0, 0, 32], sizes = [2, 24, 32], strides = [1, 1, 1]} : vector<2x24x96xf32> to vector<2x24x32xf32>
    %45 = arith.truncf %44 : vector<2x24x32xf32> to vector<2x24x32xbf16>
    %46 = vector.extract_strided_slice %41 {offsets = [0, 0, 64], sizes = [2, 24, 32], strides = [1, 1, 1]} : vector<2x24x96xf32> to vector<2x24x32xf32>
    %47 = arith.truncf %46 : vector<2x24x32xf32> to vector<2x24x32xbf16>
    %48 = tpu.iota {dimensions = array<i32: 2>} : vector<1x1x24xi32>
    %c17_i32 = arith.constant 17 : i32
    %49 = vector.broadcast %c17_i32 : i32 to vector<1x1x24xi32>
    %50 = arith.cmpi slt, %48, %49 : vector<1x1x24xi32>
    %51 = arith.extui %50 : vector<1x1x24xi1> to vector<1x1x24xi32>
    %52 = arith.sitofp %51 : vector<1x1x24xi32> to vector<1x1x24xf32>
    %53 = vector.extract_strided_slice %43 {offsets = [0, 0, 0], sizes = [2, 24, 8], strides = [1, 1, 1]} : vector<2x24x32xbf16> to vector<2x24x8xbf16>
    %54 = vector.extract_strided_slice %45 {offsets = [0, 0, 0], sizes = [2, 24, 8], strides = [1, 1, 1]} : vector<2x24x32xbf16> to vector<2x24x8xbf16>
    "tpu.trace_start"() <{level = 10 : i32, message = "bqd,bkd->bqk"}> : () -> ()
    %cst_20 = arith.constant dense<0.000000e+00> : vector<2x24x24xf32>
    %55 = tpu.matmul %53, %54, %cst_20 {dimension_numbers = #tpu.dot_dimension_numbers<[2], [2], [1], [1], [0, 0, 0, 1, 1, 1], [0], [0]>} : vector<2x24x8xbf16>, vector<2x24x8xbf16>, vector<2x24x24xf32> -> vector<2x24x24xf32>
    "tpu.trace_stop"() : () -> ()
    %cst_21 = arith.constant 5.000000e-01 : f32
    %56 = vector.broadcast %cst_21 : f32 to vector<2x24x24xf32>
    %57 = arith.mulf %55, %56 : vector<2x24x24xf32>
    %cst_22 = arith.constant dense<0xFF800000> : vector<2x24xf32>
    %58 = vector.multi_reduction <maximumf>, %57, %cst_22 [2] : vector<2x24x24xf32> to vector<2x24xf32>
    %59 = vector.shape_cast %58 : vector<2x24xf32> to vector<2x24x1xf32>
    %60 = vector.broadcast %59 : vector<2x24x1xf32> to vector<2x24x24xf32>
    %61 = arith.subf %57, %60 : vector<2x24x24xf32>
    %62 = math.exp %61 : vector<2x24x24xf32>
    %63 = vector.broadcast %52 : vector<1x1x24xf32> to vector<2x24x24xf32>
    %64 = arith.mulf %62, %63 : vector<2x24x24xf32>
    %cst_23 = arith.constant dense<0.000000e+00> : vector<2x24xf32>
    %65 = vector.multi_reduction <add>, %64, %cst_23 [2] : vector<2x24x24xf32> to vector<2x24xf32>
    %66 = vector.shape_cast %65 : vector<2x24xf32> to vector<2x24x1xf32>
    %67 = tpu.reciprocal %66 {approx = true} : vector<2x24x1xf32> -> vector<2x24x1xf32>
    %68 = vector.broadcast %67 : vector<2x24x1xf32> to vector<2x24x24xf32>
    %69 = arith.mulf %64, %68 : vector<2x24x24xf32>
    %70 = arith.truncf %69 : vector<2x24x24xf32> to vector<2x24x24xbf16>
    %71 = vector.extract_strided_slice %47 {offsets = [0, 0, 0], sizes = [2, 24, 8], strides = [1, 1, 1]} : vector<2x24x32xbf16> to vector<2x24x8xbf16>
    "tpu.trace_start"() <{level = 10 : i32, message = "bqk,bkd->bqd"}> : () -> ()
    %cst_24 = arith.constant dense<0.000000e+00> : vector<2x24x8xf32>
    %72 = tpu.matmul %70, %71, %cst_24 {dimension_numbers = #tpu.dot_dimension_numbers<[2], [1], [1], [2], [0, 0, 0, 1, 1, 2], [0], [0]>} : vector<2x24x24xbf16>, vector<2x24x8xbf16>, vector<2x24x8xf32> -> vector<2x24x8xf32>
    "tpu.trace_stop"() : () -> ()
    %c0_25 = arith.constant 0 : index
    %c0_26 = arith.constant 0 : index
    %c0_27 = arith.constant 0 : index
    %73 = vector.load %arg18[%c0_25, %c0_26, %c0_27] : memref<2x24x32xf32, #tpu.memory_space<vmem>>, vector<2x24x8xf32>
    tpu.vector_store %arg18[%c0_25, %c0_26, %c0_27], %72 {strides = array<i32>} : memref<2x24x32xf32, #tpu.memory_space<vmem>>, vector<2x24x8xf32>,
    %74 = vector.extract_strided_slice %43 {offsets = [0, 0, 8], sizes = [2, 24, 8], strides = [1, 1, 1]} : vector<2x24x32xbf16> to vector<2x24x8xbf16>
    %75 = vector.extract_strided_slice %45 {offsets = [0, 0, 8], sizes = [2, 24, 8], strides = [1, 1, 1]} : vector<2x24x32xbf16> to vector<2x24x8xbf16>
    "tpu.trace_start"() <{level = 10 : i32, message = "bqd,bkd->bqk"}> : () -> ()
    %cst_28 = arith.constant dense<0.000000e+00> : vector<2x24x24xf32>
    %76 = tpu.matmul %74, %75, %cst_28 {dimension_numbers = #tpu.dot_dimension_numbers<[2], [2], [1], [1], [0, 0, 0, 1, 1, 1], [0], [0]>} : vector<2x24x8xbf16>, vector<2x24x8xbf16>, vector<2x24x24xf32> -> vector<2x24x24xf32>
    "tpu.trace_stop"() : () -> ()
    %cst_29 = arith.constant 5.000000e-01 : f32
    %77 = vector.broadcast %cst_29 : f32 to vector<2x24x24xf32>
    %78 = arith.mulf %76, %77 : vector<2x24x24xf32>
    %cst_30 = arith.constant dense<0xFF800000> : vector<2x24xf32>
    %79 = vector.multi_reduction <maximumf>, %78, %cst_30 [2] : vector<2x24x24xf32> to vector<2x24xf32>
    %80 = vector.shape_cast %79 : vector<2x24xf32> to vector<2x24x1xf32>
    %81 = vector.broadcast %80 : vector<2x24x1xf32> to vector<2x24x24xf32>
    %82 = arith.subf %78, %81 : vector<2x24x24xf32>
    %83 = math.exp %82 : vector<2x24x24xf32>
    %84 = vector.broadcast %52 : vector<1x1x24xf32> to vector<2x24x24xf32>
    %85 = arith.mulf %83, %84 : vector<2x24x24xf32>
    %cst_31 = arith.constant dense<0.000000e+00> : vector<2x24xf32>
    %86 = vector.multi_reduction <add>, %85, %cst_31 [2] : vector<2x24x24xf32> to vector<2x24xf32>
    %87 = vector.shape_cast %86 : vector<2x24xf32> to vector<2x24x1xf32>
    %88 = tpu.reciprocal %87 {approx = true} : vector<2x24x1xf32> -> vector<2x24x1xf32>
    %89 = vector.broadcast %88 : vector<2x24x1xf32> to vector<2x24x24xf32>
    %90 = arith.mulf %85, %89 : vector<2x24x24xf32>
    %91 = arith.truncf %90 : vector<2x24x24xf32> to vector<2x24x24xbf16>
    %92 = vector.extract_strided_slice %47 {offsets = [0, 0, 8], sizes = [2, 24, 8], strides = [1, 1, 1]} : vector<2x24x32xbf16> to vector<2x24x8xbf16>
    "tpu.trace_start"() <{level = 10 : i32, message = "bqk,bkd->bqd"}> : () -> ()
    %cst_32 = arith.constant dense<0.000000e+00> : vector<2x24x8xf32>
    %93 = tpu.matmul %91, %92, %cst_32 {dimension_numbers = #tpu.dot_dimension_numbers<[2], [1], [1], [2], [0, 0, 0, 1, 1, 2], [0], [0]>} : vector<2x24x24xbf16>, vector<2x24x8xbf16>, vector<2x24x8xf32> -> vector<2x24x8xf32>
    "tpu.trace_stop"() : () -> ()
    %c0_33 = arith.constant 0 : index
    %c0_34 = arith.constant 0 : index
    %c8 = arith.constant 8 : index
    %94 = vector.load %arg18[%c0_33, %c0_34, %c8] : memref<2x24x32xf32, #tpu.memory_space<vmem>>, vector<2x24x8xf32>
    tpu.vector_store %arg18[%c0_33, %c0_34, %c8], %93 {strides = array<i32>} : memref<2x24x32xf32, #tpu.memory_space<vmem>>, vector<2x24x8xf32>,
    %95 = vector.extract_strided_slice %43 {offsets = [0, 0, 16], sizes = [2, 24, 8], strides = [1, 1, 1]} : vector<2x24x32xbf16> to vector<2x24x8xbf16>
    %96 = vector.extract_strided_slice %45 {offsets = [0, 0, 16], sizes = [2, 24, 8], strides = [1, 1, 1]} : vector<2x24x32xbf16> to vector<2x24x8xbf16>
    "tpu.trace_start"() <{level = 10 : i32, message = "bqd,bkd->bqk"}> : () -> ()
    %cst_35 = arith.constant dense<0.000000e+00> : vector<2x24x24xf32>
    %97 = tpu.matmul %95, %96, %cst_35 {dimension_numbers = #tpu.dot_dimension_numbers<[2], [2], [1], [1], [0, 0, 0, 1, 1, 1], [0], [0]>} : vector<2x24x8xbf16>, vector<2x24x8xbf16>, vector<2x24x24xf32> -> vector<2x24x24xf32>
    "tpu.trace_stop"() : () -> ()
    %cst_36 = arith.constant 5.000000e-01 : f32
    %98 = vector.broadcast %cst_36 : f32 to vector<2x24x24xf32>
    %99 = arith.mulf %97, %98 : vector<2x24x24xf32>
    %cst_37 = arith.constant dense<0xFF800000> : vector<2x24xf32>
    %100 = vector.multi_reduction <maximumf>, %99, %cst_37 [2] : vector<2x24x24xf32> to vector<2x24xf32>
    %101 = vector.shape_cast %100 : vector<2x24xf32> to vector<2x24x1xf32>
    %102 = vector.broadcast %101 : vector<2x24x1xf32> to vector<2x24x24xf32>
    %103 = arith.subf %99, %102 : vector<2x24x24xf32>
    %104 = math.exp %103 : vector<2x24x24xf32>
    %105 = vector.broadcast %52 : vector<1x1x24xf32> to vector<2x24x24xf32>
    %106 = arith.mulf %104, %105 : vector<2x24x24xf32>
    %cst_38 = arith.constant dense<0.000000e+00> : vector<2x24xf32>
    %107 = vector.multi_reduction <add>, %106, %cst_38 [2] : vector<2x24x24xf32> to vector<2x24xf32>
    %108 = vector.shape_cast %107 : vector<2x24xf32> to vector<2x24x1xf32>
    %109 = tpu.reciprocal %108 {approx = true} : vector<2x24x1xf32> -> vector<2x24x1xf32>
    %110 = vector.broadcast %109 : vector<2x24x1xf32> to vector<2x24x24xf32>
    %111 = arith.mulf %106, %110 : vector<2x24x24xf32>
    %112 = arith.truncf %111 : vector<2x24x24xf32> to vector<2x24x24xbf16>
    %113 = vector.extract_strided_slice %47 {offsets = [0, 0, 16], sizes = [2, 24, 8], strides = [1, 1, 1]} : vector<2x24x32xbf16> to vector<2x24x8xbf16>
    "tpu.trace_start"() <{level = 10 : i32, message = "bqk,bkd->bqd"}> : () -> ()
    %cst_39 = arith.constant dense<0.000000e+00> : vector<2x24x8xf32>
    %114 = tpu.matmul %112, %113, %cst_39 {dimension_numbers = #tpu.dot_dimension_numbers<[2], [1], [1], [2], [0, 0, 0, 1, 1, 2], [0], [0]>} : vector<2x24x24xbf16>, vector<2x24x8xbf16>, vector<2x24x8xf32> -> vector<2x24x8xf32>
    "tpu.trace_stop"() : () -> ()
    %c0_40 = arith.constant 0 : index
    %c0_41 = arith.constant 0 : index
    %c16 = arith.constant 16 : index
    %115 = vector.load %arg18[%c0_40, %c0_41, %c16] : memref<2x24x32xf32, #tpu.memory_space<vmem>>, vector<2x24x8xf32>
    tpu.vector_store %arg18[%c0_40, %c0_41, %c16], %114 {strides = array<i32>} : memref<2x24x32xf32, #tpu.memory_space<vmem>>, vector<2x24x8xf32>,
    %116 = vector.extract_strided_slice %43 {offsets = [0, 0, 24], sizes = [2, 24, 8], strides = [1, 1, 1]} : vector<2x24x32xbf16> to vector<2x24x8xbf16>
    %117 = vector.extract_strided_slice %45 {offsets = [0, 0, 24], sizes = [2, 24, 8], strides = [1, 1, 1]} : vector<2x24x32xbf16> to vector<2x24x8xbf16>
    "tpu.trace_start"() <{level = 10 : i32, message = "bqd,bkd->bqk"}> : () -> ()
    %cst_42 = arith.constant dense<0.000000e+00> : vector<2x24x24xf32>
    %118 = tpu.matmul %116, %117, %cst_42 {dimension_numbers = #tpu.dot_dimension_numbers<[2], [2], [1], [1], [0, 0, 0, 1, 1, 1], [0], [0]>} : vector<2x24x8xbf16>, vector<2x24x8xbf16>, vector<2x24x24xf32> -> vector<2x24x24xf32>
    "tpu.trace_stop"() : () -> ()
    %cst_43 = arith.constant 5.000000e-01 : f32
    %119 = vector.broadcast %cst_43 : f32 to vector<2x24x24xf32>
    %120 = arith.mulf %118, %119 : vector<2x24x24xf32>
    %cst_44 = arith.constant dense<0xFF800000> : vector<2x24xf32>
    %121 = vector.multi_reduction <maximumf>, %120, %cst_44 [2] : vector<2x24x24xf32> to vector<2x24xf32>
    %122 = vector.shape_cast %121 : vector<2x24xf32> to vector<2x24x1xf32>
    %123 = vector.broadcast %122 : vector<2x24x1xf32> to vector<2x24x24xf32>
    %124 = arith.subf %120, %123 : vector<2x24x24xf32>
    %125 = math.exp %124 : vector<2x24x24xf32>
    %126 = vector.broadcast %52 : vector<1x1x24xf32> to vector<2x24x24xf32>
    %127 = arith.mulf %125, %126 : vector<2x24x24xf32>
    %cst_45 = arith.constant dense<0.000000e+00> : vector<2x24xf32>
    %128 = vector.multi_reduction <add>, %127, %cst_45 [2] : vector<2x24x24xf32> to vector<2x24xf32>
    %129 = vector.shape_cast %128 : vector<2x24xf32> to vector<2x24x1xf32>
    %130 = tpu.reciprocal %129 {approx = true} : vector<2x24x1xf32> -> vector<2x24x1xf32>
    %131 = vector.broadcast %130 : vector<2x24x1xf32> to vector<2x24x24xf32>
    %132 = arith.mulf %127, %131 : vector<2x24x24xf32>
    %133 = arith.truncf %132 : vector<2x24x24xf32> to vector<2x24x24xbf16>
    %134 = vector.extract_strided_slice %47 {offsets = [0, 0, 24], sizes = [2, 24, 8], strides = [1, 1, 1]} : vector<2x24x32xbf16> to vector<2x24x8xbf16>
    "tpu.trace_start"() <{level = 10 : i32, message = "bqk,bkd->bqd"}> : () -> ()
    %cst_46 = arith.constant dense<0.000000e+00> : vector<2x24x8xf32>
    %135 = tpu.matmul %133, %134, %cst_46 {dimension_numbers = #tpu.dot_dimension_numbers<[2], [1], [1], [2], [0, 0, 0, 1, 1, 2], [0], [0]>} : vector<2x24x24xbf16>, vector<2x24x8xbf16>, vector<2x24x8xf32> -> vector<2x24x8xf32>
    "tpu.trace_stop"() : () -> ()
    %c0_47 = arith.constant 0 : index
    %c0_48 = arith.constant 0 : index
    %c24 = arith.constant 24 : index
    %136 = vector.load %arg18[%c0_47, %c0_48, %c24] : memref<2x24x32xf32, #tpu.memory_space<vmem>>, vector<2x24x8xf32>
    tpu.vector_store %arg18[%c0_47, %c0_48, %c24], %135 {strides = array<i32>} : memref<2x24x32xf32, #tpu.memory_space<vmem>>, vector<2x24x8xf32>,
    %c0_49 = arith.constant 0 : index
    %c0_50 = arith.constant 0 : index
    %c0_51 = arith.constant 0 : index
    %137 = vector.load %arg18[%c0_49, %c0_50, %c0_51] : memref<2x24x32xf32, #tpu.memory_space<vmem>>, vector<2x24x32xf32>
    %138 = arith.addf %137, %31 : vector<2x24x32xf32>
    %cst_52 = arith.constant dense<0.000000e+00> : vector<2x24xf32>
    %139 = vector.multi_reduction <add>, %138, %cst_52 [2] : vector<2x24x32xf32> to vector<2x24xf32>
    %140 = vector.shape_cast %139 : vector<2x24xf32> to vector<2x24x1xf32>
    %cst_53 = arith.constant 3.200000e+01 : f32
    %141 = vector.broadcast %cst_53 : f32 to vector<2x24x1xf32>
    %142 = arith.divf %140, %141 : vector<2x24x1xf32>
    %143 = vector.broadcast %142 : vector<2x24x1xf32> to vector<2x24x32xf32>
    %144 = arith.subf %138, %143 : vector<2x24x32xf32>
    %145 = arith.mulf %144, %144 : vector<2x24x32xf32>
    %cst_54 = arith.constant dense<0.000000e+00> : vector<2x24xf32>
    %146 = vector.multi_reduction <add>, %145, %cst_54 [2] : vector<2x24x32xf32> to vector<2x24xf32>
    %147 = vector.shape_cast %146 : vector<2x24xf32> to vector<2x24x1xf32>
    %cst_55 = arith.constant 3.200000e+01 : f32
    %148 = vector.broadcast %cst_55 : f32 to vector<2x24x1xf32>
    %149 = arith.divf %147, %148 : vector<2x24x1xf32>
    %150 = vector.broadcast %142 : vector<2x24x1xf32> to vector<2x24x32xf32>
    %151 = arith.subf %138, %150 : vector<2x24x32xf32>
    %cst_56 = arith.constant 9.99999974E-6 : f32
    %152 = vector.broadcast %cst_56 : f32 to vector<2x24x1xf32>
    %153 = arith.addf %149, %152 : vector<2x24x1xf32>
    %154 = math.rsqrt %153 : vector<2x24x1xf32>
    %155 = vector.broadcast %154 : vector<2x24x1xf32> to vector<2x24x32xf32>
    %156 = arith.mulf %151, %155 : vector<2x24x32xf32>
    %157 = vector.shape_cast %5 : vector<1x32xf32> to vector<1x1x32xf32>
    %158 = vector.broadcast %157 : vector<1x1x32xf32> to vector<2x24x32xf32>
    %159 = arith.mulf %156, %158 : vector<2x24x32xf32>
    %160 = vector.shape_cast %7 : vector<1x32xf32> to vector<1x1x32xf32>
    %161 = vector.broadcast %160 : vector<1x1x32xf32> to vector<2x24x32xf32>
    %162 = arith.addf %159, %161 : vector<2x24x32xf32>
    %163 = vector.shape_cast %162 : vector<2x24x32xf32> to vector<48x32xf32>
    %164 = arith.truncf %163 : vector<48x32xf32> to vector<48x32xbf16>
    %c0_57 = arith.constant 0 : index
    %c0_58 = arith.constant 0 : index
    %c0_59 = arith.constant 0 : index
    %165 = vector.load %arg8[%c0_57, %c0_58, %c0_59] : memref<1x32x32xbf16, #tpu.memory_space<vmem>>, vector<1x32x32xbf16>
    %166 = vector.shape_cast %165 : vector<1x32x32xbf16> to vector<32x32xbf16>
    %cst_60 = arith.constant dense<0.000000e+00> : vector<48x32xf32>
    %167 = tpu.matmul %164, %166, %cst_60 {dimension_numbers = #tpu.dot_dimension_numbers<[1], [0], [0], [1], [0, 0, 1, 1], [], []>} : vector<48x32xbf16>, vector<32x32xbf16>, vector<48x32xf32> -> vector<48x32xf32>
    %c0_61 = arith.constant 0 : index
    %c0_62 = arith.constant 0 : index
    %c0_63 = arith.constant 0 : index
    %168 = vector.load %arg9[%c0_61, %c0_62, %c0_63] : memref<1x1x32xf32, #tpu.memory_space<vmem>>, vector<1x1x32xf32>
    %169 = vector.shape_cast %168 : vector<1x1x32xf32> to vector<1x32xf32>
    %170 = vector.broadcast %169 : vector<1x32xf32> to vector<48x32xf32>
    %171 = arith.addf %167, %170 : vector<48x32xf32>
    %172 = arith.mulf %171, %171 : vector<48x32xf32>
    %173 = arith.mulf %171, %172 : vector<48x32xf32>
    %cst_64 = arith.constant 4.471500e-02 : f32
    %174 = vector.broadcast %cst_64 : f32 to vector<48x32xf32>
    %175 = arith.mulf %174, %173 : vector<48x32xf32>
    %176 = arith.addf %171, %175 : vector<48x32xf32>
    %cst_65 = arith.constant 0.797884583 : f32
    %177 = vector.broadcast %cst_65 : f32 to vector<48x32xf32>
    %178 = arith.mulf %177, %176 : vector<48x32xf32>
    %179 = math.tanh %178 : vector<48x32xf32>
    %cst_66 = arith.constant 1.000000e+00 : f32
    %180 = vector.broadcast %cst_66 : f32 to vector<48x32xf32>
    %181 = arith.addf %180, %179 : vector<48x32xf32>
    %cst_67 = arith.constant 5.000000e-01 : f32
    %182 = vector.broadcast %cst_67 : f32 to vector<48x32xf32>
    %183 = arith.mulf %182, %181 : vector<48x32xf32>
    %184 = arith.mulf %171, %183 : vector<48x32xf32>
    %185 = arith.truncf %184 : vector<48x32xf32> to vector<48x32xbf16>
    %c0_68 = arith.constant 0 : index
    %c0_69 = arith.constant 0 : index
    %c0_70 = arith.constant 0 : index
    %186 = vector.load %arg10[%c0_68, %c0_69, %c0_70] : memref<1x32x32xbf16, #tpu.memory_space<vmem>>, vector<1x32x32xbf16>
    %187 = vector.shape_cast %186 : vector<1x32x32xbf16> to vector<32x32xbf16>
    %cst_71 = arith.constant dense<0.000000e+00> : vector<48x32xf32>
    %188 = tpu.matmul %185, %187, %cst_71 {dimension_numbers = #tpu.dot_dimension_numbers<[1], [0], [0], [1], [0, 0, 1, 1], [], []>} : vector<48x32xbf16>, vector<32x32xbf16>, vector<48x32xf32> -> vector<48x32xf32>
    %c0_72 = arith.constant 0 : index
    %c0_73 = arith.constant 0 : index
    %c0_74 = arith.constant 0 : index
    %189 = vector.load %arg11[%c0_72, %c0_73, %c0_74] : memref<1x1x32xf32, #tpu.memory_space<vmem>>, vector<1x1x32xf32>
    %190 = vector.shape_cast %189 : vector<1x1x32xf32> to vector<1x32xf32>
    %191 = vector.broadcast %190 : vector<1x32xf32> to vector<48x32xf32>
    %192 = arith.addf %188, %191 : vector<48x32xf32>
    %193 = vector.shape_cast %192 : vector<48x32xf32> to vector<2x24x32xf32>
    %194 = arith.addf %138, %193 : vector<2x24x32xf32>
    %c0_75 = arith.constant 0 : index
    %c0_76 = arith.constant 0 : index
    %c0_77 = arith.constant 0 : index
    %195 = vector.load %arg17[%c0_75, %c0_76, %c0_77] : memref<2x24x32xf32, #tpu.memory_space<vmem>>, vector<2x24x32xf32>
    tpu.vector_store %arg17[%c0_75, %c0_76, %c0_77], %194 {strides = array<i32>} : memref<2x24x32xf32, #tpu.memory_space<vmem>>, vector<2x24x32xf32>,
    %c1_i32 = arith.constant 1 : i32
    %196 = arith.cmpi eq, %arg0, %c1_i32 : i32
    %197 = arith.extui %196 : i1 to i32
    %c0_i32_78 = arith.constant 0 : i32
    %198 = arith.cmpi ne, %197, %c0_i32_78 : i32
    scf.if %198 {
      %199 = arith.truncf %194 : vector<2x24x32xf32> to vector<2x24x32xbf16>
      %cst_79 = arith.constant 0.000000e+00 : f32
      %200 = vector.broadcast %cst_79 : f32 to vector<2x64xf32>
      %201 = vector.extract_strided_slice %199 {offsets = [0, 0, 0], sizes = [2, 1, 32], strides = [1, 1, 1]} : vector<2x24x32xbf16> to vector<2x1x32xbf16>
      %202 = vector.shape_cast %201 : vector<2x1x32xbf16> to vector<2x32xbf16>
      %c0_80 = arith.constant 0 : index
      %c0_81 = arith.constant 0 : index
      %c0_82 = arith.constant 0 : index
      %203 = vector.load %arg12[%c0_80, %c0_81, %c0_82] : memref<24x32x64xbf16, #tpu.memory_space<vmem>>, vector<1x32x64xbf16>
      %204 = vector.shape_cast %203 : vector<1x32x64xbf16> to vector<32x64xbf16>
      %cst_83 = arith.constant dense<0.000000e+00> : vector<2x64xf32>
      %205 = tpu.matmul %202, %204, %cst_83 {dimension_numbers = #tpu.dot_dimension_numbers<[1], [0], [0], [1], [0, 0, 1, 1], [], []>} : vector<2x32xbf16>, vector<32x64xbf16>, vector<2x64xf32> -> vector<2x64xf32>
      %206 = arith.addf %200, %205 : vector<2x64xf32>
      %207 = vector.extract_strided_slice %199 {offsets = [0, 1, 0], sizes = [2, 1, 32], strides = [1, 1, 1]} : vector<2x24x32xbf16> to vector<2x1x32xbf16>
      %208 = vector.shape_cast %207 : vector<2x1x32xbf16> to vector<2x32xbf16>
      %c1 = arith.constant 1 : index
      %c0_84 = arith.constant 0 : index
      %c0_85 = arith.constant 0 : index
      %209 = vector.load %arg12[%c1, %c0_84, %c0_85] : memref<24x32x64xbf16, #tpu.memory_space<vmem>>, vector<1x32x64xbf16>
      %210 = vector.shape_cast %209 : vector<1x32x64xbf16> to vector<32x64xbf16>
      %cst_86 = arith.constant dense<0.000000e+00> : vector<2x64xf32>
      %211 = tpu.matmul %208, %210, %cst_86 {dimension_numbers = #tpu.dot_dimension_numbers<[1], [0], [0], [1], [0, 0, 1, 1], [], []>} : vector<2x32xbf16>, vector<32x64xbf16>, vector<2x64xf32> -> vector<2x64xf32>
      %212 = arith.addf %206, %211 : vector<2x64xf32>
      %213 = vector.extract_strided_slice %199 {offsets = [0, 2, 0], sizes = [2, 1, 32], strides = [1, 1, 1]} : vector<2x24x32xbf16> to vector<2x1x32xbf16>
      %214 = vector.shape_cast %213 : vector<2x1x32xbf16> to vector<2x32xbf16>
      %c2 = arith.constant 2 : index
      %c0_87 = arith.constant 0 : index
      %c0_88 = arith.constant 0 : index
      %215 = vector.load %arg12[%c2, %c0_87, %c0_88] : memref<24x32x64xbf16, #tpu.memory_space<vmem>>, vector<1x32x64xbf16>
      %216 = vector.shape_cast %215 : vector<1x32x64xbf16> to vector<32x64xbf16>
      %cst_89 = arith.constant dense<0.000000e+00> : vector<2x64xf32>
      %217 = tpu.matmul %214, %216, %cst_89 {dimension_numbers = #tpu.dot_dimension_numbers<[1], [0], [0], [1], [0, 0, 1, 1], [], []>} : vector<2x32xbf16>, vector<32x64xbf16>, vector<2x64xf32> -> vector<2x64xf32>
      %218 = arith.addf %212, %217 : vector<2x64xf32>
      %219 = vector.extract_strided_slice %199 {offsets = [0, 3, 0], sizes = [2, 1, 32], strides = [1, 1, 1]} : vector<2x24x32xbf16> to vector<2x1x32xbf16>
      %220 = vector.shape_cast %219 : vector<2x1x32xbf16> to vector<2x32xbf16>
      %c3 = arith.constant 3 : index
      %c0_90 = arith.constant 0 : index
      %c0_91 = arith.constant 0 : index
      %221 = vector.load %arg12[%c3, %c0_90, %c0_91] : memref<24x32x64xbf16, #tpu.memory_space<vmem>>, vector<1x32x64xbf16>
      %222 = vector.shape_cast %221 : vector<1x32x64xbf16> to vector<32x64xbf16>
      %cst_92 = arith.constant dense<0.000000e+00> : vector<2x64xf32>
      %223 = tpu.matmul %220, %222, %cst_92 {dimension_numbers = #tpu.dot_dimension_numbers<[1], [0], [0], [1], [0, 0, 1, 1], [], []>} : vector<2x32xbf16>, vector<32x64xbf16>, vector<2x64xf32> -> vector<2x64xf32>
      %224 = arith.addf %218, %223 : vector<2x64xf32>
      %225 = vector.extract_strided_slice %199 {offsets = [0, 4, 0], sizes = [2, 1, 32], strides = [1, 1, 1]} : vector<2x24x32xbf16> to vector<2x1x32xbf16>
      %226 = vector.shape_cast %225 : vector<2x1x32xbf16> to vector<2x32xbf16>
      %c4 = arith.constant 4 : index
      %c0_93 = arith.constant 0 : index
      %c0_94 = arith.constant 0 : index
      %227 = vector.load %arg12[%c4, %c0_93, %c0_94] : memref<24x32x64xbf16, #tpu.memory_space<vmem>>, vector<1x32x64xbf16>
      %228 = vector.shape_cast %227 : vector<1x32x64xbf16> to vector<32x64xbf16>
      %cst_95 = arith.constant dense<0.000000e+00> : vector<2x64xf32>
      %229 = tpu.matmul %226, %228, %cst_95 {dimension_numbers = #tpu.dot_dimension_numbers<[1], [0], [0], [1], [0, 0, 1, 1], [], []>} : vector<2x32xbf16>, vector<32x64xbf16>, vector<2x64xf32> -> vector<2x64xf32>
      %230 = arith.addf %224, %229 : vector<2x64xf32>
      %231 = vector.extract_strided_slice %199 {offsets = [0, 5, 0], sizes = [2, 1, 32], strides = [1, 1, 1]} : vector<2x24x32xbf16> to vector<2x1x32xbf16>
      %232 = vector.shape_cast %231 : vector<2x1x32xbf16> to vector<2x32xbf16>
      %c5 = arith.constant 5 : index
      %c0_96 = arith.constant 0 : index
      %c0_97 = arith.constant 0 : index
      %233 = vector.load %arg12[%c5, %c0_96, %c0_97] : memref<24x32x64xbf16, #tpu.memory_space<vmem>>, vector<1x32x64xbf16>
      %234 = vector.shape_cast %233 : vector<1x32x64xbf16> to vector<32x64xbf16>
      %cst_98 = arith.constant dense<0.000000e+00> : vector<2x64xf32>
      %235 = tpu.matmul %232, %234, %cst_98 {dimension_numbers = #tpu.dot_dimension_numbers<[1], [0], [0], [1], [0, 0, 1, 1], [], []>} : vector<2x32xbf16>, vector<32x64xbf16>, vector<2x64xf32> -> vector<2x64xf32>
      %236 = arith.addf %230, %235 : vector<2x64xf32>
      %237 = vector.extract_strided_slice %199 {offsets = [0, 6, 0], sizes = [2, 1, 32], strides = [1, 1, 1]} : vector<2x24x32xbf16> to vector<2x1x32xbf16>
      %238 = vector.shape_cast %237 : vector<2x1x32xbf16> to vector<2x32xbf16>
      %c6 = arith.constant 6 : index
      %c0_99 = arith.constant 0 : index
      %c0_100 = arith.constant 0 : index
      %239 = vector.load %arg12[%c6, %c0_99, %c0_100] : memref<24x32x64xbf16, #tpu.memory_space<vmem>>, vector<1x32x64xbf16>
      %240 = vector.shape_cast %239 : vector<1x32x64xbf16> to vector<32x64xbf16>
      %cst_101 = arith.constant dense<0.000000e+00> : vector<2x64xf32>
      %241 = tpu.matmul %238, %240, %cst_101 {dimension_numbers = #tpu.dot_dimension_numbers<[1], [0], [0], [1], [0, 0, 1, 1], [], []>} : vector<2x32xbf16>, vector<32x64xbf16>, vector<2x64xf32> -> vector<2x64xf32>
      %242 = arith.addf %236, %241 : vector<2x64xf32>
      %243 = vector.extract_strided_slice %199 {offsets = [0, 7, 0], sizes = [2, 1, 32], strides = [1, 1, 1]} : vector<2x24x32xbf16> to vector<2x1x32xbf16>
      %244 = vector.shape_cast %243 : vector<2x1x32xbf16> to vector<2x32xbf16>
      %c7 = arith.constant 7 : index
      %c0_102 = arith.constant 0 : index
      %c0_103 = arith.constant 0 : index
      %245 = vector.load %arg12[%c7, %c0_102, %c0_103] : memref<24x32x64xbf16, #tpu.memory_space<vmem>>, vector<1x32x64xbf16>
      %246 = vector.shape_cast %245 : vector<1x32x64xbf16> to vector<32x64xbf16>
      %cst_104 = arith.constant dense<0.000000e+00> : vector<2x64xf32>
      %247 = tpu.matmul %244, %246, %cst_104 {dimension_numbers = #tpu.dot_dimension_numbers<[1], [0], [0], [1], [0, 0, 1, 1], [], []>} : vector<2x32xbf16>, vector<32x64xbf16>, vector<2x64xf32> -> vector<2x64xf32>
      %248 = arith.addf %242, %247 : vector<2x64xf32>
      %249 = vector.extract_strided_slice %199 {offsets = [0, 8, 0], sizes = [2, 1, 32], strides = [1, 1, 1]} : vector<2x24x32xbf16> to vector<2x1x32xbf16>
      %250 = vector.shape_cast %249 : vector<2x1x32xbf16> to vector<2x32xbf16>
      %c8_105 = arith.constant 8 : index
      %c0_106 = arith.constant 0 : index
      %c0_107 = arith.constant 0 : index
      %251 = vector.load %arg12[%c8_105, %c0_106, %c0_107] : memref<24x32x64xbf16, #tpu.memory_space<vmem>>, vector<1x32x64xbf16>
      %252 = vector.shape_cast %251 : vector<1x32x64xbf16> to vector<32x64xbf16>
      %cst_108 = arith.constant dense<0.000000e+00> : vector<2x64xf32>
      %253 = tpu.matmul %250, %252, %cst_108 {dimension_numbers = #tpu.dot_dimension_numbers<[1], [0], [0], [1], [0, 0, 1, 1], [], []>} : vector<2x32xbf16>, vector<32x64xbf16>, vector<2x64xf32> -> vector<2x64xf32>
      %254 = arith.addf %248, %253 : vector<2x64xf32>
      %255 = vector.extract_strided_slice %199 {offsets = [0, 9, 0], sizes = [2, 1, 32], strides = [1, 1, 1]} : vector<2x24x32xbf16> to vector<2x1x32xbf16>
      %256 = vector.shape_cast %255 : vector<2x1x32xbf16> to vector<2x32xbf16>
      %c9 = arith.constant 9 : index
      %c0_109 = arith.constant 0 : index
      %c0_110 = arith.constant 0 : index
      %257 = vector.load %arg12[%c9, %c0_109, %c0_110] : memref<24x32x64xbf16, #tpu.memory_space<vmem>>, vector<1x32x64xbf16>
      %258 = vector.shape_cast %257 : vector<1x32x64xbf16> to vector<32x64xbf16>
      %cst_111 = arith.constant dense<0.000000e+00> : vector<2x64xf32>
      %259 = tpu.matmul %256, %258, %cst_111 {dimension_numbers = #tpu.dot_dimension_numbers<[1], [0], [0], [1], [0, 0, 1, 1], [], []>} : vector<2x32xbf16>, vector<32x64xbf16>, vector<2x64xf32> -> vector<2x64xf32>
      %260 = arith.addf %254, %259 : vector<2x64xf32>
      %261 = vector.extract_strided_slice %199 {offsets = [0, 10, 0], sizes = [2, 1, 32], strides = [1, 1, 1]} : vector<2x24x32xbf16> to vector<2x1x32xbf16>
      %262 = vector.shape_cast %261 : vector<2x1x32xbf16> to vector<2x32xbf16>
      %c10 = arith.constant 10 : index
      %c0_112 = arith.constant 0 : index
      %c0_113 = arith.constant 0 : index
      %263 = vector.load %arg12[%c10, %c0_112, %c0_113] : memref<24x32x64xbf16, #tpu.memory_space<vmem>>, vector<1x32x64xbf16>
      %264 = vector.shape_cast %263 : vector<1x32x64xbf16> to vector<32x64xbf16>
      %cst_114 = arith.constant dense<0.000000e+00> : vector<2x64xf32>
      %265 = tpu.matmul %262, %264, %cst_114 {dimension_numbers = #tpu.dot_dimension_numbers<[1], [0], [0], [1], [0, 0, 1, 1], [], []>} : vector<2x32xbf16>, vector<32x64xbf16>, vector<2x64xf32> -> vector<2x64xf32>
      %266 = arith.addf %260, %265 : vector<2x64xf32>
      %267 = vector.extract_strided_slice %199 {offsets = [0, 11, 0], sizes = [2, 1, 32], strides = [1, 1, 1]} : vector<2x24x32xbf16> to vector<2x1x32xbf16>
      %268 = vector.shape_cast %267 : vector<2x1x32xbf16> to vector<2x32xbf16>
      %c11 = arith.constant 11 : index
      %c0_115 = arith.constant 0 : index
      %c0_116 = arith.constant 0 : index
      %269 = vector.load %arg12[%c11, %c0_115, %c0_116] : memref<24x32x64xbf16, #tpu.memory_space<vmem>>, vector<1x32x64xbf16>
      %270 = vector.shape_cast %269 : vector<1x32x64xbf16> to vector<32x64xbf16>
      %cst_117 = arith.constant dense<0.000000e+00> : vector<2x64xf32>
      %271 = tpu.matmul %268, %270, %cst_117 {dimension_numbers = #tpu.dot_dimension_numbers<[1], [0], [0], [1], [0, 0, 1, 1], [], []>} : vector<2x32xbf16>, vector<32x64xbf16>, vector<2x64xf32> -> vector<2x64xf32>
      %272 = arith.addf %266, %271 : vector<2x64xf32>
      %273 = vector.extract_strided_slice %199 {offsets = [0, 12, 0], sizes = [2, 1, 32], strides = [1, 1, 1]} : vector<2x24x32xbf16> to vector<2x1x32xbf16>
      %274 = vector.shape_cast %273 : vector<2x1x32xbf16> to vector<2x32xbf16>
      %c12 = arith.constant 12 : index
      %c0_118 = arith.constant 0 : index
      %c0_119 = arith.constant 0 : index
      %275 = vector.load %arg12[%c12, %c0_118, %c0_119] : memref<24x32x64xbf16, #tpu.memory_space<vmem>>, vector<1x32x64xbf16>
      %276 = vector.shape_cast %275 : vector<1x32x64xbf16> to vector<32x64xbf16>
      %cst_120 = arith.constant dense<0.000000e+00> : vector<2x64xf32>
      %277 = tpu.matmul %274, %276, %cst_120 {dimension_numbers = #tpu.dot_dimension_numbers<[1], [0], [0], [1], [0, 0, 1, 1], [], []>} : vector<2x32xbf16>, vector<32x64xbf16>, vector<2x64xf32> -> vector<2x64xf32>
      %278 = arith.addf %272, %277 : vector<2x64xf32>
      %279 = vector.extract_strided_slice %199 {offsets = [0, 13, 0], sizes = [2, 1, 32], strides = [1, 1, 1]} : vector<2x24x32xbf16> to vector<2x1x32xbf16>
      %280 = vector.shape_cast %279 : vector<2x1x32xbf16> to vector<2x32xbf16>
      %c13 = arith.constant 13 : index
      %c0_121 = arith.constant 0 : index
      %c0_122 = arith.constant 0 : index
      %281 = vector.load %arg12[%c13, %c0_121, %c0_122] : memref<24x32x64xbf16, #tpu.memory_space<vmem>>, vector<1x32x64xbf16>
      %282 = vector.shape_cast %281 : vector<1x32x64xbf16> to vector<32x64xbf16>
      %cst_123 = arith.constant dense<0.000000e+00> : vector<2x64xf32>
      %283 = tpu.matmul %280, %282, %cst_123 {dimension_numbers = #tpu.dot_dimension_numbers<[1], [0], [0], [1], [0, 0, 1, 1], [], []>} : vector<2x32xbf16>, vector<32x64xbf16>, vector<2x64xf32> -> vector<2x64xf32>
      %284 = arith.addf %278, %283 : vector<2x64xf32>
      %285 = vector.extract_strided_slice %199 {offsets = [0, 14, 0], sizes = [2, 1, 32], strides = [1, 1, 1]} : vector<2x24x32xbf16> to vector<2x1x32xbf16>
      %286 = vector.shape_cast %285 : vector<2x1x32xbf16> to vector<2x32xbf16>
      %c14 = arith.constant 14 : index
      %c0_124 = arith.constant 0 : index
      %c0_125 = arith.constant 0 : index
      %287 = vector.load %arg12[%c14, %c0_124, %c0_125] : memref<24x32x64xbf16, #tpu.memory_space<vmem>>, vector<1x32x64xbf16>
      %288 = vector.shape_cast %287 : vector<1x32x64xbf16> to vector<32x64xbf16>
      %cst_126 = arith.constant dense<0.000000e+00> : vector<2x64xf32>
      %289 = tpu.matmul %286, %288, %cst_126 {dimension_numbers = #tpu.dot_dimension_numbers<[1], [0], [0], [1], [0, 0, 1, 1], [], []>} : vector<2x32xbf16>, vector<32x64xbf16>, vector<2x64xf32> -> vector<2x64xf32>
      %290 = arith.addf %284, %289 : vector<2x64xf32>
      %291 = vector.extract_strided_slice %199 {offsets = [0, 15, 0], sizes = [2, 1, 32], strides = [1, 1, 1]} : vector<2x24x32xbf16> to vector<2x1x32xbf16>
      %292 = vector.shape_cast %291 : vector<2x1x32xbf16> to vector<2x32xbf16>
      %c15 = arith.constant 15 : index
      %c0_127 = arith.constant 0 : index
      %c0_128 = arith.constant 0 : index
      %293 = vector.load %arg12[%c15, %c0_127, %c0_128] : memref<24x32x64xbf16, #tpu.memory_space<vmem>>, vector<1x32x64xbf16>
      %294 = vector.shape_cast %293 : vector<1x32x64xbf16> to vector<32x64xbf16>
      %cst_129 = arith.constant dense<0.000000e+00> : vector<2x64xf32>
      %295 = tpu.matmul %292, %294, %cst_129 {dimension_numbers = #tpu.dot_dimension_numbers<[1], [0], [0], [1], [0, 0, 1, 1], [], []>} : vector<2x32xbf16>, vector<32x64xbf16>, vector<2x64xf32> -> vector<2x64xf32>
      %296 = arith.addf %290, %295 : vector<2x64xf32>
      %297 = vector.extract_strided_slice %199 {offsets = [0, 16, 0], sizes = [2, 1, 32], strides = [1, 1, 1]} : vector<2x24x32xbf16> to vector<2x1x32xbf16>
      %298 = vector.shape_cast %297 : vector<2x1x32xbf16> to vector<2x32xbf16>
      %c16_130 = arith.constant 16 : index
      %c0_131 = arith.constant 0 : index
      %c0_132 = arith.constant 0 : index
      %299 = vector.load %arg12[%c16_130, %c0_131, %c0_132] : memref<24x32x64xbf16, #tpu.memory_space<vmem>>, vector<1x32x64xbf16>
      %300 = vector.shape_cast %299 : vector<1x32x64xbf16> to vector<32x64xbf16>
      %cst_133 = arith.constant dense<0.000000e+00> : vector<2x64xf32>
      %301 = tpu.matmul %298, %300, %cst_133 {dimension_numbers = #tpu.dot_dimension_numbers<[1], [0], [0], [1], [0, 0, 1, 1], [], []>} : vector<2x32xbf16>, vector<32x64xbf16>, vector<2x64xf32> -> vector<2x64xf32>
      %302 = arith.addf %296, %301 : vector<2x64xf32>
      %c0_134 = arith.constant 0 : index
      %c0_135 = arith.constant 0 : index
      %303 = vector.load %arg13[%c0_134, %c0_135] : memref<1x64xf32, #tpu.memory_space<vmem>>, vector<1x64xf32>
      %304 = vector.broadcast %303 : vector<1x64xf32> to vector<2x64xf32>
      %305 = arith.addf %302, %304 : vector<2x64xf32>
      %306 = arith.mulf %305, %305 : vector<2x64xf32>
      %307 = arith.mulf %305, %306 : vector<2x64xf32>
      %cst_136 = arith.constant 4.471500e-02 : f32
      %308 = vector.broadcast %cst_136 : f32 to vector<2x64xf32>
      %309 = arith.mulf %308, %307 : vector<2x64xf32>
      %310 = arith.addf %305, %309 : vector<2x64xf32>
      %cst_137 = arith.constant 0.797884583 : f32
      %311 = vector.broadcast %cst_137 : f32 to vector<2x64xf32>
      %312 = arith.mulf %311, %310 : vector<2x64xf32>
      %313 = math.tanh %312 : vector<2x64xf32>
      %cst_138 = arith.constant 1.000000e+00 : f32
      %314 = vector.broadcast %cst_138 : f32 to vector<2x64xf32>
      %315 = arith.addf %314, %313 : vector<2x64xf32>
      %cst_139 = arith.constant 5.000000e-01 : f32
      %316 = vector.broadcast %cst_139 : f32 to vector<2x64xf32>
      %317 = arith.mulf %316, %315 : vector<2x64xf32>
      %318 = arith.mulf %305, %317 : vector<2x64xf32>
      %319 = arith.truncf %318 : vector<2x64xf32> to vector<2x64xbf16>
      %c0_140 = arith.constant 0 : index
      %c0_141 = arith.constant 0 : index
      %320 = vector.load %arg14[%c0_140, %c0_141] : memref<64x10xbf16, #tpu.memory_space<vmem>>, vector<64x10xbf16>
      %cst_142 = arith.constant dense<0.000000e+00> : vector<2x10xf32>
      %321 = tpu.matmul %319, %320, %cst_142 {dimension_numbers = #tpu.dot_dimension_numbers<[1], [0], [0], [1], [0, 0, 1, 1], [], []>} : vector<2x64xbf16>, vector<64x10xbf16>, vector<2x10xf32> -> vector<2x10xf32>
      %c0_143 = arith.constant 0 : index
      %c0_144 = arith.constant 0 : index
      %322 = vector.load %arg15[%c0_143, %c0_144] : memref<1x10xf32, #tpu.memory_space<vmem>>, vector<1x10xf32>
      %323 = vector.broadcast %322 : vector<1x10xf32> to vector<2x10xf32>
      %324 = arith.addf %321, %323 : vector<2x10xf32>
      %c0_145 = arith.constant 0 : index
      %c0_146 = arith.constant 0 : index
      %325 = vector.load %arg16[%c0_145, %c0_146] : memref<2x10xf32, #tpu.memory_space<vmem>>, vector<2x10xf32>
      tpu.vector_store %arg16[%c0_145, %c0_146], %324 {strides = array<i32>} : memref<2x10xf32, #tpu.memory_space<vmem>>, vector<2x10xf32>,
    } else {
    }
    return
  }
  func.func @transform_0(%arg0: i32) -> (i32, i32, i32) {
    %c0_i32 = arith.constant 0 : i32
    %c0_i32_0 = arith.constant 0 : i32
    %c0_i32_1 = arith.constant 0 : i32
    %c0_i32_2 = arith.constant 0 : i32
    return %c0_i32, %c0_i32_0, %c0_i32_1 : i32, i32, i32
  }
  func.func @transform_1(%arg0: i32) -> (i32, i32) {
    %c0_i32 = arith.constant 0 : i32
    %c0_i32_0 = arith.constant 0 : i32
    %c0_i32_1 = arith.constant 0 : i32
    return %c0_i32, %c0_i32_0 : i32, i32
  }
  func.func @transform_2(%arg0: i32) -> (i32, i32) {
    %c0_i32 = arith.constant 0 : i32
    %c0_i32_0 = arith.constant 0 : i32
    %c0_i32_1 = arith.constant 0 : i32
    return %c0_i32, %c0_i32_0 : i32, i32
  }
  func.func @transform_3(%arg0: i32) -> (i32, i32, i32) {
    %c0_i32 = arith.constant 0 : i32
    %c0_i32_0 = arith.constant 0 : i32
    %c0_i32_1 = arith.constant 0 : i32
    return %arg0, %c0_i32, %c0_i32_0 : i32, i32, i32
  }
  func.func @transform_4(%arg0: i32) -> (i32, i32, i32) {
    %c0_i32 = arith.constant 0 : i32
    %c0_i32_0 = arith.constant 0 : i32
    %c0_i32_1 = arith.constant 0 : i32
    return %arg0, %c0_i32, %c0_i32_0 : i32, i32, i32
  }
  func.func @transform_5(%arg0: i32) -> (i32, i32, i32) {
    %c0_i32 = arith.constant 0 : i32
    %c0_i32_0 = arith.constant 0 : i32
    %c0_i32_1 = arith.constant 0 : i32
    return %arg0, %c0_i32, %c0_i32_0 : i32, i32, i32
  }
  func.func @transform_6(%arg0: i32) -> (i32, i32, i32) {
    %c0_i32 = arith.constant 0 : i32
    %c0_i32_0 = arith.constant 0 : i32
    %c0_i32_1 = arith.constant 0 : i32
    return %arg0, %c0_i32, %c0_i32_0 : i32, i32, i32
  }
  func.func @transform_7(%arg0: i32) -> (i32, i32, i32) {
    %c0_i32 = arith.constant 0 : i32
    %c0_i32_0 = arith.constant 0 : i32
    %c0_i32_1 = arith.constant 0 : i32
    return %arg0, %c0_i32, %c0_i32_0 : i32, i32, i32
  }
  func.func @transform_8(%arg0: i32) -> (i32, i32, i32) {
    %c0_i32 = arith.constant 0 : i32
    %c0_i32_0 = arith.constant 0 : i32
    %c0_i32_1 = arith.constant 0 : i32
    return %arg0, %c0_i32, %c0_i32_0 : i32, i32, i32
  }
  func.func @transform_9(%arg0: i32) -> (i32, i32, i32) {
    %c0_i32 = arith.constant 0 : i32
    %c0_i32_0 = arith.constant 0 : i32
    %c0_i32_1 = arith.constant 0 : i32
    return %arg0, %c0_i32, %c0_i32_0 : i32, i32, i32
  }
  func.func @transform_10(%arg0: i32) -> (i32, i32, i32) {
    %c0_i32 = arith.constant 0 : i32
    %c0_i32_0 = arith.constant 0 : i32
    %c0_i32_1 = arith.constant 0 : i32
    return %arg0, %c0_i32, %c0_i32_0 : i32, i32, i32
  }
  func.func @transform_11(%arg0: i32) -> (i32, i32, i32) {
    %c0_i32 = arith.constant 0 : i32
    %c0_i32_0 = arith.constant 0 : i32
    %c0_i32_1 = arith.constant 0 : i32
    %c0_i32_2 = arith.constant 0 : i32
    return %c0_i32, %c0_i32_0, %c0_i32_1 : i32, i32, i32
  }
  func.func @transform_12(%arg0: i32) -> (i32, i32) {
    %c0_i32 = arith.constant 0 : i32
    %c0_i32_0 = arith.constant 0 : i32
    %c0_i32_1 = arith.constant 0 : i32
    return %c0_i32, %c0_i32_0 : i32, i32
  }
  func.func @transform_13(%arg0: i32) -> (i32, i32) {
    %c0_i32 = arith.constant 0 : i32
    %c0_i32_0 = arith.constant 0 : i32
    %c0_i32_1 = arith.constant 0 : i32
    return %c0_i32, %c0_i32_0 : i32, i32
  }
  func.func @transform_14(%arg0: i32) -> (i32, i32) {
    %c0_i32 = arith.constant 0 : i32
    %c0_i32_0 = arith.constant 0 : i32
    %c0_i32_1 = arith.constant 0 : i32
    return %c0_i32, %c0_i32_0 : i32, i32
  }
  func.func @transform_15(%arg0: i32) -> (i32, i32) {
    %c0_i32 = arith.constant 0 : i32
    %c0_i32_0 = arith.constant 0 : i32
    %c0_i32_1 = arith.constant 0 : i32
    return %c0_i32, %c0_i32_0 : i32, i32
  }
}

</mosaic_0001>

<bundles_post_ra>
// kernel: _lambda_.1
= control target key start
LH: loop header
LB: loop body
LE: loop exit
PB: predicated region body
PF: predicated region fallthrough
CT: control target
= control target key end

     0   :  { %s6134_s0 = inlined_call_operand.vmem [shape: bf16[2,24,64], index: 0, kind: input, shape index: {}]   ;;  %s6135_s1 = inlined_call_operand.vmem [shape: bf16[64,32], index: 1, kind: input, shape index: {}]   ;;  %s6136_s2 = inlined_call_operand.vmem [shape: f32[24,32], index: 2, kind: input, shape index: {}]   ;;  %s6137_s3 = inlined_call_operand.vmem [shape: f32[2,1,32], index: 3, kind: input, shape index: {}]   ;;  %s6138_s4 = inlined_call_operand.vmem [shape: f32[2,1,32], index: 4, kind: input, shape index: {}]   ;;  %s6139_s5 = inlined_call_operand.vmem [shape: bf16[2,32,96], index: 5, kind: input, shape index: {}]   ;;  %s6140_s6 = inlined_call_operand.vmem [shape: f32[2,1,96], index: 6, kind: input, shape index: {}]   ;;  %s6141_s7 = inlined_call_operand.vmem [shape: bf16[2,32,32], index: 7, kind: input, shape index: {}]   ;;  %s6142_s8 = inlined_call_operand.vmem [shape: f32[2,1,32], index: 8, kind: input, shape index: {}]   ;;  %s6143_s9 = inlined_call_operand.vmem [shape: bf16[2,32,32], index: 9, kind: input, shape index: {}]   ;;  %s6144_s10 = inlined_call_operand.vmem [shape: f32[2,1,32], index: 10, kind: input, shape index: {}]   ;;  %s6145_s11 = inlined_call_operand.vmem [shape: bf16[24,32,64], index: 11, kind: input, shape index: {}]   ;;  %s6146_s12 = inlined_call_operand.vmem [shape: f32[1,64], index: 12, kind: input, shape index: {}]   ;;  %s6147_s13 = inlined_call_operand.vmem [shape: bf16[64,10], index: 13, kind: input, shape index: {}]   ;;  %s6148_s14 = inlined_call_operand.vmem [shape: f32[1,10], index: 14, kind: input, shape index: {}]   ;;  %s6149_s15 = inlined_call_operand.hbm [shape: f32[2,10], index: 15, kind: output, shape index: {}]  }
   0x1   :  { %6152 = sst [smem:[#allocation8_spill]] %s6137_s3 }
   0x2   :  { %6153 = sst [smem:[#allocation9_spill]] %s6138_s4 }
   0x3   :  { %6154 = sst [smem:[#allocation10_spill]] %s6146_s12 }
   0x4   :  { %6155 = sst [smem:[#allocation11_spill]] %s6148_s14 }
   0x5   :  { %6156 = sst [smem:[#allocation12_spill]] %s6149_s15 }
   0x6   :  { %20 = vsyncpa [#allocation5], 0  ;;  %s5180_s18 = smov 0  }
   0x7 LB: > { %6157 = sst [smem:[#allocation7_spill]] %s5077_s18  ;;  %s5186_s19 = sadd.s32 4294967295, %s5077_s18   ;;  %s5077_s18 = sphi %s5180_s18, %s26_s18  }
   0x8   : > { %p4100_p0 = scmp.ge.s32.totalorder %s5077_s18, 1  ;;  %p493_p1 = scmp.lt.s32.totalorder %s5077_s18, 3 }
   0xa   : > { %p494_p2 = pnand %p4100_p0, %p493_p1 }
   0xb   : > { %p561_p3 = scmp.lt.s32.totalorder (!%p494_p2), %s5186_s19, 1  ;;  %s6158_s3 = sld [smem:[#allocation8_spill]] (!%p494_p2) }
   0xc   : > { %497 = sbr.rel (%p494_p2) target bundleno = 4964 (0x1364), region = 80  ;;  %s6159_s4 = sld [smem:[#allocation9_spill]] (!%p494_p2) }
   0xd   : > { %p4107_p4 = scmp.ne.s32.totalorder (!%p494_p2), %s5186_s19, 0 }
  0x13   : > { %s5192_s20 = scalar_select %p561_p3, %s5186_s19, 1 }
  0x14   : > { %595 = sbr.rel (%p4107_p4) target bundleno = 262 (0x106), region = 84  ;;  %v4854_v0 = vld [vmem:[%s6135_s1] sm:$0xff] (!%p4107_p4)   ;;  %v5079_v1 = vmov (!%p4107_p4), 0.0   ;;  %v4855_v2 = vld [vmem:[%s6135_s1 + $0x8] sm:$0xff] (!%p4107_p4)   ;;  %vm5080_vm0 = vmmov (!%p4107_p4), 0   ;;  %v4856_v3 = vld [vmem:[%s6135_s1 + $0x10] sm:$0xff] (!%p4107_p4)  }
  0x15   : > { %s5198_s23 = scalar_lea.vmem %s6158_s3, %s5192_s20  ;;  %s5204_s26 = scalar_lea.vmem %s6159_s4, %s5192_s20  ;;  %4787 = vmatprep.subr.bf16.mxu1 (!%p4107_p4), %v5079_v1  ;;  %4443 = vmatprep.subr.bf16.mxu0 (!%p4107_p4), %v5079_v1  ;;  %v4857_v4 = vld [vmem:[%s6135_s1 + $0x18] sm:$0xff] (!%p4107_p4)   ;;  %v4858_v5 = vld [vmem:[%s6134_s0 + $0x8] sm:$0xff] (!%p4107_p4)   ;;  %v4859_v6 = vld [vmem:[%s6134_s0] sm:$0xff] (!%p4107_p4)   ;;  %vm649_vm1 = vcmask (!%p4107_p4), 523264   ;;  %vm725_vm2 = vcmask (!%p4107_p4), 261120  }
  0x16   : > { %s4298_s27 = sshll.u32 %s5192_s20, 4  ;;  %s574_s30 = scalar_lea.vmem %s6140_s6, %s5192_s20  ;;  %4791 = vmatpush3.bf16.msra.mxu1 (!%p4107_p4), %v4854_v0  ;;  %4444 = vmatpush3.bf16.msra.mxu0 (!%p4107_p4), %v4854_v0  ;;  %v4860_v7 = vld [vmem:[%s6134_s0 + $0x10] sm:$0xff] (!%p4107_p4)   ;;  %v716_v10 = vld [vmem:[%s6136_s2] sm:$0xff] (!%p4107_p4)  ;;  %v717_v12 = vld [vmem:[%s6136_s2 + $0x8] sm:$0xff] (!%p4107_p4) }
  0x17   : > { %s5214_s21 = scalar_lea.vmem %s6139_s5, %s4298_s27  ;;  %s5219_s3 = scalar_lea.vmem %s6141_s7, %s4298_s27  ;;  %4788 = vmatprep.subr.bf16.mxu1 (!%p4107_p4), %v5079_v1  ;;  %4445 = vmatprep.subr.bf16.mxu0 (!%p4107_p4), %v5079_v1  ;;  %v718_v8 = vld [vmem:[%s6136_s2 + $0x10] sm:$0xff] (!%p4107_p4) }
  0x18   : > { %s582_s24 = scalar_lea.vmem %s6142_s8, %s5192_s20  ;;  %s5228_s12 = scalar_lea.vmem %s6143_s9, %s4298_s27  ;;  %4455 = vmatprep.mubr.msk.bf16.mxu1 (!%p4107_p4), %vm5080_vm0, %v5079_v1  ;;  %4451 = vmatprep.mubr.msk.bf16.mxu0 (!%p4107_p4), %vm5080_vm0, %v5079_v1 }
  0x19   : > { %s590_s16 = scalar_lea.vmem %s6144_s10, %s5192_s20 }
  0x1a   : > { %4792 = vmatpush3.bf16.msra.mxu1 (!%p4107_p4), %v4855_v2  ;;  %4446 = vmatpush3.bf16.msra.mxu0 (!%p4107_p4), %v4855_v2 }
  0x1b   : > { %4789 = vmatprep.subr.bf16.mxu1 %v5079_v1  ;;  %4447 = vmatprep.subr.bf16.mxu0 %v5079_v1 }
  0x1e   : > { %4793 = vmatpush3.bf16.msra.mxu1 %v4856_v3  ;;  %4448 = vmatpush3.bf16.msra.mxu0 %v4856_v3 }
  0x1f   : > { %4790 = vmatprep.subr.bf16.mxu1 %v5079_v1  ;;  %4449 = vmatprep.subr.bf16.mxu0 %v5079_v1 }
  0x22   : > { %4794 = vmatpush3.bf16.msra.mxu1 %v4857_v4  ;;  %4450 = vmatpush3.bf16.msra.mxu0 %v4857_v4 }
  0x25   : > { %4456 = vmatmul.mubr.msk.bf16.vlgmr.msra.gmra.mrb[0].mxu1 %vm649_vm1, %v4858_v5  ;;  %4452 = vmatmul.mubr.msk.bf16.vlgmr.msra.gmra.mrb[0].mxu0 %vm649_vm1, %v4859_v6 }
  0x26   : > { %4459 = vmatprep.mubr.msk.bf16.mxu1 %vm5080_vm0, %v5079_v1 }
  0x2d   : > { %4460 = vmatmul.mubr.msk.bf16.gmra.mrb[4].mxu1 %vm649_vm1, %v4860_v7 }
  0xf8   : > { %v701_v9 = vpop.f32.mrb[0].mxu1  ;;  %v693_v11 = vpop.f32.mrb[0].mxu0 }
  0xf9   : > { %v721_v13 = vadd.f32 %v718_v8, %v701_v9  ;;  %v4457_v14 = vpop.f32.mrb[1].mxu1  ;;  %v719_v15 = vadd.f32 %v716_v10, %v693_v11  ;;  %v4453_v16 = vpop.f32.mrb[1].mxu0 }
  0xfa   : > { %v704_v17 = vpop.f32.mrb[2].mxu1  ;;  %v696_v18 = vpop.f32.mrb[2].mxu0 }
  0xfb   : > { %728 = vst.msk [vmem:[#allocation2 + $0x10] sm:$0xff] %vm725_vm2, %v721_v13  ;;  %v722_v19 = vadd.f32 %v716_v10, %v704_v17  ;;  %v4458_v20 = vpop.f32.mrb[3].mxu1  ;;  %726 = vst.msk [vmem:[#allocation2] sm:$0xff] %vm725_vm2, %v719_v15  ;;  %v720_v21 = vadd.f32 %v717_v12, %v696_v18  ;;  %v4454_v22 = vpop.f32.mrb[3].mxu0 }
  0xfd   : > { %729 = vst.msk [vmem:[#allocation2 + $0x18] sm:$0xff] %vm725_vm2, %v722_v19  ;;  %727 = vst.msk [vmem:[#allocation2 + $0x8] sm:$0xff] %vm725_vm2, %v720_v21 }
 0x100   : > { %v709_v23 = vpop.f32.mrb[4].mxu1 }
 0x101   : > { %v723_v24 = vadd.f32 %v717_v12, %v709_v23  ;;  %v4461_v25 = vpop.f32.mrb[5].mxu1 }
 0x102   : > { %v712_v26 = vpop.f32.mrb[6].mxu1 }
 0x103   : > { %730 = vst.msk [vmem:[#allocation2 + $0x20] sm:$0xff] %vm725_vm2, %v723_v24  ;;  %v724_v27 = vadd.f32 %v718_v8, %v712_v26  ;;  %v4462_v28 = vpop.f32.mrb[7].mxu1 }
 0x105   : > { %731 = vst.msk [vmem:[#allocation2 + $0x28] sm:$0xff] %vm725_vm2, %v724_v27 }
 0x106 PF: > { %v732_v29 = vld [vmem:[#allocation2] sm:$0xff]  ;;  %vm740_vm3 = vcmask 261120   ;;  %v734_v30 = vld [vmem:[#allocation2 + $0x10] sm:$0xff]  ;;  %v733_v31 = vld [vmem:[#allocation2 + $0x8] sm:$0xff]  ;;  %v5081_v8 = vmov 0.0   ;;  %vm5082_vm4 = vmmov 0  }
 0x107   : > { %v741_v32 = vsel %vm740_vm3, %v732_v29, 0.0  ;;  %v747_v33 = vsel %vm740_vm3, %v734_v30, 0.0  ;;  %v735_v34 = vld [vmem:[#allocation2 + $0x18] sm:$0xff]  ;;  %v744_v35 = vsel %vm740_vm3, %v733_v31, 0.0  ;;  %v4861_v7 = vld [vmem:[%s5214_s21] sm:$0xff]   ;;  %4463 = vmatprep.subr.bf16.mxu0 %v5081_v8  ;;  %4467 = vmatprep.mubr.msk.bf16.mxu0 %vm5082_vm4, %v5081_v8  ;;  %v4862_v9 = vld [vmem:[%s5214_s21 + $0x8] sm:$0xff]  }
 0x108   : > { %742 = vadd.xlane.f32.xlu0 %v741_v32  ;;  %748 = vadd.xlane.f32.xlu1 %v747_v33  ;;  %v750_v36 = vsel %vm740_vm3, %v735_v34, 0.0  ;;  %vm951_vm5 = vcmask 64512   ;;  %s5083_s18 = smov 96   ;;  %vm1084_vm6 = vcmask 195584   ;;  %s5085_s14 = smov 88   ;;  %vm1172_vm8 = vcmask 1043456  }
 0x109   : > { %4464 = vmatpush3.bf16.msra.mxu0 %v4861_v7  ;;  %s5086_s15 = smov 120   ;;  %s5087_s4 = smov 56   ;;  %vm1658_vm9 = vcmask 130112   ;;  %vm2031_vm10 = vcmask 195712   ;;  %vm2404_vm11 = vcmask 261312  }
 0x10a   : > { %v736_v37 = vld [vmem:[#allocation2 + $0x20] sm:$0xff]  ;;  %4465 = vmatprep.subr.bf16.mxu0 %v5081_v8  ;;  %s5088_s27 = smov 80   ;;  %s5089_s22 = smov 112  }
 0x10b   : > { %v753_v39 = vsel %vm740_vm3, %v736_v37, 0.0  ;;  %s5090_s25 = smov 48   ;;  %s5091_s28 = smov 72  }
 0x10c   : > { %v737_v38 = vld [vmem:[#allocation2 + $0x28] sm:$0xff]  ;;  %745 = vadd.xlane.f32.xlu0 %v744_v35  ;;  %751 = vadd.xlane.f32.xlu1 %v750_v36  ;;  %v4119_v35 = vld [vmem:[%s5204_s26] ss:$0 sm:$0xff]  ;;  %s5092_s29 = smov 104   ;;  %s5093_s21 = smov 40  }
 0x10d   : > { %v756_v40 = vsel %vm740_vm3, %v737_v38, 0.0  ;;  %4466 = vmatpush3.bf16.msra.mxu0 %v4862_v9  ;;  %s5094_s17 = smov 8   ;;  %p4171_p5 = scmp.ne.s32.totalorder %s5186_s19, 1 }
 0x10e   : > { %vm5098_vm12 = vmmov (!%p4171_p5), 0   ;;  %vm2785_vm13 = vcmask (!%p4171_p5), 1041409   ;;  %vm3936_vm14 = vcmask (!%p4171_p5), 523264   ;;  %vm3980_vm15 = vcmask (!%p4171_p5), 74752  }
 0x110   : > { %754 = vadd.xlane.f32.xlu0 %v753_v39  ;;  %757 = vadd.xlane.f32.xlu1 %v756_v40 }
 0x195   : > { %v743_v41 = vpop.xlane.xlu0 %742  ;;  %v749_v42 = vpop.xlane.xlu1 %748 }
 0x196   : > { %v760_v43 = vmul.f32 0.03125, %v743_v41  ;;  %v762_v44 = vmul.f32 0.03125, %v749_v42 }
 0x198   : > { %v5280_v45 = vsub.f32 %v732_v29, %v760_v43  ;;  %v5282_v46 = vsub.f32 %v734_v30, %v762_v44  ;;  %v4118_v30 = vld [vmem:[%s5198_s23] ss:$0 sm:$0xff] }
 0x199   : > { %v746_v47 = vpop.xlane.xlu0 %745  ;;  %v752_v48 = vpop.xlane.xlu1 %751 }
 0x19a   : > { %v761_v49 = vmul.f32 0.03125, %v746_v47  ;;  %v763_v50 = vmul.f32 0.03125, %v752_v48  ;;  %v772_v51 = vmul.f32 %v5280_v45, %v5280_v45  ;;  %v774_v52 = vmul.f32 %v5282_v46, %v5282_v46 }
 0x19c   : > { %v767_v53 = vsub.f32 %v733_v31, %v761_v49  ;;  %v5288_v54 = vsub.f32 %v735_v34, %v763_v50  ;;  %v778_v55 = vsel %vm740_vm3, %v772_v51, 0.0  ;;  %v784_v58 = vsel %vm740_vm3, %v774_v52, 0.0 }
 0x19d   : > { %779 = vadd.xlane.f32.xlu0 %v778_v55  ;;  %v755_v56 = vpop.xlane.xlu0 %754  ;;  %v758_v57 = vpop.xlane.xlu1 %757 }
 0x19e   : > { %v764_v59 = vmul.f32 0.03125, %v755_v56  ;;  %v765_v60 = vmul.f32 0.03125, %v758_v57  ;;  %v773_v61 = vmul.f32 %v767_v53, %v767_v53  ;;  %v775_v62 = vmul.f32 %v5288_v54, %v5288_v54  ;;  %v4120_v57 = vld [vmem:[%s574_s30] ss:$0 sm:$0xff]  ;;  %s5084_s30 = smov 64  }
 0x1a0   : > { %v5294_v63 = vsub.f32 %v736_v37, %v764_v59  ;;  %v5296_v0 = vsub.f32 %v737_v38, %v765_v60  ;;  %v781_v1 = vsel %vm740_vm3, %v773_v61, 0.0  ;;  %v787_v2 = vsel %vm740_vm3, %v775_v62, 0.0 }
 0x1a1   : > { %785 = vadd.xlane.f32.xlu0 %v784_v58  ;;  %782 = vadd.xlane.f32.xlu1 %v781_v1 }
 0x1a2   : > { %v776_v3 = vmul.f32 %v5294_v63, %v5294_v63  ;;  %v777_v4 = vmul.f32 %v5296_v0, %v5296_v0 }
 0x1a4   : > { %v790_v5 = vsel %vm740_vm3, %v776_v3, 0.0  ;;  %v793_v6 = vsel %vm740_vm3, %v777_v4, 0.0 }
 0x1a5   : > { %788 = vadd.xlane.f32.xlu1 %v787_v2  ;;  %791 = vadd.xlane.f32.xlu0 %v790_v5 }
 0x1a9   : > { %794 = vadd.xlane.f32.xlu1 %v793_v6 }
 0x22a   : > { %v780_v10 = vpop.xlane.xlu0 %779 }
 0x22b   : > { %v796_v11 = vmul.f32 0.03125, %v780_v10 }
 0x22d   : > { %v802_v12 = vadd.f32 1e-05, %v796_v11 }
 0x22e   : > { %v783_v13 = vpop.xlane.xlu1 %782  ;;  %v786_v14 = vpop.xlane.xlu0 %785 }
 0x22f   : > { %4867 = vrsqrt.f32 %v802_v12  ;;  %v797_v15 = vmul.f32 0.03125, %v783_v13  ;;  %v798_v16 = vmul.f32 0.03125, %v786_v14 }
 0x231   : > { %v803_v17 = vadd.f32 1e-05, %v797_v15  ;;  %v804_v18 = vadd.f32 1e-05, %v798_v16 }
 0x232   : > { %v789_v19 = vpop.xlane.xlu1 %788  ;;  %v792_v20 = vpop.xlane.xlu0 %791 }
 0x233   : > { %4869 = vrsqrt.f32 %v803_v17  ;;  %v799_v21 = vmul.f32 0.03125, %v789_v19  ;;  %v800_v23 = vmul.f32 0.03125, %v792_v20 }
 0x234   : > { %4871 = vrsqrt.f32 %v804_v18 }
 0x235   : > { %v805_v22 = vadd.f32 1e-05, %v799_v21  ;;  %v806_v27 = vadd.f32 1e-05, %v800_v23 }
 0x236   : > { %v795_v24 = vpop.xlane.xlu1 %794 }
 0x237   : > { %4873 = vrsqrt.f32 %v805_v22  ;;  %v801_v25 = vmul.f32 0.03125, %v795_v24 }
 0x239   : > { %v4868_v26 = vpop.eup %4867  ;;  %v807_v28 = vadd.f32 1e-05, %v801_v25 }
 0x23a   : > { %v814_v29 = vmul.f32 %v4868_v26, %v5280_v45 }
 0x23b   : > { %4875 = vrsqrt.f32 %v807_v28 }
 0x23c   : > { %4877 = vrsqrt.f32 %v806_v27  ;;  %v826_v33 = vmul.f32 %v4118_v30, %v814_v29 }
 0x23d   : > { %v4870_v31 = vpop.eup %4869 }
 0x23e   : > { %v815_v32 = vmul.f32 %v4870_v31, %v767_v53  ;;  %v4872_v34 = vpop.eup %4871  ;;  %v5315_v38 = vadd.f32 %v4119_v35, %v826_v33 }
 0x23f   : > { %v816_v40 = vmul.f32 %v4872_v34, %v5282_v46 }
 0x240   : > { %v827_v36 = vmul.f32 %v4118_v30, %v815_v32 }
 0x241   : > { %v4874_v37 = vpop.eup %4873  ;;  %v828_v45 = vmul.f32 %v4118_v30, %v816_v40 }
 0x242   : > { %v5317_v39 = vadd.f32 %v4119_v35, %v827_v36  ;;  %v817_v41 = vmul.f32 %v4874_v37, %v5288_v54 }
 0x243   : > { %v5329_v46 = vadd.f32 %v4119_v35, %v828_v45 }
 0x244   : > { %v844_v42 = vpack.c.bf16 %v5317_v39, %v5315_v38  ;;  %v829_v43 = vmul.f32 %v4118_v30, %v817_v41 }
 0x245   : > { %v4876_v44 = vpop.eup %4875 }
 0x246   : > { %4468 = vmatmul.mubr.msk.bf16.vlgmr.msra.gmra.mrb[0].mxu0 %vm740_vm3, %v844_v42  ;;  %v4878_v47 = vpop.eup %4877  ;;  %v5326_v48 = vadd.f32 %v4119_v35, %v829_v43  ;;  %v819_v49 = vmul.f32 %v4876_v44, %v5296_v0 }
 0x247   : > { %4471 = vmatprep.mubr.msk.bf16.mxu0 %vm5082_vm4, %v5081_v8  ;;  %v818_v50 = vmul.f32 %v4878_v47, %v5294_v63 }
 0x248   : > { %v845_v51 = vpack.c.bf16 %v5326_v48, %v5329_v46  ;;  %v831_v52 = vmul.f32 %v4118_v30, %v819_v49 }
 0x249   : > { %v830_v53 = vmul.f32 %v4118_v30, %v818_v50 }
 0x24a   : > { %v5337_v54 = vadd.f32 %v4119_v35, %v831_v52 }
 0x24b   : > { %v5339_v55 = vadd.f32 %v4119_v35, %v830_v53 }
 0x24d   : > { %v846_v56 = vpack.c.bf16 %v5337_v54, %v5339_v55 }
 0x24e   : > { %4472 = vmatmul.mubr.msk.bf16.gmra.mrb[4].mxu0 %vm740_vm3, %v845_v51  ;;  %v940_v51 = vlaneseq }
 0x24f   : > { %4475 = vmatprep.mubr.msk.bf16.mxu0 %vm5082_vm4, %v5081_v8 }
 0x256   : > { %4476 = vmatmul.mubr.msk.bf16.gmra.mrb[8].mxu0 %vm740_vm3, %v846_v56 }
 0x319   : > { %v913_v58 = vpop.f32.mrb[0].mxu0 }
 0x31a   : > { %v4469_v59 = vpop.f32.mrb[1].mxu0  ;;  %v914_v61 = vadd.f32 %v4120_v57, %v913_v58 }
 0x31b   : > { %v916_v60 = vpop.f32.mrb[2].mxu0  ;;  %v941_v59 = vand.u32 127, %v940_v51 }
 0x31c   : > { %v917_v62 = vadd.f32 %v4120_v57, %v916_v60  ;;  %v4470_v63 = vpop.f32.mrb[3].mxu0 }
 0x31d   : > { %vm942_vm7 = vcmp.lt.s32.totalorder %v941_v59, 17 }
 0x31e   : > { %v5349_v0 = vpack.c.bf16 %v917_v62, %v914_v61  ;;  %v5401_v62 = vsel %vm942_vm7, 1.0, %v5081_v8 }
 0x320   : > { %947 = vrot.lane.b32.xlu0 %v5349_v0, %s5083_s18  ;;  %4483 = vmatprep.mubr.msk.bf16.mxu1 %vm951_vm5, %v5349_v0 }
 0x321   : > { %v921_v1 = vpop.f32.mrb[4].mxu0 }
 0x322   : > { %v922_v2 = vadd.f32 %v4120_v57, %v921_v1  ;;  %v4473_v3 = vpop.f32.mrb[5].mxu0 }
 0x323   : > { %v924_v4 = vpop.f32.mrb[6].mxu0 }
 0x324   : > { %v5354_v5 = vpack.c.bf16 %v922_v2, %v922_v2  ;;  %v4474_v6 = vpop.f32.mrb[7].mxu0  ;;  %v925_v9 = vadd.f32 %v4120_v57, %v924_v4 }
 0x326   : > { %949 = vrot.lane.b32.xlu1 %v5354_v5, %s5083_s18 }
 0x329   : > { %v929_v7 = vpop.f32.mrb[8].mxu0 }
 0x32a   : > { %v930_v10 = vadd.f32 %v4120_v57, %v929_v7  ;;  %v4477_v11 = vpop.f32.mrb[9].mxu0 }
 0x32b   : > { %v932_v12 = vpop.f32.mrb[10].mxu0 }
 0x32c   : > { %v5357_v13 = vpack.c.bf16 %v930_v10, %v925_v9  ;;  %v933_v14 = vadd.f32 %v4120_v57, %v932_v12  ;;  %v4478_v15 = vpop.f32.mrb[11].mxu0 }
 0x32e   : > { %1014 = vrot.lane.b32.xlu1 %v5357_v13, %s5083_s18  ;;  %4491 = vmatprep.mubr.msk.bf16.mxu0 %vm951_vm5, %v5357_v13  ;;  %v5362_v16 = vpack.c.bf16 %v933_v14, %v933_v14 }
 0x332   : > { %1016 = vrot.lane.b32.xlu1 %v5362_v16, %s5083_s18  ;;  %s5095_s18 = smov 16  }
 0x392   : > { %v948_v17 = vpop.permute.xlu0 %947 }
 0x393   : > { %4795 = vmatprep.subr.msk.bf16.mxu1 %vm951_vm5, %v948_v17  ;;  %v959_v18 = vsel %vm951_vm5, %v948_v17, 0 }
 0x394   : > { %4480 = vmatpush3.bf16.xpose.msra.mxu1 %v959_v18 }
 0x398   : > { %v950_v19 = vpop.permute.xlu1 %949 }
 0x399   : > { %4796 = vmatprep.subr.msk.bf16.mxu1 %vm951_vm5, %v950_v19  ;;  %v962_v20 = vsel %vm951_vm5, %v950_v19, 0 }
 0x39c   : > { %4482 = vmatpush3.bf16.xpose.msra.mxu1 %v962_v20 }
 0x3a0   : > { %v1015_v21 = vpop.permute.xlu1 %1014 }
 0x3a1   : > { %4797 = vmatprep.subr.msk.bf16.mxu0 %vm951_vm5, %v1015_v21  ;;  %v1025_v22 = vsel %vm951_vm5, %v1015_v21, 0 }
 0x3a2   : > { %4488 = vmatpush3.bf16.xpose.msra.mxu0 %v1025_v22 }
 0x3a3   : > { %4484 = vmatmul.mubr.msk.bf16.vlgmr.msra.gmra.mrb[0].mxu1 %vm951_vm5, %v5354_v5 }
 0x3a4   : > { %v1017_v23 = vpop.permute.xlu1 %1016 }
 0x3a5   : > { %4798 = vmatprep.subr.msk.bf16.mxu0 %vm951_vm5, %v1017_v23  ;;  %v1028_v24 = vsel %vm951_vm5, %v1017_v23, 0 }
 0x3aa   : > { %4490 = vmatpush3.bf16.xpose.msra.mxu0 %v1028_v24 }
 0x3b1   : > { %4492 = vmatmul.mubr.msk.bf16.vlgmr.msra.gmra.mrb[12].mxu0 %vm951_vm5, %v5362_v16 }
 0x476   : > { %v4485_v25 = vpop.f32.mrb[0].mxu1 }
 0x477   : > { %v1080_v26 = vmul.f32 0.5, %v4485_v25  ;;  %v998_v27 = vpop.f32.mrb[1].mxu1 }
 0x478   : > { %v4486_v28 = vpop.f32.mrb[2].mxu1  ;;  %v1078_v29 = vmul.f32 0.5, %v998_v27 }
 0x479   : > { %v1001_v30 = vpop.f32.mrb[3].mxu1  ;;  %v1091_v31 = vsel %vm1084_vm6, %v1080_v26, -inf }
 0x47a   : > { %v1079_v32 = vmul.f32 0.5, %v1001_v30  ;;  %1092 = vmax.xlane.f32.xlu0 %v1091_v31  ;;  %v1085_v34 = vsel %vm1084_vm6, %v1078_v29, -inf }
 0x47c   : > { %v1088_v33 = vsel %vm1084_vm6, %v1079_v32, -inf }
 0x47d   : > { %1089 = vmax.xlane.f32.xlu1 %v1088_v33 }
 0x47e   : > { %1086 = vmax.xlane.f32.xlu0 %v1085_v34 }
 0x484   : > { %v4493_v35 = vpop.f32.mrb[12].mxu0 }
 0x485   : > { %v5380_v36 = vmul.f32 0.5, %v4493_v35  ;;  %v1064_v37 = vpop.f32.mrb[13].mxu0 }
 0x486   : > { %v5382_v40 = vmul.f32 0.5, %v1064_v37  ;;  %v4494_v41 = vpop.f32.mrb[14].mxu0 }
 0x487   : > { %v1067_v42 = vpop.f32.mrb[15].mxu0  ;;  %v1100_v43 = vsel %vm1084_vm6, %v5380_v36, -inf }
 0x488   : > { %v5386_v44 = vmul.f32 0.5, %v1067_v42  ;;  %1101 = vmax.xlane.f32.xlu1 %v1100_v43  ;;  %v1094_v45 = vsel %vm1084_vm6, %v5382_v40, -inf }
 0x489   : > { %1095 = vmax.xlane.f32.xlu0 %v1094_v45 }
 0x48a   : > { %v1097_v47 = vsel %vm1084_vm6, %v5386_v44, -inf }
 0x48d   : > { %1098 = vmax.xlane.f32.xlu0 %v1097_v47 }
 0x499   : > { %1163 = vrot.lane.b32.xlu1 %v5354_v5, %s5084_s30 }
 0x49d   : > { %1224 = vrot.lane.b32.xlu1 %v5357_v13, %s5084_s30 }
 0x4a1   : > { %1296 = vrot.lane.b32.xlu1 %v5349_v0, %s5085_s14 }
 0x4a3   : > { %1161 = vrot.lane.b32.xlu0 %v5349_v0, %s5084_s30 }
 0x507   : > { %v1093_v49 = vpop.xlane.xlu0 %1092 }
 0x508   : > { %v1105_v50 = vsub.f32 %v1080_v26, %v1093_v49 }
 0x50a   : > { %v1113_v52 = vmul.f32 1.442695, %v1105_v50  ;;  %v1090_v53 = vpop.xlane.xlu1 %1089 }
 0x50b   : > { %v1104_v56 = vsub.f32 %v1079_v32, %v1090_v53  ;;  %v1087_v57 = vpop.xlane.xlu0 %1086 }
 0x50c   : > { %4879 = vpow2.f32 %v1113_v52  ;;  %v1103_v58 = vsub.f32 %v1078_v29, %v1087_v57 }
 0x50d   : > { %v1111_v60 = vmul.f32 1.442695, %v1104_v56 }
 0x50e   : > { %v1109_v61 = vmul.f32 1.442695, %v1103_v58 }
 0x50f   : > { %4881 = vpow2.f32 %v1111_v60 }
 0x510   : > { %4883 = vpow2.f32 %v1109_v61 }
 0x515   : > { %v1102_v63 = vpop.xlane.xlu1 %1101 }
 0x516   : > { %v4880_v1 = vpop.eup %4879  ;;  %v1096_v2 = vpop.xlane.xlu0 %1095  ;;  %v1108_v22 = vsub.f32 %v5380_v36, %v1102_v63 }
 0x517   : > { %v5404_v3 = vmul.f32 %v4880_v1, %v5401_v62  ;;  %v1106_v25 = vsub.f32 %v5382_v40, %v1096_v2 }
 0x518   : > { %v1119_v24 = vmul.f32 1.442695, %v1108_v22 }
 0x519   : > { %v4882_v4 = vpop.eup %4881  ;;  %v1164_v6 = vpop.permute.xlu1 %1163  ;;  %v1133_v7 = vsel %vm1084_vm6, %v5404_v3, 0.0  ;;  %v1115_v27 = vmul.f32 1.442695, %v1106_v25 }
 0x51a   : > { %v4884_v9 = vpop.eup %4883  ;;  %1134 = vadd.xlane.f32.xlu0 %v1133_v7  ;;  %v1099_v10 = vpop.xlane.xlu0 %1098  ;;  %v1122_v11 = vmul.f32 %v4882_v4, %v5401_v62  ;;  %v1174_v21 = vsel %vm1172_vm8, %v1164_v6, 0  ;;  %4885 = vpow2.f32 %v1119_v24 }
 0x51b   : > { %v5410_v12 = vmul.f32 %v4884_v9, %v5401_v62  ;;  %v1107_v23 = vsub.f32 %v5386_v44, %v1099_v10 }
 0x51c   : > { %v1130_v14 = vsel %vm1084_vm6, %v1122_v11, 0.0 }
 0x51d   : > { %1131 = vadd.xlane.f32.xlu1 %v1130_v14  ;;  %v5413_v15 = vpop.permute.xlu1 %1224  ;;  %v1127_v17 = vsel %vm1084_vm6, %v5410_v12, 0.0  ;;  %v1117_v26 = vmul.f32 1.442695, %v1107_v23 }
 0x51e   : > { %1128 = vadd.xlane.f32.xlu0 %v1127_v17  ;;  %v1162_v18 = vpop.permute.xlu0 %1161 }
 0x51f   : > { %4495 = vmatprep.subr.bf16.mxu1 %v1162_v18  ;;  %4887 = vpow2.f32 %v1117_v26 }
 0x520   : > { %4496 = vmatpush3.bf16.msra.mxu1 %v1162_v18  ;;  %4889 = vpow2.f32 %v1115_v27 }
 0x521   : > { %4799 = vmatprep.subr.msk.bf16.mxu1 %vm1172_vm8, %v1164_v6  ;;  %v1297_v19 = vpop.permute.xlu1 %1296 }
 0x522   : > { %4801 = vmatprep.subr.msk.bf16.mxu0 %vm951_vm5, %v1297_v19  ;;  %v1307_v20 = vsel %vm951_vm5, %v1297_v19, 0 }
 0x523   : > { %4512 = vmatpush3.bf16.xpose.msra.mxu0 %v1307_v20 }
 0x524   : > { %4498 = vmatpush3.bf16.msra.mxu1 %v1174_v21  ;;  %v4886_v28 = vpop.eup %4885 }
 0x525   : > { %4503 = vmatprep.subr.bf16.mxu1 %v5413_v15  ;;  %v1126_v30 = vmul.f32 %v4886_v28, %v5401_v62 }
 0x527   : > { %v1142_v33 = vsel %vm1084_vm6, %v1126_v30, 0.0 }
 0x529   : > { %v4888_v29 = vpop.eup %4887 }
 0x52a   : > { %v4890_v31 = vpop.eup %4889  ;;  %v1125_v32 = vmul.f32 %v4888_v29, %v5401_v62 }
 0x52b   : > { %v1124_v34 = vmul.f32 %v4890_v31, %v5401_v62 }
 0x52c   : > { %v1139_v35 = vsel %vm1084_vm6, %v1125_v32, 0.0 }
 0x52d   : > { %v1136_v36 = vsel %vm1084_vm6, %v1124_v34, 0.0 }
 0x52e   : > { %1298 = vrot.lane.b32.xlu1 %v5354_v5, %s5085_s14 }
 0x534   : > { %1226 = vrot.lane.b32.xlu0 %v5362_v16, %s5084_s30  ;;  %s5096_s30 = smov 24  }
 0x552   : > { %1143 = vadd.xlane.f32.xlu1 %v1142_v33 }
 0x553   : > { %1140 = vadd.xlane.f32.xlu0 %v1139_v35 }
 0x556   : > { %1137 = vadd.xlane.f32.xlu1 %v1136_v36 }
 0x567   : > { %1292 = vrot.lane.b32.xlu1 %v5349_v0, %s5086_s15 }
 0x569   : > { %1364 = vrot.lane.b32.xlu0 %v5357_v13, %s5085_s14 }
 0x56b   : > { %1366 = vrot.lane.b32.xlu1 %v5362_v16, %s5085_s14 }
 0x56d   : > { %1294 = vrot.lane.b32.xlu0 %v5354_v5, %s5086_s15 }
 0x56f   : > { %1362 = vrot.lane.b32.xlu1 %v5362_v16, %s5086_s15 }
 0x571   : > { %1360 = vrot.lane.b32.xlu0 %v5357_v13, %s5086_s15 }
 0x5a7   : > { %v1135_v37 = vpop.xlane.xlu0 %1134 }
 0x5a8   : > { %4891 = vrcp.f32 %v1135_v37 }
 0x5aa   : > { %v1132_v40 = vpop.xlane.xlu1 %1131 }
 0x5ab   : > { %4893 = vrcp.f32 %v1132_v40  ;;  %v1129_v41 = vpop.xlane.xlu0 %1128 }
 0x5ac   : > { %4895 = vrcp.f32 %v1129_v41 }
 0x5ae   : > { %v1299_v42 = vpop.permute.xlu1 %1298 }
 0x5af   : > { %4802 = vmatprep.subr.msk.bf16.mxu0 %vm951_vm5, %v1299_v42  ;;  %v1310_v43 = vsel %vm951_vm5, %v1299_v42, 0  ;;  %v1227_v56 = vpop.permute.xlu0 %1226 }
 0x5b0   : > { %4514 = vmatpush3.bf16.xpose.msra.mxu0 %v1310_v43  ;;  %v1236_v57 = vsel %vm1172_vm8, %v1227_v56, 0 }
 0x5b2   : > { %v4892_v44 = vpop.eup %4891 }
 0x5b3   : > { %v1153_v50 = vmul.f32 %v4892_v44, %v5404_v3 }
 0x5b5   : > { %v4894_v45 = vpop.eup %4893  ;;  %v1158_v53 = vpack.c.bf16 %v1153_v50, %v1153_v50 }
 0x5b6   : > { %v4896_v47 = vpop.eup %4895  ;;  %v1152_v49 = vmul.f32 %v4894_v45, %v1122_v11 }
 0x5b7   : > { %v1151_v51 = vmul.f32 %v4896_v47, %v5410_v12 }
 0x5b9   : > { %v1157_v52 = vpack.c.bf16 %v1152_v49, %v1151_v51 }
 0x5bb   : > { %4499 = vmatprep.mubr.msk.bf16.mxu1 %vm1084_vm6, %v1157_v52 }
 0x5bc   : > { %4500 = vmatmul.mubr.msk.bf16.vlgmr.msra.gmra.mrb[4].mxu1 %vm1084_vm6, %v1158_v53 }
 0x5bd   : > { %4504 = vmatpush3.bf16.msra.mxu1 %v5413_v15 }
 0x5be   : > { %4800 = vmatprep.subr.msk.bf16.mxu1 %vm1172_vm8, %v1227_v56 }
 0x5c1   : > { %4506 = vmatpush3.bf16.msra.mxu1 %v1236_v57 }
 0x5df   : > { %v1144_v58 = vpop.xlane.xlu1 %1143 }
 0x5e0   : > { %v1141_v59 = vpop.xlane.xlu0 %1140  ;;  %4897 = vrcp.f32 %v1144_v58 }
 0x5e1   : > { %4899 = vrcp.f32 %v1141_v59 }
 0x5e3   : > { %v1138_v60 = vpop.xlane.xlu1 %1137 }
 0x5e4   : > { %4901 = vrcp.f32 %v1138_v60  ;;  %v1365_v61 = vpop.permute.xlu0 %1364 }
 0x5e5   : > { %4803 = vmatprep.subr.msk.bf16.mxu1 %vm951_vm5, %v1365_v61  ;;  %v1375_v14 = vsel %vm951_vm5, %v1365_v61, 0 }
 0x5e7   : > { %v1293_v63 = vpop.permute.xlu1 %1292 }
 0x5e8   : > { %v1295_v1 = vpop.permute.xlu0 %1294  ;;  %4515 = vmatprep.mubr.msk.bf16.mxu0 %vm951_vm5, %v1293_v63 }
 0x5e9   : > { %4516 = vmatmul.mubr.msk.bf16.vlgmr.msra.gmra.mrb[16].mxu0 %vm951_vm5, %v1295_v1 }
 0x5ea   : > { %v4898_v2 = vpop.eup %4897 }
 0x5eb   : > { %v4900_v3 = vpop.eup %4899  ;;  %v1156_v6 = vmul.f32 %v4898_v2, %v1126_v30  ;;  %v1367_v15 = vpop.permute.xlu1 %1366 }
 0x5ec   : > { %v1155_v9 = vmul.f32 %v4900_v3, %v1125_v32  ;;  %v1361_v12 = vpop.permute.xlu0 %1360  ;;  %v1378_v17 = vsel %vm951_vm5, %v1367_v15, 0 }
 0x5ed   : > { %v1160_v11 = vpack.c.bf16 %v1156_v6, %v1156_v6 }
 0x5ee   : > { %v4902_v4 = vpop.eup %4901 }
 0x5ef   : > { %v1154_v7 = vmul.f32 %v4902_v4, %v1124_v34  ;;  %v1363_v18 = vpop.permute.xlu1 %1362 }
 0x5f1   : > { %v1159_v10 = vpack.c.bf16 %v1155_v9, %v1154_v7 }
 0x5f3   : > { %4507 = vmatprep.mubr.msk.bf16.mxu1 %vm1084_vm6, %v1159_v10 }
 0x5f4   : > { %4508 = vmatmul.mubr.msk.bf16.vlgmr.msra.gmra.mrb[8].mxu1 %vm1084_vm6, %v1160_v11 }
 0x5f5   : > { %4520 = vmatpush3.bf16.xpose.msra.mxu1 %v1375_v14  ;;  %4523 = vmatprep.mubr.msk.bf16.mxu1 %vm951_vm5, %v1361_v12 }
 0x5f6   : > { %4804 = vmatprep.subr.msk.bf16.mxu1 %vm951_vm5, %v1367_v15 }
 0x5fd   : > { %4522 = vmatpush3.bf16.xpose.msra.mxu1 %v1378_v17 }
 0x604   : > { %4524 = vmatmul.mubr.msk.bf16.vlgmr.msra.gmra.mrb[12].mxu1 %vm951_vm5, %v1363_v18 }
 0x68f   : > { %v4501_v19 = vpop.f32.mrb[4].mxu1 }
 0x690   : > { %1288 = vst.msk [vmem:[#allocation3 + $0x10] sm:$0xff] %vm951_vm5, %v4501_v19  ;;  %v1210_v20 = vpop.f32.mrb[5].mxu1 }
 0x691   : > { %1286 = vst.msk [vmem:[#allocation3] sm:$0xff] %vm951_vm5, %v1210_v20  ;;  %v4502_v21 = vpop.f32.mrb[6].mxu1 }
 0x692   : > { %v1213_v22 = vpop.f32.mrb[7].mxu1 }
 0x693   : > { %1287 = vst.msk [vmem:[#allocation3 + $0x8] sm:$0xff] %vm951_vm5, %v1213_v22 }
 0x6bc   : > { %v4517_v23 = vpop.f32.mrb[16].mxu0 }
 0x6bd   : > { %v1346_v24 = vpop.f32.mrb[17].mxu0  ;;  %v1430_v28 = vmul.f32 0.5, %v4517_v23 }
 0x6be   : > { %v1428_v25 = vmul.f32 0.5, %v1346_v24  ;;  %v4518_v26 = vpop.f32.mrb[18].mxu0 }
 0x6bf   : > { %v1349_v27 = vpop.f32.mrb[19].mxu0  ;;  %v1440_v32 = vsel %vm1084_vm6, %v1430_v28, -inf }
 0x6c0   : > { %v1429_v29 = vmul.f32 0.5, %v1349_v27  ;;  %v1434_v30 = vsel %vm1084_vm6, %v1428_v25, -inf }
 0x6c1   : > { %1435 = vmax.xlane.f32.xlu0 %v1434_v30 }
 0x6c2   : > { %v1437_v31 = vsel %vm1084_vm6, %v1429_v29, -inf }
 0x6c3   : > { %1438 = vmax.xlane.f32.xlu1 %v1437_v31 }
 0x6c5   : > { %1441 = vmax.xlane.f32.xlu0 %v1440_v32 }
 0x6c7   : > { %v4509_v33 = vpop.f32.mrb[8].mxu1 }
 0x6c8   : > { %1291 = vst.msk [vmem:[#allocation3 + $0x28] sm:$0xff] %vm951_vm5, %v4509_v33  ;;  %v1272_v34 = vpop.f32.mrb[9].mxu1 }
 0x6c9   : > { %1289 = vst.msk [vmem:[#allocation3 + $0x18] sm:$0xff] %vm951_vm5, %v1272_v34  ;;  %v4510_v35 = vpop.f32.mrb[10].mxu1 }
 0x6ca   : > { %v1275_v36 = vpop.f32.mrb[11].mxu1 }
 0x6cb   : > { %1290 = vst.msk [vmem:[#allocation3 + $0x20] sm:$0xff] %vm951_vm5, %v1275_v36 }
 0x6d7   : > { %v4525_v37 = vpop.f32.mrb[12].mxu1 }
 0x6d8   : > { %v1433_v40 = vmul.f32 0.5, %v4525_v37  ;;  %v1414_v41 = vpop.f32.mrb[13].mxu1 }
 0x6d9   : > { %v1431_v42 = vmul.f32 0.5, %v1414_v41  ;;  %v4526_v43 = vpop.f32.mrb[14].mxu1 }
 0x6da   : > { %v1417_v44 = vpop.f32.mrb[15].mxu1  ;;  %v1449_v45 = vsel %vm1084_vm6, %v1433_v40, -inf }
 0x6db   : > { %v1432_v47 = vmul.f32 0.5, %v1417_v44  ;;  %1450 = vmax.xlane.f32.xlu1 %v1449_v45  ;;  %v1443_v49 = vsel %vm1084_vm6, %v1431_v42, -inf }
 0x6dc   : > { %1444 = vmax.xlane.f32.xlu0 %v1443_v49 }
 0x6dd   : > { %v1446_v50 = vsel %vm1084_vm6, %v1432_v47, -inf }
 0x6e0   : > { %1447 = vmax.xlane.f32.xlu0 %v1446_v50 }
 0x74e   : > { %v1436_v51 = vpop.xlane.xlu0 %1435 }
 0x74f   : > { %v1452_v52 = vsub.f32 %v1428_v25, %v1436_v51 }
 0x750   : > { %v1439_v53 = vpop.xlane.xlu1 %1438 }
 0x751   : > { %v1458_v56 = vmul.f32 1.442695, %v1452_v52  ;;  %v1453_v57 = vsub.f32 %v1429_v29, %v1439_v53 }
 0x752   : > { %v1442_v58 = vpop.xlane.xlu0 %1441 }
 0x753   : > { %4903 = vpow2.f32 %v1458_v56  ;;  %v1460_v59 = vmul.f32 1.442695, %v1453_v57  ;;  %v1454_v60 = vsub.f32 %v1430_v28, %v1442_v58 }
 0x755   : > { %4905 = vpow2.f32 %v1460_v59  ;;  %v1462_v61 = vmul.f32 1.442695, %v1454_v60 }
 0x757   : > { %4907 = vpow2.f32 %v1462_v61 }
 0x75d   : > { %v4904_v63 = vpop.eup %4903 }
 0x75e   : > { %v5475_v1 = vmul.f32 %v4904_v63, %v5401_v62 }
 0x75f   : > { %v4906_v2 = vpop.eup %4905 }
 0x760   : > { %v1476_v3 = vsel %vm1084_vm6, %v5475_v1, 0.0  ;;  %v5480_v4 = vmul.f32 %v4906_v2, %v5401_v62 }
 0x761   : > { %v4908_v6 = vpop.eup %4907  ;;  %1477 = vadd.xlane.f32.xlu0 %v1476_v3 }
 0x762   : > { %v1479_v7 = vsel %vm1084_vm6, %v5480_v4, 0.0  ;;  %v5485_v9 = vmul.f32 %v4908_v6, %v5401_v62 }
 0x763   : > { %1480 = vadd.xlane.f32.xlu1 %v1479_v7 }
 0x764   : > { %v1482_v10 = vsel %vm1084_vm6, %v5485_v9, 0.0 }
 0x765   : > { %1483 = vadd.xlane.f32.xlu0 %v1482_v10 }
 0x768   : > { %v1451_v15 = vpop.xlane.xlu1 %1450 }
 0x769   : > { %v1445_v11 = vpop.xlane.xlu0 %1444  ;;  %v1457_v18 = vsub.f32 %v1433_v40, %v1451_v15 }
 0x76a   : > { %v1455_v20 = vsub.f32 %v1431_v42, %v1445_v11 }
 0x76b   : > { %v1468_v19 = vmul.f32 1.442695, %v1457_v18 }
 0x76c   : > { %v1464_v21 = vmul.f32 1.442695, %v1455_v20 }
 0x76d   : > { %v1448_v12 = vpop.xlane.xlu0 %1447 }
 0x76e   : > { %v1456_v14 = vsub.f32 %v1432_v47, %v1448_v12 }
 0x770   : > { %v1466_v17 = vmul.f32 1.442695, %v1456_v14 }
 0x772   : > { %4909 = vpow2.f32 %v1466_v17 }
 0x773   : > { %4911 = vpow2.f32 %v1468_v19 }
 0x774   : > { %1512 = vrot.lane.b32.xlu1 %v5354_v5, %s5087_s4  ;;  %4913 = vpow2.f32 %v1464_v21 }
 0x778   : > { %1572 = vrot.lane.b32.xlu1 %v5357_v13, %s5087_s4 }
 0x77b   : > { %1510 = vrot.lane.b32.xlu0 %v5349_v0, %s5087_s4 }
 0x77c   : > { %1669 = vrot.lane.b32.xlu1 %v5349_v0, %s5088_s27  ;;  %v4910_v22 = vpop.eup %4909 }
 0x77d   : > { %v5498_v23 = vmul.f32 %v4910_v22, %v5401_v62  ;;  %v4912_v24 = vpop.eup %4911 }
 0x77e   : > { %v5503_v26 = vmul.f32 %v4912_v24, %v5401_v62  ;;  %v4914_v27 = vpop.eup %4913 }
 0x77f   : > { %1574 = vrot.lane.b32.xlu0 %v5362_v16, %s5087_s4  ;;  %v1488_v25 = vsel %vm1084_vm6, %v5498_v23, 0.0  ;;  %v5508_v29 = vmul.f32 %v4914_v27, %v5401_v62  ;;  %s6161_s4 = sld [smem:[#allocation11_spill]] (!%p4171_p5) }
 0x780   : > { %1671 = vrot.lane.b32.xlu1 %v5354_v5, %s5088_s27  ;;  %v1491_v28 = vsel %vm1084_vm6, %v5503_v26, 0.0 }
 0x781   : > { %v1485_v30 = vsel %vm1084_vm6, %v5508_v29, 0.0 }
 0x79e   : > { %1489 = vadd.xlane.f32.xlu0 %v1488_v25 }
 0x7a4   : > { %1492 = vadd.xlane.f32.xlu1 %v1491_v28 }
 0x7a8   : > { %1486 = vadd.xlane.f32.xlu1 %v1485_v30 }
 0x7b4   : > { %1737 = vrot.lane.b32.xlu0 %v5357_v13, %s5088_s27 }
 0x7b8   : > { %1667 = vrot.lane.b32.xlu0 %v5354_v5, %s5089_s22 }
 0x7b9   : > { %1665 = vrot.lane.b32.xlu1 %v5349_v0, %s5089_s22 }
 0x7bc   : > { %1733 = vrot.lane.b32.xlu0 %v5357_v13, %s5089_s22 }
 0x7bd   : > { %1739 = vrot.lane.b32.xlu1 %v5362_v16, %s5088_s27 }
 0x7c1   : > { %1735 = vrot.lane.b32.xlu1 %v5362_v16, %s5089_s22 }
 0x7ee   : > { %v1478_v31 = vpop.xlane.xlu0 %1477 }
 0x7ef   : > { %4915 = vrcp.f32 %v1478_v31 }
 0x7f0   : > { %v1481_v32 = vpop.xlane.xlu1 %1480 }
 0x7f1   : > { %4917 = vrcp.f32 %v1481_v32 }
 0x7f2   : > { %v1484_v33 = vpop.xlane.xlu0 %1483 }
 0x7f3   : > { %4919 = vrcp.f32 %v1484_v33 }
 0x7f4   : > { %v1513_v34 = vpop.permute.xlu1 %1512 }
 0x7f5   : > { %v1522_v42 = vsel %vm1172_vm8, %v1513_v34, 0 }
 0x7f6   : > { %v1511_v35 = vpop.permute.xlu0 %1510 }
 0x7f7   : > { %4527 = vmatprep.subr.bf16.mxu0 %v1511_v35 }
 0x7f8   : > { %4528 = vmatpush3.bf16.msra.mxu0 %v1511_v35  ;;  %v1573_v36 = vpop.permute.xlu1 %1572 }
 0x7f9   : > { %v4916_v37 = vpop.eup %4915  ;;  %4805 = vmatprep.subr.msk.bf16.mxu0 %vm1172_vm8, %v1513_v34  ;;  %4535 = vmatprep.subr.bf16.mxu1 %v1573_v36 }
 0x7fa   : > { %v1575_v40 = vpop.permute.xlu0 %1574  ;;  %4536 = vmatpush3.bf16.msra.mxu1 %v1573_v36  ;;  %v1500_v44 = vmul.f32 %v4916_v37, %v5475_v1 }
 0x7fb   : > { %v4918_v41 = vpop.eup %4917  ;;  %4806 = vmatprep.subr.msk.bf16.mxu1 %vm1172_vm8, %v1575_v40  ;;  %v1584_v49 = vsel %vm1172_vm8, %v1575_v40, 0 }
 0x7fc   : > { %4530 = vmatpush3.bf16.msra.mxu0 %v1522_v42  ;;  %v1670_v43 = vpop.permute.xlu1 %1669  ;;  %v1501_v45 = vmul.f32 %v4918_v41, %v5480_v4 }
 0x7fd   : > { %v4920_v47 = vpop.eup %4919  ;;  %4807 = vmatprep.subr.msk.bf16.mxu0 %vm951_vm5, %v1670_v43  ;;  %v1680_v53 = vsel %vm951_vm5, %v1670_v43, 0 }
 0x7fe   : > { %v1502_v50 = vmul.f32 %v4920_v47, %v5485_v9  ;;  %4538 = vmatpush3.bf16.msra.mxu1 %v1584_v49  ;;  %v1506_v51 = vpack.c.bf16 %v1501_v45, %v1500_v44 }
 0x800   : > { %4531 = vmatprep.mubr.msk.bf16.mxu0 %vm1084_vm6, %v1506_v51  ;;  %v1507_v52 = vpack.c.bf16 %v1502_v50, %v1502_v50  ;;  %v1672_v56 = vpop.permute.xlu1 %1671 }
 0x801   : > { %v1683_v57 = vsel %vm951_vm5, %v1672_v56, 0 }
 0x802   : > { %4532 = vmatmul.mubr.msk.bf16.vlgmr.msra.gmra.mrb[20].mxu0 %vm1084_vm6, %v1507_v52 }
 0x805   : > { %4544 = vmatpush3.bf16.xpose.msra.mxu0 %v1680_v53 }
 0x806   : > { %4808 = vmatprep.subr.msk.bf16.mxu0 %vm951_vm5, %v1672_v56 }
 0x80d   : > { %4546 = vmatpush3.bf16.xpose.msra.mxu0 %v1683_v57 }
 0x82b   : > { %v1490_v58 = vpop.xlane.xlu0 %1489 }
 0x82f   : > { %v1738_v59 = vpop.permute.xlu0 %1737 }
 0x830   : > { %4809 = vmatprep.subr.msk.bf16.mxu1 %vm951_vm5, %v1738_v59  ;;  %v1748_v12 = vsel %vm951_vm5, %v1738_v59, 0 }
 0x831   : > { %v1493_v60 = vpop.xlane.xlu1 %1492 }
 0x832   : > { %4921 = vrcp.f32 %v1493_v60 }
 0x833   : > { %4923 = vrcp.f32 %v1490_v58  ;;  %v1668_v1 = vpop.permute.xlu0 %1667 }
 0x835   : > { %v1487_v61 = vpop.xlane.xlu1 %1486 }
 0x836   : > { %4925 = vrcp.f32 %v1487_v61 }
 0x837   : > { %v1734_v14 = vpop.permute.xlu0 %1733 }
 0x839   : > { %v1666_v63 = vpop.permute.xlu1 %1665 }
 0x83a   : > { %4547 = vmatprep.mubr.msk.bf16.mxu0 %vm951_vm5, %v1666_v63 }
 0x83b   : > { %4548 = vmatmul.mubr.msk.bf16.vlgmr.msra.gmra.mrb[24].mxu0 %vm951_vm5, %v1668_v1 }
 0x83c   : > { %v4922_v2 = vpop.eup %4921 }
 0x83d   : > { %v4924_v3 = vpop.eup %4923  ;;  %v1505_v6 = vmul.f32 %v4922_v2, %v5503_v26  ;;  %v1740_v15 = vpop.permute.xlu1 %1739 }
 0x83e   : > { %v1504_v9 = vmul.f32 %v4924_v3, %v5498_v23  ;;  %v1751_v17 = vsel %vm951_vm5, %v1740_v15, 0 }
 0x83f   : > { %v1509_v11 = vpack.c.bf16 %v1505_v6, %v1505_v6 }
 0x840   : > { %v4926_v4 = vpop.eup %4925 }
 0x841   : > { %v1503_v7 = vmul.f32 %v4926_v4, %v5508_v29  ;;  %v1736_v18 = vpop.permute.xlu1 %1735 }
 0x843   : > { %v1508_v10 = vpack.c.bf16 %v1504_v9, %v1503_v7 }
 0x845   : > { %4539 = vmatprep.mubr.msk.bf16.mxu1 %vm1084_vm6, %v1508_v10 }
 0x846   : > { %4540 = vmatmul.mubr.msk.bf16.vlgmr.msra.gmra.mrb[16].mxu1 %vm1084_vm6, %v1509_v11 }
 0x847   : > { %4552 = vmatpush3.bf16.xpose.msra.mxu1 %v1748_v12  ;;  %4555 = vmatprep.mubr.msk.bf16.mxu1 %vm951_vm5, %v1734_v14 }
 0x848   : > { %4810 = vmatprep.subr.msk.bf16.mxu1 %vm951_vm5, %v1740_v15 }
 0x84f   : > { %4554 = vmatpush3.bf16.xpose.msra.mxu1 %v1751_v17 }
 0x856   : > { %4556 = vmatmul.mubr.msk.bf16.vlgmr.msra.gmra.mrb[20].mxu1 %vm951_vm5, %v1736_v18 }
 0x8d5   : > { %v5546_v19 = vpop.f32.mrb[20].mxu0 }
 0x8d6   : > { %v5548_v20 = vpop.f32.mrb[21].mxu0 }
 0x8d7   : > { %v4534_v21 = vpop.f32.mrb[22].mxu0 }
 0x8d8   : > { %v5550_v22 = vpop.f32.mrb[23].mxu0 }
 0x90e   : > { %v4549_v23 = vpop.f32.mrb[24].mxu0 }
 0x90f   : > { %v1719_v24 = vpop.f32.mrb[25].mxu0  ;;  %v1803_v28 = vmul.f32 0.5, %v4549_v23 }
 0x910   : > { %v1801_v25 = vmul.f32 0.5, %v1719_v24  ;;  %v4550_v26 = vpop.f32.mrb[26].mxu0 }
 0x911   : > { %v1722_v27 = vpop.f32.mrb[27].mxu0  ;;  %v1813_v32 = vsel %vm1084_vm6, %v1803_v28, -inf }
 0x912   : > { %v1802_v29 = vmul.f32 0.5, %v1722_v27  ;;  %v1807_v30 = vsel %vm1084_vm6, %v1801_v25, -inf }
 0x913   : > { %1808 = vmax.xlane.f32.xlu0 %v1807_v30 }
 0x914   : > { %v1810_v31 = vsel %vm1084_vm6, %v1802_v29, -inf }
 0x915   : > { %1811 = vmax.xlane.f32.xlu1 %v1810_v31 }
 0x917   : > { %1814 = vmax.xlane.f32.xlu0 %v1813_v32 }
 0x919   : > { %v5555_v33 = vpop.f32.mrb[16].mxu1 }
 0x91a   : > { %v5557_v34 = vpop.f32.mrb[17].mxu1 }
 0x91b   : > { %v4542_v35 = vpop.f32.mrb[18].mxu1 }
 0x91c   : > { %v5559_v36 = vpop.f32.mrb[19].mxu1 }
 0x929   : > { %v4557_v37 = vpop.f32.mrb[20].mxu1 }
 0x92a   : > { %v1806_v40 = vmul.f32 0.5, %v4557_v37  ;;  %v1787_v41 = vpop.f32.mrb[21].mxu1 }
 0x92b   : > { %v1804_v42 = vmul.f32 0.5, %v1787_v41  ;;  %v4558_v43 = vpop.f32.mrb[22].mxu1 }
 0x92c   : > { %v1790_v44 = vpop.f32.mrb[23].mxu1  ;;  %v1822_v45 = vsel %vm1084_vm6, %v1806_v40, -inf }
 0x92d   : > { %v1805_v47 = vmul.f32 0.5, %v1790_v44  ;;  %1823 = vmax.xlane.f32.xlu1 %v1822_v45  ;;  %v1816_v49 = vsel %vm1084_vm6, %v1804_v42, -inf }
 0x92e   : > { %1817 = vmax.xlane.f32.xlu0 %v1816_v49 }
 0x92f   : > { %v1819_v50 = vsel %vm1084_vm6, %v1805_v47, -inf }
 0x932   : > { %1820 = vmax.xlane.f32.xlu0 %v1819_v50 }
 0x9a0   : > { %v1809_v51 = vpop.xlane.xlu0 %1808 }
 0x9a1   : > { %v1825_v52 = vsub.f32 %v1801_v25, %v1809_v51 }
 0x9a2   : > { %v1812_v53 = vpop.xlane.xlu1 %1811 }
 0x9a3   : > { %v1831_v56 = vmul.f32 1.442695, %v1825_v52  ;;  %v1826_v57 = vsub.f32 %v1802_v29, %v1812_v53 }
 0x9a4   : > { %v1815_v58 = vpop.xlane.xlu0 %1814 }
 0x9a5   : > { %4927 = vpow2.f32 %v1831_v56  ;;  %v1833_v59 = vmul.f32 1.442695, %v1826_v57  ;;  %v1827_v60 = vsub.f32 %v1803_v28, %v1815_v58 }
 0x9a7   : > { %4929 = vpow2.f32 %v1833_v59  ;;  %v1835_v61 = vmul.f32 1.442695, %v1827_v60 }
 0x9a9   : > { %4931 = vpow2.f32 %v1835_v61 }
 0x9af   : > { %v4928_v63 = vpop.eup %4927 }
 0x9b0   : > { %v5565_v1 = vmul.f32 %v4928_v63, %v5401_v62 }
 0x9b1   : > { %v4930_v2 = vpop.eup %4929 }
 0x9b2   : > { %v1849_v3 = vsel %vm1084_vm6, %v5565_v1, 0.0  ;;  %v5570_v4 = vmul.f32 %v4930_v2, %v5401_v62 }
 0x9b3   : > { %v4932_v6 = vpop.eup %4931  ;;  %1850 = vadd.xlane.f32.xlu0 %v1849_v3 }
 0x9b4   : > { %v1852_v7 = vsel %vm1084_vm6, %v5570_v4, 0.0  ;;  %v5575_v9 = vmul.f32 %v4932_v6, %v5401_v62 }
 0x9b5   : > { %1853 = vadd.xlane.f32.xlu1 %v1852_v7 }
 0x9b6   : > { %v1855_v10 = vsel %vm1084_vm6, %v5575_v9, 0.0 }
 0x9b7   : > { %1856 = vadd.xlane.f32.xlu0 %v1855_v10 }
 0x9ba   : > { %v1824_v15 = vpop.xlane.xlu1 %1823 }
 0x9bb   : > { %v1818_v11 = vpop.xlane.xlu0 %1817  ;;  %v1830_v18 = vsub.f32 %v1806_v40, %v1824_v15 }
 0x9bc   : > { %v1828_v23 = vsub.f32 %v1804_v42, %v1818_v11 }
 0x9bd   : > { %v1841_v21 = vmul.f32 1.442695, %v1830_v18 }
 0x9be   : > { %v1837_v24 = vmul.f32 1.442695, %v1828_v23 }
 0x9bf   : > { %v1821_v12 = vpop.xlane.xlu0 %1820 }
 0x9c0   : > { %v1829_v14 = vsub.f32 %v1805_v47, %v1821_v12 }
 0x9c2   : > { %v1839_v17 = vmul.f32 1.442695, %v1829_v14 }
 0x9c4   : > { %4933 = vpow2.f32 %v1839_v17 }
 0x9c5   : > { %4935 = vpow2.f32 %v1841_v21 }
 0x9c6   : > { %1885 = vrot.lane.b32.xlu1 %v5354_v5, %s5090_s25  ;;  %4937 = vpow2.f32 %v1837_v24 }
 0x9ca   : > { %1945 = vrot.lane.b32.xlu1 %v5357_v13, %s5090_s25 }
 0x9cd   : > { %1883 = vrot.lane.b32.xlu0 %v5349_v0, %s5090_s25 }
 0x9ce   : > { %2042 = vrot.lane.b32.xlu1 %v5349_v0, %s5091_s28  ;;  %v4934_v25 = vpop.eup %4933 }
 0x9cf   : > { %v5588_v26 = vmul.f32 %v4934_v25, %v5401_v62  ;;  %v4936_v27 = vpop.eup %4935 }
 0x9d0   : > { %v5593_v29 = vmul.f32 %v4936_v27, %v5401_v62  ;;  %v4938_v30 = vpop.eup %4937 }
 0x9d1   : > { %1947 = vrot.lane.b32.xlu0 %v5362_v16, %s5090_s25  ;;  %v1861_v28 = vsel %vm1084_vm6, %v5588_v26, 0.0  ;;  %v5598_v32 = vmul.f32 %v4938_v30, %v5401_v62 }
 0x9d2   : > { %2044 = vrot.lane.b32.xlu1 %v5354_v5, %s5091_s28  ;;  %v1864_v31 = vsel %vm1084_vm6, %v5593_v29, 0.0 }
 0x9d3   : > { %v1858_v35 = vsel %vm1084_vm6, %v5598_v32, 0.0 }
 0x9f0   : > { %1862 = vadd.xlane.f32.xlu0 %v1861_v28 }
 0x9f6   : > { %1865 = vadd.xlane.f32.xlu1 %v1864_v31 }
 0x9fa   : > { %1859 = vadd.xlane.f32.xlu1 %v1858_v35 }
 0xa06   : > { %2110 = vrot.lane.b32.xlu0 %v5357_v13, %s5091_s28 }
 0xa0a   : > { %2040 = vrot.lane.b32.xlu0 %v5354_v5, %s5092_s29 }
 0xa0b   : > { %2038 = vrot.lane.b32.xlu1 %v5349_v0, %s5092_s29 }
 0xa0e   : > { %2106 = vrot.lane.b32.xlu0 %v5357_v13, %s5092_s29 }
 0xa0f   : > { %2112 = vrot.lane.b32.xlu1 %v5362_v16, %s5091_s28 }
 0xa13   : > { %2108 = vrot.lane.b32.xlu1 %v5362_v16, %s5092_s29 }
 0xa40   : > { %v1851_v37 = vpop.xlane.xlu0 %1850 }
 0xa41   : > { %4939 = vrcp.f32 %v1851_v37 }
 0xa42   : > { %v1854_v40 = vpop.xlane.xlu1 %1853 }
 0xa43   : > { %4941 = vrcp.f32 %v1854_v40 }
 0xa44   : > { %v1857_v41 = vpop.xlane.xlu0 %1856 }
 0xa45   : > { %4943 = vrcp.f32 %v1857_v41 }
 0xa46   : > { %v1886_v42 = vpop.permute.xlu1 %1885 }
 0xa47   : > { %v1895_v50 = vsel %vm1172_vm8, %v1886_v42, 0 }
 0xa48   : > { %v1884_v43 = vpop.permute.xlu0 %1883 }
 0xa49   : > { %4559 = vmatprep.subr.bf16.mxu0 %v1884_v43 }
 0xa4a   : > { %4560 = vmatpush3.bf16.msra.mxu0 %v1884_v43  ;;  %v1946_v44 = vpop.permute.xlu1 %1945 }
 0xa4b   : > { %v4940_v45 = vpop.eup %4939  ;;  %4811 = vmatprep.subr.msk.bf16.mxu0 %vm1172_vm8, %v1886_v42  ;;  %4567 = vmatprep.subr.bf16.mxu1 %v1946_v44 }
 0xa4c   : > { %v1948_v47 = vpop.permute.xlu0 %1947  ;;  %4568 = vmatpush3.bf16.msra.mxu1 %v1946_v44  ;;  %v1873_v52 = vmul.f32 %v4940_v45, %v5565_v1 }
 0xa4d   : > { %v4942_v49 = vpop.eup %4941  ;;  %4812 = vmatprep.subr.msk.bf16.mxu1 %vm1172_vm8, %v1948_v47  ;;  %v1957_v57 = vsel %vm1172_vm8, %v1948_v47, 0 }
 0xa4e   : > { %4562 = vmatpush3.bf16.msra.mxu0 %v1895_v50  ;;  %v2043_v51 = vpop.permute.xlu1 %2042  ;;  %v1874_v53 = vmul.f32 %v4942_v49, %v5570_v4 }
 0xa4f   : > { %v4944_v56 = vpop.eup %4943  ;;  %4813 = vmatprep.subr.msk.bf16.mxu0 %vm951_vm5, %v2043_v51  ;;  %v2053_v61 = vsel %vm951_vm5, %v2043_v51, 0 }
 0xa50   : > { %v1875_v58 = vmul.f32 %v4944_v56, %v5575_v9  ;;  %4570 = vmatpush3.bf16.msra.mxu1 %v1957_v57  ;;  %v1879_v59 = vpack.c.bf16 %v1874_v53, %v1873_v52 }
 0xa52   : > { %4563 = vmatprep.mubr.msk.bf16.mxu0 %vm1084_vm6, %v1879_v59  ;;  %v1880_v60 = vpack.c.bf16 %v1875_v58, %v1875_v58  ;;  %v2045_v63 = vpop.permute.xlu1 %2044 }
 0xa53   : > { %v2056_v1 = vsel %vm951_vm5, %v2045_v63, 0 }
 0xa54   : > { %4564 = vmatmul.mubr.msk.bf16.vlgmr.msra.gmra.mrb[28].mxu0 %vm1084_vm6, %v1880_v60 }
 0xa57   : > { %4576 = vmatpush3.bf16.xpose.msra.mxu0 %v2053_v61 }
 0xa58   : > { %4814 = vmatprep.subr.msk.bf16.mxu0 %vm951_vm5, %v2045_v63 }
 0xa5f   : > { %4578 = vmatpush3.bf16.xpose.msra.mxu0 %v2056_v1 }
 0xa7d   : > { %v1863_v2 = vpop.xlane.xlu0 %1862 }
 0xa81   : > { %v2111_v3 = vpop.permute.xlu0 %2110 }
 0xa82   : > { %4815 = vmatprep.subr.msk.bf16.mxu1 %vm951_vm5, %v2111_v3  ;;  %v2121_v23 = vsel %vm951_vm5, %v2111_v3, 0 }
 0xa83   : > { %v1866_v4 = vpop.xlane.xlu1 %1865 }
 0xa84   : > { %4945 = vrcp.f32 %v1866_v4 }
 0xa85   : > { %4947 = vrcp.f32 %v1863_v2  ;;  %v2041_v9 = vpop.permute.xlu0 %2040 }
 0xa87   : > { %v1860_v6 = vpop.xlane.xlu1 %1859 }
 0xa88   : > { %4949 = vrcp.f32 %v1860_v6 }
 0xa89   : > { %v2107_v24 = vpop.permute.xlu0 %2106 }
 0xa8b   : > { %v2039_v7 = vpop.permute.xlu1 %2038 }
 0xa8c   : > { %4579 = vmatprep.mubr.msk.bf16.mxu0 %vm951_vm5, %v2039_v7 }
 0xa8d   : > { %4580 = vmatmul.mubr.msk.bf16.vlgmr.msra.gmra.mrb[32].mxu0 %vm951_vm5, %v2041_v9 }
 0xa8e   : > { %v4946_v10 = vpop.eup %4945 }
 0xa8f   : > { %v4948_v11 = vpop.eup %4947  ;;  %v1878_v14 = vmul.f32 %v4946_v10, %v5593_v29  ;;  %v2113_v25 = vpop.permute.xlu1 %2112 }
 0xa90   : > { %v1877_v17 = vmul.f32 %v4948_v11, %v5588_v26  ;;  %v2124_v27 = vsel %vm951_vm5, %v2113_v25, 0 }
 0xa91   : > { %v1882_v21 = vpack.c.bf16 %v1878_v14, %v1878_v14 }
 0xa92   : > { %v4950_v12 = vpop.eup %4949 }
 0xa93   : > { %v1876_v15 = vmul.f32 %v4950_v12, %v5598_v32  ;;  %v2109_v28 = vpop.permute.xlu1 %2108 }
 0xa95   : > { %v1881_v18 = vpack.c.bf16 %v1877_v17, %v1876_v15 }
 0xa97   : > { %4571 = vmatprep.mubr.msk.bf16.mxu1 %vm1084_vm6, %v1881_v18 }
 0xa98   : > { %4572 = vmatmul.mubr.msk.bf16.vlgmr.msra.gmra.mrb[24].mxu1 %vm1084_vm6, %v1882_v21 }
 0xa99   : > { %4584 = vmatpush3.bf16.xpose.msra.mxu1 %v2121_v23  ;;  %4587 = vmatprep.mubr.msk.bf16.mxu1 %vm951_vm5, %v2107_v24 }
 0xa9a   : > { %4816 = vmatprep.subr.msk.bf16.mxu1 %vm951_vm5, %v2113_v25 }
 0xaa1   : > { %4586 = vmatpush3.bf16.xpose.msra.mxu1 %v2124_v27 }
 0xaa8   : > { %4588 = vmatmul.mubr.msk.bf16.vlgmr.msra.gmra.mrb[28].mxu1 %vm951_vm5, %v2109_v28 }
 0xb27   : > { %v5636_v26 = vpop.f32.mrb[28].mxu0 }
 0xb28   : > { %v5638_v29 = vpop.f32.mrb[29].mxu0 }
 0xb29   : > { %v4566_v30 = vpop.f32.mrb[30].mxu0 }
 0xb2a   : > { %v5640_v31 = vpop.f32.mrb[31].mxu0 }
 0xb60   : > { %v4581_v32 = vpop.f32.mrb[32].mxu0 }
 0xb61   : > { %v2092_v35 = vpop.f32.mrb[33].mxu0  ;;  %v2176_v42 = vmul.f32 0.5, %v4581_v32 }
 0xb62   : > { %v2174_v37 = vmul.f32 0.5, %v2092_v35  ;;  %v4582_v40 = vpop.f32.mrb[34].mxu0 }
 0xb63   : > { %v2095_v41 = vpop.f32.mrb[35].mxu0  ;;  %v2186_v47 = vsel %vm1084_vm6, %v2176_v42, -inf }
 0xb64   : > { %v2175_v43 = vmul.f32 0.5, %v2095_v41  ;;  %v2180_v44 = vsel %vm1084_vm6, %v2174_v37, -inf }
 0xb65   : > { %2181 = vmax.xlane.f32.xlu0 %v2180_v44 }
 0xb66   : > { %v2183_v45 = vsel %vm1084_vm6, %v2175_v43, -inf }
 0xb67   : > { %2184 = vmax.xlane.f32.xlu1 %v2183_v45 }
 0xb69   : > { %2187 = vmax.xlane.f32.xlu0 %v2186_v47 }
 0xb6b   : > { %v5645_v49 = vpop.f32.mrb[24].mxu1 }
 0xb6c   : > { %v5647_v50 = vpop.f32.mrb[25].mxu1 }
 0xb6d   : > { %v4574_v51 = vpop.f32.mrb[26].mxu1 }
 0xb6e   : > { %v5649_v52 = vpop.f32.mrb[27].mxu1 }
 0xb7b   : > { %v4589_v53 = vpop.f32.mrb[28].mxu1 }
 0xb7c   : > { %v2179_v56 = vmul.f32 0.5, %v4589_v53  ;;  %v2160_v57 = vpop.f32.mrb[29].mxu1 }
 0xb7d   : > { %v2177_v58 = vmul.f32 0.5, %v2160_v57  ;;  %v4590_v59 = vpop.f32.mrb[30].mxu1 }
 0xb7e   : > { %v2163_v60 = vpop.f32.mrb[31].mxu1  ;;  %v2195_v61 = vsel %vm1084_vm6, %v2179_v56, -inf }
 0xb7f   : > { %v2178_v63 = vmul.f32 0.5, %v2163_v60  ;;  %2196 = vmax.xlane.f32.xlu1 %v2195_v61  ;;  %v2189_v1 = vsel %vm1084_vm6, %v2177_v58, -inf }
 0xb80   : > { %2190 = vmax.xlane.f32.xlu0 %v2189_v1 }
 0xb81   : > { %v2192_v2 = vsel %vm1084_vm6, %v2178_v63, -inf }
 0xb84   : > { %2193 = vmax.xlane.f32.xlu0 %v2192_v2 }
 0xbf2   : > { %v2182_v3 = vpop.xlane.xlu0 %2181 }
 0xbf3   : > { %v2198_v4 = vsub.f32 %v2174_v37, %v2182_v3 }
 0xbf4   : > { %v2185_v6 = vpop.xlane.xlu1 %2184 }
 0xbf5   : > { %v2204_v7 = vmul.f32 1.442695, %v2198_v4  ;;  %v2199_v9 = vsub.f32 %v2175_v43, %v2185_v6 }
 0xbf6   : > { %v2188_v10 = vpop.xlane.xlu0 %2187 }
 0xbf7   : > { %4951 = vpow2.f32 %v2204_v7  ;;  %v2206_v11 = vmul.f32 1.442695, %v2199_v9  ;;  %v2200_v12 = vsub.f32 %v2176_v42, %v2188_v10 }
 0xbf9   : > { %4953 = vpow2.f32 %v2206_v11  ;;  %v2208_v14 = vmul.f32 1.442695, %v2200_v12 }
 0xbfb   : > { %4955 = vpow2.f32 %v2208_v14 }
 0xc01   : > { %v4952_v15 = vpop.eup %4951 }
 0xc02   : > { %v2216_v17 = vmul.f32 %v4952_v15, %v5401_v62 }
 0xc03   : > { %v4954_v18 = vpop.eup %4953 }
 0xc04   : > { %v2222_v21 = vsel %vm1084_vm6, %v2216_v17, 0.0  ;;  %v2217_v23 = vmul.f32 %v4954_v18, %v5401_v62 }
 0xc05   : > { %v4956_v24 = vpop.eup %4955  ;;  %2223 = vadd.xlane.f32.xlu0 %v2222_v21 }
 0xc06   : > { %v2225_v25 = vsel %vm1084_vm6, %v2217_v23, 0.0  ;;  %v5659_v27 = vmul.f32 %v4956_v24, %v5401_v62 }
 0xc07   : > { %2226 = vadd.xlane.f32.xlu1 %v2225_v25 }
 0xc08   : > { %v2228_v28 = vsel %vm1084_vm6, %v5659_v27, 0.0 }
 0xc09   : > { %2229 = vadd.xlane.f32.xlu0 %v2228_v28 }
 0xc0c   : > { %v2197_v30 = vpop.xlane.xlu1 %2196 }
 0xc0d   : > { %v2203_v32 = vsub.f32 %v2179_v56, %v2197_v30  ;;  %v2191_v35 = vpop.xlane.xlu0 %2190 }
 0xc0e   : > { %v2201_v37 = vsub.f32 %v2177_v58, %v2191_v35 }
 0xc0f   : > { %v2214_v40 = vmul.f32 1.442695, %v2203_v32 }
 0xc10   : > { %v2210_v41 = vmul.f32 1.442695, %v2201_v37 }
 0xc11   : > { %4957 = vpow2.f32 %v2214_v40  ;;  %v2194_v42 = vpop.xlane.xlu0 %2193 }
 0xc12   : > { %4959 = vpow2.f32 %v2210_v41  ;;  %v2202_v43 = vsub.f32 %v2178_v63, %v2194_v42 }
 0xc14   : > { %v2212_v44 = vmul.f32 1.442695, %v2202_v43 }
 0xc16   : > { %4961 = vpow2.f32 %v2212_v44 }
 0xc1b   : > { %v4958_v45 = vpop.eup %4957 }
 0xc1c   : > { %v4960_v47 = vpop.eup %4959  ;;  %v2221_v51 = vmul.f32 %v4958_v45, %v5401_v62 }
 0xc1d   : > { %v2219_v57 = vmul.f32 %v4960_v47, %v5401_v62 }
 0xc1e   : > { %v2237_v53 = vsel %vm1084_vm6, %v2221_v51, 0.0 }
 0xc1f   : > { %2238 = vadd.xlane.f32.xlu1 %v2237_v53  ;;  %v2231_v59 = vsel %vm1084_vm6, %v2219_v57, 0.0 }
 0xc20   : > { %v4962_v56 = vpop.eup %4961 }
 0xc21   : > { %v2220_v58 = vmul.f32 %v4962_v56, %v5401_v62 }
 0xc23   : > { %2232 = vadd.xlane.f32.xlu1 %v2231_v59  ;;  %v2234_v60 = vsel %vm1084_vm6, %v2220_v58, 0.0 }
 0xc24   : > { %2235 = vadd.xlane.f32.xlu0 %v2234_v60 }
 0xc34   : > { %2258 = vrot.lane.b32.xlu1 %v5354_v5, %s5093_s21 }
 0xc38   : > { %2318 = vrot.lane.b32.xlu1 %v5357_v13, %s5093_s21 }
 0xc3a   : > { %2256 = vrot.lane.b32.xlu0 %v5349_v0, %s5093_s21 }
 0xc3c   : > { %2320 = vrot.lane.b32.xlu1 %v5362_v16, %s5093_s21 }
 0xc3e   : > { %1640 = vrot.lane.b32.xlu0 %v5548_v20, %s5094_s17 }
 0xc40   : > { %1642 = vrot.lane.b32.xlu1 %v5550_v22, %s5094_s17 }
 0xc42   : > { %2013 = vrot.lane.b32.xlu0 %v5638_v29, %s5095_s18 }
 0xc44   : > { %2015 = vrot.lane.b32.xlu1 %v5640_v31, %s5095_s18 }
 0xc92   : > { %v2224_v5 = vpop.xlane.xlu0 %2223 }
 0xc93   : > { %4963 = vrcp.f32 %v2224_v5 }
 0xc94   : > { %v2227_v13 = vpop.xlane.xlu1 %2226 }
 0xc95   : > { %4965 = vrcp.f32 %v2227_v13 }
 0xc96   : > { %v2230_v20 = vpop.xlane.xlu0 %2229 }
 0xc97   : > { %4967 = vrcp.f32 %v2230_v20 }
 0xc9d   : > { %v4964_v0 = vpop.eup %4963 }
 0xc9e   : > { %v2246_v62 = vmul.f32 %v4964_v0, %v2216_v17 }
 0xc9f   : > { %v4966_v16 = vpop.eup %4965 }
 0xca0   : > { %v2247_v61 = vmul.f32 %v4966_v16, %v2217_v23 }
 0xca1   : > { %v4968_v2 = vpop.eup %4967 }
 0xca2   : > { %v2252_v63 = vpack.c.bf16 %v2247_v61, %v2246_v62  ;;  %v2248_v4 = vmul.f32 %v4968_v2, %v5659_v27 }
 0xca4   : > { %4595 = vmatprep.mubr.msk.bf16.mxu0 %vm1084_vm6, %v2252_v63  ;;  %v2253_v17 = vpack.c.bf16 %v2248_v4, %v2248_v4 }
 0xcac   : > { %v2239_v22 = vpop.xlane.xlu1 %2238 }
 0xcad   : > { %4969 = vrcp.f32 %v2239_v22 }
 0xcb0   : > { %v2233_v1 = vpop.xlane.xlu1 %2232 }
 0xcb1   : > { %4971 = vrcp.f32 %v2233_v1  ;;  %v2236_v29 = vpop.xlane.xlu0 %2235 }
 0xcb2   : > { %4973 = vrcp.f32 %v2236_v29 }
 0xcb4   : > { %v2259_v31 = vpop.permute.xlu1 %2258 }
 0xcb5   : > { %v2257_v3 = vpop.permute.xlu0 %2256  ;;  %v2268_v10 = vsel %vm1172_vm8, %v2259_v31, 0 }
 0xcb6   : > { %4591 = vmatprep.subr.bf16.mxu0 %v2257_v3 }
 0xcb7   : > { %4592 = vmatpush3.bf16.msra.mxu0 %v2257_v3  ;;  %v4970_v7 = vpop.eup %4969 }
 0xcb8   : > { %4817 = vmatprep.subr.msk.bf16.mxu0 %vm1172_vm8, %v2259_v31  ;;  %v2319_v6 = vpop.permute.xlu1 %2318  ;;  %v2251_v14 = vmul.f32 %v4970_v7, %v2221_v51 }
 0xcb9   : > { %v1641_v9 = vpop.permute.xlu0 %1640  ;;  %4599 = vmatprep.subr.bf16.mxu1 %v2319_v6 }
 0xcba   : > { %1659 = vst.msk [vmem:[#allocation3] sm:$0xff] %vm1658_vm9, %v1641_v9  ;;  %4600 = vmatpush3.bf16.msra.mxu1 %v2319_v6  ;;  %v2255_v28 = vpack.c.bf16 %v2251_v14, %v2251_v14 }
 0xcbb   : > { %v4972_v11 = vpop.eup %4971  ;;  %4594 = vmatpush3.bf16.msra.mxu0 %v2268_v10 }
 0xcbc   : > { %v4974_v12 = vpop.eup %4973  ;;  %v2321_v15 = vpop.permute.xlu1 %2320  ;;  %v2249_v18 = vmul.f32 %v4972_v11, %v2219_v57  ;;  %4607 = vmatprep.subr.bf16.mxu0 %v5081_v8 }
 0xcbd   : > { %v2330_v21 = vsel %vm1172_vm8, %v2321_v15, 0  ;;  %v2014_v23 = vpop.permute.xlu0 %2013  ;;  %4818 = vmatprep.subr.msk.bf16.mxu1 %vm1172_vm8, %v2321_v15  ;;  %v2250_v24 = vmul.f32 %v4974_v12, %v2220_v58 }
 0xcbe   : > { %2032 = vst.msk [vmem:[#allocation3] sm:$0xff] %vm2031_vm10, %v2014_v23  ;;  %4596 = vmatmul.mubr.msk.bf16.vlgmr.msra.gmra.mrb[36].mxu0 %vm1084_vm6, %v2253_v17  ;;  %4602 = vmatpush3.bf16.msra.mxu1 %v2330_v21 }
 0xcbf   : > { %v2254_v25 = vpack.c.bf16 %v2250_v24, %v2249_v18  ;;  %4611 = vmatprep.mubr.msk.bf16.mxu0 %vm5082_vm4, %v5081_v8  ;;  %4623 = vmatprep.subr.bf16.mxu1 %v5081_v8 }
 0xcc0   : > { %v1643_v27 = vpop.permute.xlu1 %1642 }
 0xcc1   : > { %1660 = vst.msk [vmem:[#allocation3 + $0x8] sm:$0xff] %vm1658_vm9, %v1643_v27  ;;  %4603 = vmatprep.mubr.msk.bf16.mxu1 %vm1084_vm6, %v2254_v25 }
 0xcc2   : > { %4604 = vmatmul.mubr.msk.bf16.vlgmr.msra.gmra.mrb[32].mxu1 %vm1084_vm6, %v2255_v28 }
 0xcc3   : > { %4627 = vmatprep.mubr.msk.bf16.mxu1 %vm5082_vm4, %v5081_v8 }
 0xcc4   : > { %v2016_v30 = vpop.permute.xlu1 %2015 }
 0xcc5   : > { %2033 = vst.msk [vmem:[#allocation3 + $0x8] sm:$0xff] %vm2031_vm10, %v2016_v30 }
 0xd91   : > { %v4597_v32 = vpop.f32.mrb[36].mxu0 }
 0xd92   : > { %v2304_v35 = vpop.f32.mrb[37].mxu0 }
 0xd93   : > { %2386 = vrot.lane.b32.xlu0 %v2304_v35, %s5096_s30  ;;  %v4598_v37 = vpop.f32.mrb[38].mxu0 }
 0xd94   : > { %v2307_v40 = vpop.f32.mrb[39].mxu0 }
 0xd95   : > { %2388 = vrot.lane.b32.xlu1 %v2307_v40, %s5096_s30  ;;  %v4605_v41 = vpop.f32.mrb[32].mxu1 }
 0xd96   : > { %v2366_v42 = vpop.f32.mrb[33].mxu1 }
 0xd97   : > { %1644 = vrot.lane.b32.xlu0 %v5546_v19, %s5094_s17  ;;  %v4606_v43 = vpop.f32.mrb[34].mxu1 }
 0xd98   : > { %v2369_v44 = vpop.f32.mrb[35].mxu1 }
 0xd99   : > { %1646 = vrot.lane.b32.xlu1 %v5557_v34, %s5094_s17 }
 0xd9b   : > { %2017 = vrot.lane.b32.xlu0 %v5636_v26, %s5095_s18 }
 0xd9d   : > { %2019 = vrot.lane.b32.xlu1 %v5647_v50, %s5095_s18 }
 0xd9f   : > { %2390 = vrot.lane.b32.xlu0 %v4597_v32, %s5096_s30 }
 0xda1   : > { %1650 = vrot.lane.b32.xlu1 %v5555_v33, %s5094_s17 }
 0xda3   : > { %1648 = vrot.lane.b32.xlu0 %v5559_v36, %s5094_s17 }
 0xda5   : > { %2392 = vrot.lane.b32.xlu1 %v2366_v42, %s5096_s30 }
 0xda7   : > { %2021 = vrot.lane.b32.xlu0 %v5649_v52, %s5095_s18 }
 0xda9   : > { %2023 = vrot.lane.b32.xlu1 %v5645_v49, %s5095_s18 }
 0xdab   : > { %2394 = vrot.lane.b32.xlu0 %v2369_v44, %s5096_s30  ;;  %v4863_v44 = vld [vmem:[%s5219_s3] sm:$0xff]  }
 0xdac   : > { %4608 = vmatpush3.bf16.msra.mxu0 %v4863_v44 }
 0xdad   : > { %2396 = vrot.lane.b32.xlu1 %v4605_v41, %s5096_s30  ;;  %4609 = vmatprep.subr.bf16.mxu0 %v5081_v8 }
 0xe05   : > { %v2387_v19 = vpop.permute.xlu0 %2386 }
 0xe06   : > { %2405 = vst.msk [vmem:[#allocation3] sm:$0xff] %vm2404_vm11, %v2387_v19  ;;  %v4864_v19 = vld [vmem:[%s5219_s3 + $0x8] sm:$0xff]  }
 0xe07   : > { %v2389_v34 = vpop.permute.xlu1 %2388  ;;  %4610 = vmatpush3.bf16.msra.mxu0 %v4864_v19 }
 0xe08   : > { %2406 = vst.msk [vmem:[#allocation3 + $0x8] sm:$0xff] %vm2404_vm11, %v2389_v34 }
 0xe09   : > { %v1645_v33 = vpop.permute.xlu0 %1644 }
 0xe0a   : > { %1661 = vst.msk [vmem:[#allocation3 + $0x10] sm:$0xff] %vm1658_vm9, %v1645_v33 }
 0xe0b   : > { %v1647_v36 = vpop.permute.xlu1 %1646 }
 0xe0c   : > { %1662 = vst.msk [vmem:[#allocation3 + $0x18] sm:$0xff] %vm1658_vm9, %v1647_v36 }
 0xe0d   : > { %v2018_v26 = vpop.permute.xlu0 %2017  ;;  %v2411_v50 = vld [vmem:[#allocation3] sm:$0xff] }
 0xe0e   : > { %2034 = vst.msk [vmem:[#allocation3 + $0x10] sm:$0xff] %vm2031_vm10, %v2018_v26  ;;  %v5722_v49 = vadd.f32 %v2411_v50, %v5315_v38 }
 0xe0f   : > { %v2020_v52 = vpop.permute.xlu1 %2019  ;;  %v2412_v45 = vld [vmem:[#allocation3 + $0x8] sm:$0xff] }
 0xe10   : > { %2035 = vst.msk [vmem:[#allocation3 + $0x18] sm:$0xff] %vm2031_vm10, %v2020_v52  ;;  %v2423_v47 = vsel %vm740_vm3, %v5722_v49, 0.0  ;;  %v5728_v51 = vadd.f32 %v2412_v45, %v5317_v39 }
 0xe11   : > { %v2391_v53 = vpop.permute.xlu0 %2390  ;;  %2424 = vadd.xlane.f32.xlu0 %v2423_v47 }
 0xe12   : > { %2407 = vst.msk [vmem:[#allocation3 + $0x10] sm:$0xff] %vm2404_vm11, %v2391_v53  ;;  %v2426_v57 = vsel %vm740_vm3, %v5728_v51, 0.0 }
 0xe13   : > { %2427 = vadd.xlane.f32.xlu1 %v2426_v57  ;;  %v1651_v38 = vpop.permute.xlu1 %1650 }
 0xe14   : > { %1664 = vst.msk [vmem:[#allocation3 + $0x28] sm:$0xff] %vm1658_vm9, %v1651_v38 }
 0xe15   : > { %v1649_v56 = vpop.permute.xlu0 %1648 }
 0xe16   : > { %1663 = vst.msk [vmem:[#allocation3 + $0x20] sm:$0xff] %vm1658_vm9, %v1649_v56 }
 0xe17   : > { %v2393_v58 = vpop.permute.xlu1 %2392 }
 0xe18   : > { %2408 = vst.msk [vmem:[#allocation3 + $0x18] sm:$0xff] %vm2404_vm11, %v2393_v58  ;;  %v4999_v58 = vld [vmem:[%s5198_s23] ss:$0 sm:$0xff] }
 0xe19   : > { %v2022_v59 = vpop.permute.xlu0 %2021  ;;  %v2413_v39 = vld [vmem:[#allocation3 + $0x10] sm:$0xff] }
 0xe1a   : > { %2036 = vst.msk [vmem:[#allocation3 + $0x20] sm:$0xff] %vm2031_vm10, %v2022_v59  ;;  %v5738_v60 = vadd.f32 %v2413_v39, %v5329_v46 }
 0xe1b   : > { %v2024_v5 = vpop.permute.xlu1 %2023 }
 0xe1c   : > { %2037 = vst.msk [vmem:[#allocation3 + $0x28] sm:$0xff] %vm2031_vm10, %v2024_v5  ;;  %v2429_v13 = vsel %vm740_vm3, %v5738_v60, 0.0 }
 0xe1d   : > { %2430 = vadd.xlane.f32.xlu0 %v2429_v13  ;;  %v2395_v0 = vpop.permute.xlu0 %2394 }
 0xe1e   : > { %2409 = vst.msk [vmem:[#allocation3 + $0x20] sm:$0xff] %vm2404_vm11, %v2395_v0 }
 0xe1f   : > { %v2397_v16 = vpop.permute.xlu1 %2396  ;;  %v2414_v62 = vld [vmem:[#allocation3 + $0x18] sm:$0xff] }
 0xe20   : > { %2410 = vst.msk [vmem:[#allocation3 + $0x28] sm:$0xff] %vm2404_vm11, %v2397_v16  ;;  %v5746_v61 = vadd.f32 %v2414_v62, %v5326_v48  ;;  %v5000_v62 = vld [vmem:[%s5204_s26] ss:$0 sm:$0xff] }
 0xe22   : > { %v2432_v46 = vsel %vm740_vm3, %v5746_v61, 0.0 }
 0xe23   : > { %2433 = vadd.xlane.f32.xlu0 %v2432_v46 }
 0xe25   : > { %v2415_v63 = vld [vmem:[#allocation3 + $0x20] sm:$0xff] }
 0xe26   : > { %v5751_v20 = vadd.f32 %v2415_v63, %v5339_v55 }
 0xe27   : > { %v2416_v22 = vld [vmem:[#allocation3 + $0x28] sm:$0xff] }
 0xe28   : > { %v2435_v1 = vsel %vm740_vm3, %v5751_v20, 0.0  ;;  %v5756_v29 = vadd.f32 %v2416_v22, %v5337_v54 }
 0xe29   : > { %2436 = vadd.xlane.f32.xlu0 %v2435_v1 }
 0xe2a   : > { %v2438_v48 = vsel %vm740_vm3, %v5756_v29, 0.0 }
 0xe2b   : > { %2439 = vadd.xlane.f32.xlu1 %v2438_v48 }
 0xe9e   : > { %v2425_v31 = vpop.xlane.xlu0 %2424 }
 0xe9f   : > { %v2441_v2 = vmul.f32 0.03125, %v2425_v31 }
 0xea0   : > { %v2428_v3 = vpop.xlane.xlu1 %2427 }
 0xea1   : > { %v2447_v4 = vsub.f32 %v5722_v49, %v2441_v2  ;;  %v2442_v6 = vmul.f32 0.03125, %v2428_v3 }
 0xea3   : > { %v2448_v55 = vsub.f32 %v5728_v51, %v2442_v6  ;;  %v2453_v7 = vmul.f32 %v2447_v4, %v2447_v4 }
 0xea5   : > { %v2459_v9 = vsel %vm740_vm3, %v2453_v7, 0.0  ;;  %v2454_v10 = vmul.f32 %v2448_v55, %v2448_v55 }
 0xea6   : > { %2460 = vadd.xlane.f32.xlu0 %v2459_v9 }
 0xea7   : > { %v2462_v54 = vsel %vm740_vm3, %v2454_v10, 0.0 }
 0xea8   : > { %2463 = vadd.xlane.f32.xlu1 %v2462_v54 }
 0xeaa   : > { %v2431_v11 = vpop.xlane.xlu0 %2430 }
 0xeab   : > { %v2443_v12 = vmul.f32 0.03125, %v2431_v11 }
 0xead   : > { %v5765_v14 = vsub.f32 %v5738_v60, %v2443_v12 }
 0xeaf   : > { %v2455_v15 = vmul.f32 %v5765_v14, %v5765_v14 }
 0xeb0   : > { %v2434_v17 = vpop.xlane.xlu0 %2433 }
 0xeb1   : > { %v2444_v18 = vmul.f32 0.03125, %v2434_v17  ;;  %v2465_v21 = vsel %vm740_vm3, %v2455_v15, 0.0 }
 0xeb2   : > { %2466 = vadd.xlane.f32.xlu0 %v2465_v21 }
 0xeb3   : > { %v2450_v23 = vsub.f32 %v5746_v61, %v2444_v18 }
 0xeb5   : > { %v2456_v24 = vmul.f32 %v2450_v23, %v2450_v23 }
 0xeb6   : > { %v2437_v25 = vpop.xlane.xlu0 %2436 }
 0xeb7   : > { %v2445_v27 = vmul.f32 0.03125, %v2437_v25  ;;  %v2468_v28 = vsel %vm740_vm3, %v2456_v24, 0.0 }
 0xeb8   : > { %2469 = vadd.xlane.f32.xlu1 %v2468_v28  ;;  %v2440_v30 = vpop.xlane.xlu1 %2439 }
 0xeb9   : > { %v2451_v32 = vsub.f32 %v5751_v20, %v2445_v27  ;;  %v2446_v35 = vmul.f32 0.03125, %v2440_v30  ;;  %v4865_v30 = vld [vmem:[%s5228_s12] sm:$0xff]  }
 0xeba   : > { %4624 = vmatpush3.bf16.msra.mxu1 %v4865_v30 }
 0xebb   : > { %v2452_v37 = vsub.f32 %v5756_v29, %v2446_v35  ;;  %v2457_v40 = vmul.f32 %v2451_v32, %v2451_v32  ;;  %4625 = vmatprep.subr.bf16.mxu1 %v5081_v8  ;;  %v4159_v35 = vld [vmem:[%s582_s24] ss:$0 sm:$0xff] }
 0xebd   : > { %v2471_v41 = vsel %vm740_vm3, %v2457_v40, 0.0  ;;  %v2458_v42 = vmul.f32 %v2452_v37, %v2452_v37 }
 0xebe   : > { %2472 = vadd.xlane.f32.xlu0 %v2471_v41 }
 0xebf   : > { %v2474_v43 = vsel %vm740_vm3, %v2458_v42, 0.0 }
 0xec0   : > { %2475 = vadd.xlane.f32.xlu1 %v2474_v43 }
 0xf33   : > { %v2461_v34 = vpop.xlane.xlu0 %2460 }
 0xf34   : > { %v2477_v33 = vmul.f32 0.03125, %v2461_v34 }
 0xf35   : > { %v2464_v36 = vpop.xlane.xlu1 %2463 }
 0xf36   : > { %v2483_v26 = vadd.f32 1e-05, %v2477_v33  ;;  %v2478_v50 = vmul.f32 0.03125, %v2464_v36 }
 0xf38   : > { %4975 = vrsqrt.f32 %v2483_v26  ;;  %v2484_v52 = vadd.f32 1e-05, %v2478_v50 }
 0xf3a   : > { %4977 = vrsqrt.f32 %v2484_v52 }
 0xf3f   : > { %v2467_v45 = vpop.xlane.xlu0 %2466 }
 0xf40   : > { %v2479_v47 = vmul.f32 0.03125, %v2467_v45 }
 0xf42   : > { %v4976_v53 = vpop.eup %4975  ;;  %v2485_v57 = vadd.f32 1e-05, %v2479_v47 }
 0xf43   : > { %v2495_v38 = vmul.f32 %v4976_v53, %v2447_v4 }
 0xf44   : > { %v4978_v56 = vpop.eup %4977  ;;  %4979 = vrsqrt.f32 %v2485_v57 }
 0xf45   : > { %v2501_v59 = vmul.f32 %v4999_v58, %v2495_v38  ;;  %v2496_v39 = vmul.f32 %v4978_v56, %v2448_v55  ;;  %v2470_v5 = vpop.xlane.xlu1 %2469 }
 0xf46   : > { %v2480_v13 = vmul.f32 0.03125, %v2470_v5 }
 0xf47   : > { %v2502_v0 = vmul.f32 %v4999_v58, %v2496_v39  ;;  %v2507_v46 = vadd.f32 %v5000_v62, %v2501_v59 }
 0xf48   : > { %v2486_v16 = vadd.f32 1e-05, %v2480_v13 }
 0xf49   : > { %v2508_v63 = vadd.f32 %v5000_v62, %v2502_v0 }
 0xf4a   : > { %4981 = vrsqrt.f32 %v2486_v16 }
 0xf4b   : > { %v2473_v22 = vpop.xlane.xlu0 %2472  ;;  %v2513_v1 = vpack.c.bf16 %v2508_v63, %v2507_v46 }
 0xf4c   : > { %v2481_v48 = vmul.f32 0.03125, %v2473_v22 }
 0xf4d   : > { %4612 = vmatmul.mubr.msk.bf16.vlgmr.msra.gmra.mrb[40].mxu0 %vm740_vm3, %v2513_v1  ;;  %v2476_v31 = vpop.xlane.xlu1 %2475 }
 0xf4e   : > { %v4980_v2 = vpop.eup %4979  ;;  %v2487_v3 = vadd.f32 1e-05, %v2481_v48  ;;  %v2482_v4 = vmul.f32 0.03125, %v2476_v31  ;;  %4615 = vmatprep.mubr.msk.bf16.mxu0 %vm5082_vm4, %v5081_v8 }
 0xf4f   : > { %v2497_v55 = vmul.f32 %v4980_v2, %v5765_v14 }
 0xf50   : > { %4983 = vrsqrt.f32 %v2487_v3  ;;  %v2488_v6 = vadd.f32 1e-05, %v2482_v4 }
 0xf51   : > { %v2503_v10 = vmul.f32 %v4999_v58, %v2497_v55 }
 0xf52   : > { %4985 = vrsqrt.f32 %v2488_v6 }
 0xf53   : > { %v2509_v11 = vadd.f32 %v5000_v62, %v2503_v10 }
 0xf54   : > { %v4982_v7 = vpop.eup %4981 }
 0xf55   : > { %v2498_v9 = vmul.f32 %v4982_v7, %v2450_v23 }
 0xf57   : > { %v2504_v54 = vmul.f32 %v4999_v58, %v2498_v9 }
 0xf59   : > { %v2510_v12 = vadd.f32 %v5000_v62, %v2504_v54 }
 0xf5a   : > { %v4984_v15 = vpop.eup %4983 }
 0xf5b   : > { %v2499_v17 = vmul.f32 %v4984_v15, %v2451_v32  ;;  %v2514_v18 = vpack.c.bf16 %v2510_v12, %v2509_v11  ;;  %v4866_v32 = vld [vmem:[%s5228_s12 + $0x8] sm:$0xff]  }
 0xf5c   : > { %v4986_v21 = vpop.eup %4985  ;;  %4626 = vmatpush3.bf16.msra.mxu1 %v4866_v32 }
 0xf5d   : > { %v2500_v24 = vmul.f32 %v4986_v21, %v2452_v37  ;;  %4616 = vmatmul.mubr.msk.bf16.gmra.mrb[44].mxu0 %vm740_vm3, %v2514_v18  ;;  %v2505_v25 = vmul.f32 %v4999_v58, %v2499_v17 }
 0xf5e   : > { %4619 = vmatprep.mubr.msk.bf16.mxu0 %vm5082_vm4, %v5081_v8 }
 0xf5f   : > { %v2506_v14 = vmul.f32 %v4999_v58, %v2500_v24  ;;  %v2511_v23 = vadd.f32 %v5000_v62, %v2505_v25 }
 0xf61   : > { %v2512_v27 = vadd.f32 %v5000_v62, %v2506_v14 }
 0xf63   : > { %v2515_v28 = vpack.c.bf16 %v2512_v27, %v2511_v23 }
 0xf65   : > { %4620 = vmatmul.mubr.msk.bf16.gmra.mrb[48].mxu0 %vm740_vm3, %v2515_v28 }
0x1020   : > { %v2582_v37 = vpop.f32.mrb[40].mxu0 }
0x1021   : > { %v2583_v40 = vadd.f32 %v4159_v35, %v2582_v37  ;;  %v4613_v41 = vpop.f32.mrb[41].mxu0 }
0x1022   : > { %v2585_v42 = vpop.f32.mrb[42].mxu0 }
0x1023   : > { %v2605_v43 = vmul.f32 %v2583_v40, %v2583_v40  ;;  %v2586_v44 = vadd.f32 %v4159_v35, %v2585_v42  ;;  %v4614_v19 = vpop.f32.mrb[43].mxu0 }
0x1025   : > { %v2611_v34 = vmul.f32 %v2605_v43, %v2583_v40  ;;  %v2606_v33 = vmul.f32 %v2586_v44, %v2586_v44 }
0x1027   : > { %v2617_v36 = vmul.f32 0.044715, %v2611_v34  ;;  %v2612_v26 = vmul.f32 %v2606_v33, %v2586_v44 }
0x1029   : > { %v2623_v50 = vadd.f32 %v2617_v36, %v2583_v40  ;;  %v2618_v52 = vmul.f32 0.044715, %v2612_v26 }
0x102b   : > { %v2629_v45 = vmul.f32 0.7978846, %v2623_v50  ;;  %v2624_v47 = vadd.f32 %v2618_v52, %v2586_v44 }
0x102d   : > { %4987 = vtanh.f32 %v2629_v45  ;;  %v2630_v53 = vmul.f32 0.7978846, %v2624_v47 }
0x102f   : > { %4989 = vtanh.f32 %v2630_v53 }
0x1030   : > { %v2590_v57 = vpop.f32.mrb[44].mxu0 }
0x1031   : > { %v2591_v38 = vadd.f32 %v4159_v35, %v2590_v57  ;;  %v4617_v56 = vpop.f32.mrb[45].mxu0 }
0x1032   : > { %v2593_v58 = vpop.f32.mrb[46].mxu0 }
0x1033   : > { %v2607_v59 = vmul.f32 %v2591_v38, %v2591_v38  ;;  %v2594_v39 = vadd.f32 %v4159_v35, %v2593_v58  ;;  %v4618_v5 = vpop.f32.mrb[47].mxu0 }
0x1035   : > { %v2613_v13 = vmul.f32 %v2607_v59, %v2591_v38  ;;  %v2608_v0 = vmul.f32 %v2594_v39, %v2594_v39 }
0x1037   : > { %v4988_v16 = vpop.eup %4987  ;;  %v2619_v62 = vmul.f32 0.044715, %v2613_v13  ;;  %v2614_v46 = vmul.f32 %v2608_v0, %v2594_v39 }
0x1038   : > { %v2641_v63 = vadd.f32 1.0, %v4988_v16  ;;  %v2598_v22 = vpop.f32.mrb[48].mxu0 }
0x1039   : > { %v4990_v1 = vpop.eup %4989  ;;  %v2625_v48 = vadd.f32 %v2619_v62, %v2591_v38  ;;  %v2620_v31 = vmul.f32 0.044715, %v2614_v46  ;;  %v2599_v2 = vadd.f32 %v4159_v35, %v2598_v22  ;;  %v4621_v3 = vpop.f32.mrb[49].mxu0 }
0x103a   : > { %v2647_v4 = vmul.f32 0.5, %v2641_v63  ;;  %v2642_v6 = vadd.f32 1.0, %v4990_v1  ;;  %v2601_v55 = vpop.f32.mrb[50].mxu0 }
0x103b   : > { %v2631_v7 = vmul.f32 0.7978846, %v2625_v48  ;;  %v2626_v9 = vadd.f32 %v2620_v31, %v2594_v39  ;;  %v2609_v10 = vmul.f32 %v2599_v2, %v2599_v2  ;;  %v2602_v54 = vadd.f32 %v4159_v35, %v2601_v55  ;;  %v4622_v11 = vpop.f32.mrb[51].mxu0 }
0x103c   : > { %v2648_v12 = vmul.f32 0.5, %v2642_v6  ;;  %v2653_v21 = vmul.f32 %v2647_v4, %v2583_v40 }
0x103d   : > { %4991 = vtanh.f32 %v2631_v7  ;;  %v2632_v15 = vmul.f32 0.7978846, %v2626_v9  ;;  %v2615_v17 = vmul.f32 %v2609_v10, %v2599_v2  ;;  %v2610_v18 = vmul.f32 %v2602_v54, %v2602_v54 }
0x103e   : > { %v2654_v24 = vmul.f32 %v2648_v12, %v2586_v44  ;;  %v5097_v10 = vmov (!%p4171_p5), 0.0  }
0x103f   : > { %4993 = vtanh.f32 %v2632_v15  ;;  %v2621_v25 = vmul.f32 0.044715, %v2615_v17  ;;  %v2616_v14 = vmul.f32 %v2610_v18, %v2602_v54  ;;  %4639 = vmatprep.subr.bf16.mxu0 (!%p4171_p5), %v5097_v10  ;;  %4647 = vmatprep.subr.bf16.mxu1 (!%p4171_p5), %v5097_v10  ;;  %v5004_v15 = vld [vmem:[%s6145_s11 + $0x8] sm:$0xff] (!%p4171_p5)  }
0x1040   : > { %v2659_v23 = vpack.c.bf16 %v2654_v24, %v2653_v21  ;;  %4643 = vmatprep.mubr.msk.bf16.mxu0 (!%p4171_p5), %vm5098_vm12, %v5097_v10  ;;  %v5005_v21 = vld [vmem:[%s6145_s11 + $0x20] sm:$0xff] (!%p4171_p5)  }
0x1041   : > { %v2627_v27 = vadd.f32 %v2621_v25, %v2599_v2  ;;  %v2622_v28 = vmul.f32 0.044715, %v2616_v14 }
0x1042   : > { %4628 = vmatmul.mubr.msk.bf16.vlgmr.msra.gmra.mrb[36].mxu1 %vm740_vm3, %v2659_v23 }
0x1043   : > { %v2633_v30 = vmul.f32 0.7978846, %v2627_v27  ;;  %v2628_v32 = vadd.f32 %v2622_v28, %v2602_v54  ;;  %4631 = vmatprep.mubr.msk.bf16.mxu1 %vm5082_vm4, %v5081_v8 }
0x1045   : > { %4995 = vtanh.f32 %v2633_v30  ;;  %v2634_v35 = vmul.f32 0.7978846, %v2628_v32  ;;  %v5006_v30 = vld [vmem:[%s6145_s11 + $0x30] sm:$0xff] (!%p4171_p5)  }
0x1047   : > { %v4992_v37 = vpop.eup %4991  ;;  %4997 = vtanh.f32 %v2634_v35 }
0x1048   : > { %v2643_v41 = vadd.f32 1.0, %v4992_v37  ;;  %v5007_v37 = vld [vmem:[%s6145_s11 + $0x28] sm:$0xff] (!%p4171_p5)  }
0x1049   : > { %v4994_v40 = vpop.eup %4993 }
0x104a   : > { %v2649_v42 = vmul.f32 0.5, %v2643_v41  ;;  %v2644_v43 = vadd.f32 1.0, %v4994_v40  ;;  %v5008_v40 = vld [vmem:[%s6145_s11 + $0x38] sm:$0xff] (!%p4171_p5)  }
0x104c   : > { %v2650_v44 = vmul.f32 0.5, %v2644_v43  ;;  %v2655_v19 = vmul.f32 %v2649_v42, %v2591_v38  ;;  %v4165_v38 = vld [vmem:[%s590_s16] ss:$0 sm:$0xff]  ;;  %s6160_s16 = sld [smem:[#allocation10_spill]] (!%p4171_p5) }
0x104e   : > { %v2656_v34 = vmul.f32 %v2650_v44, %v2594_v39  ;;  %v5009_v44 = vld [vmem:[%s6145_s11 + $0x40] sm:$0xff] (!%p4171_p5)  }
0x104f   : > { %v4996_v33 = vpop.eup %4995 }
0x1050   : > { %v2645_v36 = vadd.f32 1.0, %v4996_v33  ;;  %v2660_v26 = vpack.c.bf16 %v2656_v34, %v2655_v19  ;;  %v5010_v33 = vld [vmem:[%s6145_s11 + $0x50] sm:$0xff] (!%p4171_p5)  }
0x1051   : > { %v4998_v50 = vpop.eup %4997 }
0x1052   : > { %v2651_v52 = vmul.f32 0.5, %v2645_v36  ;;  %v2646_v45 = vadd.f32 1.0, %v4998_v50  ;;  %4632 = vmatmul.mubr.msk.bf16.gmra.mrb[40].mxu1 %vm740_vm3, %v2660_v26 }
0x1053   : > { %4635 = vmatprep.mubr.msk.bf16.mxu1 %vm5082_vm4, %v5081_v8 }
0x1054   : > { %v2652_v47 = vmul.f32 0.5, %v2646_v45  ;;  %v2657_v53 = vmul.f32 %v2651_v52, %v2599_v2  ;;  %v5011_v52 = vld [vmem:[%s6145_s11 + $0x48] sm:$0xff] (!%p4171_p5)  }
0x1056   : > { %v2658_v57 = vmul.f32 %v2652_v47, %v2602_v54  ;;  %v5003_v54 = vld [vmem:[%s6145_s11 + $0x18] sm:$0xff] (!%p4171_p5)  }
0x1057   : > { %v5012_v47 = vld [vmem:[%s6145_s11 + $0x58] sm:$0xff] (!%p4171_p5)  }
0x1058   : > { %v2661_v56 = vpack.c.bf16 %v2658_v57, %v2657_v53 }
0x105a   : > { %4636 = vmatmul.mubr.msk.bf16.gmra.mrb[44].mxu1 %vm740_vm3, %v2661_v56  ;;  %v5013_v56 = vld [vmem:[%s6145_s11 + $0x60] sm:$0xff] (!%p4171_p5)  }
0x105b   : > { %4651 = vmatprep.mubr.msk.bf16.mxu1 (!%p4171_p5), %vm5098_vm12, %v5097_v10 }
0x1115   : > { %v2728_v58 = vpop.f32.mrb[36].mxu1 }
0x1116   : > { %v2729_v59 = vadd.f32 %v4165_v38, %v2728_v58  ;;  %v4629_v39 = vpop.f32.mrb[37].mxu1 }
0x1117   : > { %v2731_v5 = vpop.f32.mrb[38].mxu1 }
0x1118   : > { %v2751_v13 = vadd.f32 %v2729_v59, %v5722_v49  ;;  %v2732_v0 = vadd.f32 %v4165_v38, %v2731_v5  ;;  %v4630_v16 = vpop.f32.mrb[39].mxu1  ;;  %v5014_v59 = vld [vmem:[%s6145_s11 + $0x70] sm:$0xff] (!%p4171_p5)  }
0x1119   : > { %v5015_v16 = vld [vmem:[%s6145_s11 + $0x68] sm:$0xff] (!%p4171_p5)  }
0x111a   : > { %2757 = vst.msk [vmem:[#allocation2] sm:$0xff] %vm740_vm3, %v2751_v13  ;;  %v2752_v8 = vadd.f32 %v2732_v0, %v5728_v51 }
0x111c   : > { %2758 = vst.msk [vmem:[#allocation2 + $0x8] sm:$0xff] %vm740_vm3, %v2752_v8  ;;  %v5831_v9 = vpack.c.bf16 (!%p4171_p5), %v2752_v8, %v2751_v13 }
0x111e   : > { %v5846_v11 = vunpack.c.l.b16 (!%p4171_p5), %v5831_v9 }
0x1120   : > { %v2784_v17 = vrot.slane (!%p4171_p5), %v5846_v11, 1  ;;  %v2906_v14 = vrot.slane (!%p4171_p5), %v5846_v11, 2  ;;  %v2971_v32 = vrot.slane (!%p4171_p5), %v5846_v11, 3  ;;  %v3036_v19 = vrot.slane (!%p4171_p5), %v5846_v11, 4 }
0x1121   : > { %v3101_v26 = vrot.slane (!%p4171_p5), %v5846_v11, 5  ;;  %v3231_v5 = vrot.slane (!%p4171_p5), %v5846_v11, 7 }
0x1125   : > { %v2736_v62 = vpop.f32.mrb[40].mxu1 }
0x1126   : > { %v2737_v46 = vadd.f32 %v4165_v38, %v2736_v62  ;;  %v4633_v63 = vpop.f32.mrb[41].mxu1  ;;  %v5016_v62 = vld [vmem:[%s6145_s11 + $0x78] sm:$0xff] (!%p4171_p5)  }
0x1127   : > { %v2739_v22 = vpop.f32.mrb[42].mxu1  ;;  %v5947_v63 = vunpack.c.h.b16 (!%p4171_p5), %v5831_v9 }
0x1128   : > { %v5814_v1 = vadd.f32 %v2737_v46, %v5738_v60  ;;  %v2740_v48 = vadd.f32 %v4165_v38, %v2739_v22  ;;  %v4634_v31 = vpop.f32.mrb[43].mxu1 }
0x112a   : > { %2759 = vst.msk [vmem:[#allocation2 + $0x10] sm:$0xff] %vm740_vm3, %v5814_v1  ;;  %v2754_v49 = vadd.f32 %v2740_v48, %v5746_v61  ;;  %v5001_v61 = vld [vmem:[%s6145_s11 + $0x10] sm:$0xff] (!%p4171_p5)   ;;  %v5017_v48 = vld [vmem:[%s6145_s11 + $0x80] sm:$0xff] (!%p4171_p5)  }
0x112b   : > { %4640 = vmatpush3.bf16.msra.mxu0 (!%p4171_p5), %v5001_v61  ;;  %v5021_v61 = vld [vmem:[%s6145_s11 + $0xa0] sm:$0xff] (!%p4171_p5)  }
0x112c   : > { %2760 = vst.msk [vmem:[#allocation2 + $0x18] sm:$0xff] %vm740_vm3, %v2754_v49  ;;  %4641 = vmatprep.subr.bf16.mxu0 (!%p4171_p5), %v5097_v10 }
0x112d   : > { %v2744_v2 = vpop.f32.mrb[44].mxu1 }
0x112e   : > { %v2745_v51 = vadd.f32 %v4165_v38, %v2744_v2  ;;  %v4637_v3 = vpop.f32.mrb[45].mxu1  ;;  %2766 = sbr.rel (%p4171_p5) target bundleno = 4933 (0x1345), region = 88  ;;  %v5018_v2 = vld [vmem:[%s6145_s11 + $0x90] sm:$0xff] (!%p4171_p5)  }
0x112f   : > { %v2747_v4 = vpop.f32.mrb[46].mxu1  ;;  %4642 = vmatpush3.bf16.msra.mxu0 (!%p4171_p5), %v5003_v54  ;;  %v5019_v3 = vld [vmem:[%s6145_s11 + $0x88] sm:$0xff] (!%p4171_p5)   ;;  %v5022_v54 = vld [vmem:[%s6145_s11 + $0xb0] sm:$0xff] (!%p4171_p5)  }
0x1130   : > { %v2755_v6 = vadd.f32 %v2745_v51, %v5751_v20  ;;  %v2748_v55 = vadd.f32 %v4165_v38, %v2747_v4  ;;  %v4638_v7 = vpop.f32.mrb[47].mxu1  ;;  %4655 = vmatprep.subr.bf16.mxu0 (!%p4171_p5), %v5097_v10  ;;  %v3166_v38 = vrot.slane (!%p4171_p5), %v5846_v11, 6  ;;  %v3362_v51 = vrot.slane (!%p4171_p5), %v5947_v63, 1  ;;  %v5020_v4 = vld [vmem:[%s6145_s11 + $0x98] sm:$0xff] (!%p4171_p5)  }
0x1132   : > { %2761 = vst.msk [vmem:[#allocation2 + $0x20] sm:$0xff] %vm740_vm3, %v2755_v6  ;;  %v5823_v60 = vadd.f32 %v2748_v55, %v5756_v29  ;;  %v5833_v20 = vpack.c.bf16 (!%p4171_p5), %v2755_v6, %v2754_v49  ;;  %v5002_v29 = vld [vmem:[%s6145_s11] sm:$0xff] (!%p4171_p5)  }
0x1133   : > { %4648 = vmatpush3.bf16.msra.mxu1 (!%p4171_p5), %v5002_v29 }
0x1134   : > { %2762 = vst.msk [vmem:[#allocation2 + $0x28] sm:$0xff] %vm740_vm3, %v5823_v60  ;;  %v5849_v12 = vunpack.c.l.b16 (!%p4171_p5), %v5833_v20  ;;  %4649 = vmatprep.subr.bf16.mxu1 (!%p4171_p5), %v5097_v10  ;;  %v5934_v0 = vunpack.c.h.b16 (!%p4171_p5), %v5833_v20  ;;  %v3426_v20 = vrot.slane (!%p4171_p5), %v5947_v63, 2 }
0x1136   : > { %v2843_v18 = vrot.slane %v5849_v12, 7  ;;  %v2786_v24 = vsel %vm2785_vm13, %v5849_v12, %v2784_v17  ;;  %v2907_v23 = vrot.slane %v5849_v12, 1  ;;  %v2972_v35 = vrot.slane %v5849_v12, 2 }
0x1137   : > { %4650 = vmatpush3.bf16.msra.mxu1 %v5004_v15  ;;  %v2787_v27 = vpack.c.b16 %v2786_v24, %v2786_v24  ;;  %v3037_v36 = vrot.slane %v5849_v12, 3  ;;  %v3102_v50 = vrot.slane %v5849_v12, 4  ;;  %v3167_v39 = vrot.slane %v5849_v12, 5  ;;  %v5023_v15 = vld [vmem:[%s6145_s11 + $0xa8] sm:$0xff]  }
0x1138   : > { %v2844_v25 = vsel %vm2785_vm13, %v2843_v18, %v5846_v11  ;;  %4663 = vmatprep.subr.bf16.mxu1 %v5097_v10  ;;  %v2908_v41 = vsel %vm2785_vm13, %v2907_v23, %v2906_v14  ;;  %v2973_v42 = vsel %vm2785_vm13, %v2972_v35, %v2971_v32  ;;  %v3232_v13 = vrot.slane %v5849_v12, 6  ;;  %v5024_v18 = vld [vmem:[%s6145_s11 + $0xb8] sm:$0xff]   ;;  %v5027_v35 = vld [vmem:[%s6145_s11 + $0xc8] sm:$0xff]  }
0x1139   : > { %v2845_v28 = vpack.c.b16 %v2844_v25, %v2844_v25  ;;  %4644 = vmatmul.mubr.msk.bf16.vlgmr.msra.gmra.mrb[0].mxu0 %vm740_vm3, %v2787_v27  ;;  %v2909_v43 = vpack.c.b16 %v2908_v41, %v2908_v41  ;;  %v2974_v34 = vpack.c.b16 %v2973_v42, %v2973_v42  ;;  %v3038_v45 = vsel %vm2785_vm13, %v3037_v36, %v3036_v19  ;;  %v5025_v25 = vld [vmem:[%s6145_s11 + $0xc0] sm:$0xff]   ;;  %v5028_v41 = vld [vmem:[%s6145_s11 + $0xd8] sm:$0xff]   ;;  %v5030_v36 = vld [vmem:[%s6145_s11 + $0xf0] sm:$0xff]  }
0x113a   : > { %4656 = vmatpush3.bf16.msra.mxu0 %v5005_v21  ;;  %4659 = vmatprep.mubr.msk.bf16.mxu0 %vm5098_vm12, %v5097_v10  ;;  %v3103_v53 = vsel %vm2785_vm13, %v3102_v50, %v3101_v26  ;;  %v3039_v57 = vpack.c.b16 %v3038_v45, %v3038_v45  ;;  %v3168_v8 = vsel %vm2785_vm13, %v3167_v39, %v3166_v38  ;;  %v3298_v49 = vrot.slane %v5934_v0, 7  ;;  %v5034_v39 = vld [vmem:[%s6145_s11 + $0x108] sm:$0xff]  }
0x113b   : > { %4652 = vmatmul.mubr.msk.bf16.vlgmr.msra.gmra.mrb[0].mxu1 %vm740_vm3, %v2845_v28  ;;  %4657 = vmatprep.subr.bf16.mxu0 %v5097_v10  ;;  %v3104_v58 = vpack.c.b16 %v3103_v53, %v3103_v53  ;;  %v3233_v46 = vsel %vm2785_vm13, %v3232_v13, %v3231_v5  ;;  %v3169_v22 = vpack.c.b16 %v3168_v8, %v3168_v8  ;;  %v3427_v29 = vrot.slane %v5934_v0, 1  ;;  %v5026_v28 = vld [vmem:[%s6145_s11 + $0xd0] sm:$0xff]   ;;  %v5032_v53 = vld [vmem:[%s6145_s11 + $0xf8] sm:$0xff]  }
0x113c   : > { %4664 = vmatpush3.bf16.msra.mxu1 %v5006_v30  ;;  %4667 = vmatprep.mubr.msk.bf16.mxu1 %vm5098_vm12, %v5097_v10  ;;  %v3234_v31 = vpack.c.b16 %v3233_v46, %v3233_v46  ;;  %v3299_v6 = vsel %vm2785_vm13, %v3298_v49, %v5947_v63  ;;  %v3363_v55 = vsel %vm2785_vm13, %v5934_v0, %v3362_v51  ;;  %v3491_v11 = vrot.slane %v5947_v63, 3  ;;  %v5037_v8 = vld [vmem:[%s6147_s13 + $0x10] sm:$0xff]  }
0x113d   : > { %4665 = vmatprep.subr.bf16.mxu1 %v5097_v10  ;;  %v3300_v7 = vpack.c.b16 %v3299_v6, %v3299_v6  ;;  %v3364_v9 = vpack.c.b16 %v3363_v55, %v3363_v55  ;;  %v3492_v12 = vrot.slane %v5934_v0, 2  ;;  %v3428_v17 = vsel %vm2785_vm13, %v3427_v29, %v3426_v20 }
0x113e   : > { %4658 = vmatpush3.bf16.msra.mxu0 %v5007_v37  ;;  %v3429_v24 = vpack.c.b16 %v3428_v17, %v3428_v17  ;;  %v3556_v23 = vrot.slane %v5947_v63, 4  ;;  %v3557_v27 = vrot.slane %v5934_v0, 3  ;;  %v3621_v30 = vrot.slane %v5947_v63, 5 }
0x113f   : > { %4671 = vmatprep.subr.bf16.mxu0 %v5097_v10  ;;  %v3493_v21 = vsel %vm2785_vm13, %v3492_v12, %v3491_v11  ;;  %v3622_v32 = vrot.slane %v5934_v0, 4  ;;  %v3686_v19 = vrot.slane %v5947_v63, 6  ;;  %v3751_v26 = vrot.slane %v5947_v63, 7 }
0x1140   : > { %4666 = vmatpush3.bf16.msra.mxu1 %v5008_v40  ;;  %v3494_v14 = vpack.c.b16 %v3493_v21, %v3493_v21  ;;  %v3558_v37 = vsel %vm2785_vm13, %v3557_v27, %v3556_v23  ;;  %v3752_v50 = vrot.slane %v5934_v0, 6  ;;  %v2768_v45 = vpack.c.bf16 %v5814_v1, %v5814_v1  ;;  %v5033_v1 = vld [vmem:[%s6145_s11 + $0x100] sm:$0xff]  }
0x1141   : > { %4679 = vmatprep.subr.bf16.mxu1 %v5097_v10  ;;  %4660 = vmatmul.mubr.msk.bf16.vlgmr.msra.gmra.mrb[4].mxu0 %vm740_vm3, %v2909_v43  ;;  %v3623_v40 = vsel %vm2785_vm13, %v3622_v32, %v3621_v30  ;;  %v3559_v42 = vpack.c.b16 %v3558_v37, %v3558_v37  ;;  %v5029_v43 = vld [vmem:[%s6145_s11 + $0xe0] sm:$0xff]  }
0x1142   : > { %4672 = vmatpush3.bf16.msra.mxu0 %v5009_v44  ;;  %4675 = vmatprep.mubr.msk.bf16.mxu0 %vm5098_vm12, %v5097_v10  ;;  %v3624_v44 = vpack.c.b16 %v3623_v40, %v3623_v40 }
0x1143   : > { %4668 = vmatmul.mubr.msk.bf16.vlgmr.msra.gmra.mrb[4].mxu1 %vm740_vm3, %v2974_v34  ;;  %4673 = vmatprep.subr.bf16.mxu0 %v5097_v10  ;;  %v3687_v34 = vrot.slane %v5934_v0, 5  ;;  %v5035_v0 = vld [vmem:[%s6147_s13] sm:$0xff]  }
0x1144   : > { %4680 = vmatpush3.bf16.msra.mxu1 %v5010_v33  ;;  %4683 = vmatprep.mubr.msk.bf16.mxu1 %vm5098_vm12, %v5097_v10  ;;  %v2770_v33 = vpack.c.bf16 %v5823_v60, %v5823_v60  ;;  %v5031_v60 = vld [vmem:[%s6145_s11 + $0xe8] sm:$0xff]  }
0x1145   : > { %4681 = vmatprep.subr.bf16.mxu1 %v5097_v10 }
0x1146   : > { %4674 = vmatpush3.bf16.msra.mxu0 %v5011_v52  ;;  %v3688_v52 = vsel %vm2785_vm13, %v3687_v34, %v3686_v19 }
0x1147   : > { %4687 = vmatprep.subr.bf16.mxu0 %v5097_v10 }
0x1148   : > { %4682 = vmatpush3.bf16.msra.mxu1 %v5012_v47  ;;  %v3819_v47 = vunpack.c.l.b16 %v2770_v33 }
0x1149   : > { %4695 = vmatprep.subr.bf16.mxu1 %v5097_v10  ;;  %4676 = vmatmul.mubr.msk.bf16.vlgmr.msra.gmra.mrb[8].mxu0 %vm740_vm3, %v3039_v57  ;;  %v3753_v57 = vsel %vm2785_vm13, %v3752_v50, %v3751_v26 }
0x114a   : > { %4688 = vmatpush3.bf16.msra.mxu0 %v5013_v56  ;;  %4691 = vmatprep.mubr.msk.bf16.mxu0 %vm5098_vm12, %v5097_v10  ;;  %v3689_v56 = vpack.c.b16 %v3688_v52, %v3688_v52  ;;  %v3754_v38 = vpack.c.b16 %v3753_v57, %v3753_v57 }
0x114b   : > { %4684 = vmatmul.mubr.msk.bf16.vlgmr.msra.gmra.mrb[8].mxu1 %vm740_vm3, %v3104_v58  ;;  %4689 = vmatprep.subr.bf16.mxu0 %v5097_v10  ;;  %v3818_v58 = vunpack.c.l.b16 %v2768_v45 }
0x114c   : > { %4696 = vmatpush3.bf16.msra.mxu1 %v5014_v59  ;;  %4699 = vmatprep.mubr.msk.bf16.mxu1 %vm5098_vm12, %v5097_v10  ;;  %v3820_v59 = vrot.slane %v3819_v47, 7 }
0x114d   : > { %4697 = vmatprep.subr.bf16.mxu1 %v5097_v10 }
0x114e   : > { %4690 = vmatpush3.bf16.msra.mxu0 %v5015_v16  ;;  %v3821_v5 = vsel %vm2785_vm13, %v3820_v59, %v3818_v58  ;;  %v5036_v16 = vld [vmem:[%s6147_s13 + $0x8] sm:$0xff]  }
0x114f   : > { %4703 = vmatprep.subr.bf16.mxu0 %v5097_v10  ;;  %v3822_v13 = vpack.c.b16 %v3821_v5, %v3821_v5 }
0x1150   : > { %4698 = vmatpush3.bf16.msra.mxu1 %v5016_v62  ;;  %v5038_v62 = vld [vmem:[%s6147_s13 + $0x18] sm:$0xff]  }
0x1151   : > { %4711 = vmatprep.subr.bf16.mxu1 %v5097_v10  ;;  %4692 = vmatmul.mubr.msk.bf16.vlgmr.msra.gmra.mrb[12].mxu0 %vm740_vm3, %v3169_v22 }
0x1152   : > { %4704 = vmatpush3.bf16.msra.mxu0 %v5017_v48  ;;  %4707 = vmatprep.mubr.msk.bf16.mxu0 %vm5098_vm12, %v5097_v10 }
0x1153   : > { %4700 = vmatmul.mubr.msk.bf16.vlgmr.msra.gmra.mrb[12].mxu1 %vm740_vm3, %v3234_v31  ;;  %4705 = vmatprep.subr.bf16.mxu0 %v5097_v10 }
0x1154   : > { %4712 = vmatpush3.bf16.msra.mxu1 %v5018_v2  ;;  %4715 = vmatprep.mubr.msk.bf16.mxu1 %vm5098_vm12, %v5097_v10 }
0x1155   : > { %4713 = vmatprep.subr.bf16.mxu1 %v5097_v10 }
0x1156   : > { %4706 = vmatpush3.bf16.msra.mxu0 %v5019_v3 }
0x1157   : > { %4719 = vmatprep.subr.bf16.mxu0 %v5097_v10 }
0x1158   : > { %4714 = vmatpush3.bf16.msra.mxu1 %v5020_v4 }
0x1159   : > { %4727 = vmatprep.subr.bf16.mxu1 %v5097_v10  ;;  %4708 = vmatmul.mubr.msk.bf16.vlgmr.msra.gmra.mrb[16].mxu0 %vm740_vm3, %v3300_v7 }
0x115a   : > { %4720 = vmatpush3.bf16.msra.mxu0 %v5021_v61  ;;  %4723 = vmatprep.mubr.msk.bf16.mxu0 %vm5098_vm12, %v5097_v10 }
0x115b   : > { %4716 = vmatmul.mubr.msk.bf16.vlgmr.msra.gmra.mrb[16].mxu1 %vm740_vm3, %v3364_v9  ;;  %4721 = vmatprep.subr.bf16.mxu0 %v5097_v10 }
0x115c   : > { %4728 = vmatpush3.bf16.msra.mxu1 %v5022_v54  ;;  %4731 = vmatprep.mubr.msk.bf16.mxu1 %vm5098_vm12, %v5097_v10 }
0x115d   : > { %4729 = vmatprep.subr.bf16.mxu1 %v5097_v10 }
0x115e   : > { %4722 = vmatpush3.bf16.msra.mxu0 %v5023_v15 }
0x115f   : > { %4735 = vmatprep.subr.bf16.mxu0 %v5097_v10 }
0x1160   : > { %4730 = vmatpush3.bf16.msra.mxu1 %v5024_v18 }
0x1161   : > { %4743 = vmatprep.subr.bf16.mxu1 %v5097_v10  ;;  %4724 = vmatmul.mubr.msk.bf16.vlgmr.msra.gmra.mrb[20].mxu0 %vm740_vm3, %v3429_v24 }
0x1162   : > { %4736 = vmatpush3.bf16.msra.mxu0 %v5025_v25  ;;  %4739 = vmatprep.mubr.msk.bf16.mxu0 %vm5098_vm12, %v5097_v10 }
0x1163   : > { %4732 = vmatmul.mubr.msk.bf16.vlgmr.msra.gmra.mrb[20].mxu1 %vm740_vm3, %v3494_v14  ;;  %4737 = vmatprep.subr.bf16.mxu0 %v5097_v10 }
0x1164   : > { %4744 = vmatpush3.bf16.msra.mxu1 %v5026_v28  ;;  %4747 = vmatprep.mubr.msk.bf16.mxu1 %vm5098_vm12, %v5097_v10 }
0x1165   : > { %4745 = vmatprep.subr.bf16.mxu1 %v5097_v10 }
0x1166   : > { %4738 = vmatpush3.bf16.msra.mxu0 %v5027_v35 }
0x1167   : > { %4751 = vmatprep.subr.bf16.mxu0 %v5097_v10 }
0x1168   : > { %4746 = vmatpush3.bf16.msra.mxu1 %v5028_v41 }
0x1169   : > { %4759 = vmatprep.subr.bf16.mxu1 %v5097_v10  ;;  %4740 = vmatmul.mubr.msk.bf16.vlgmr.msra.gmra.mrb[24].mxu0 %vm740_vm3, %v3559_v42 }
0x116a   : > { %4752 = vmatpush3.bf16.msra.mxu0 %v5029_v43  ;;  %4755 = vmatprep.mubr.msk.bf16.mxu0 %vm5098_vm12, %v5097_v10 }
0x116b   : > { %4748 = vmatmul.mubr.msk.bf16.vlgmr.msra.gmra.mrb[24].mxu1 %vm740_vm3, %v3624_v44  ;;  %4753 = vmatprep.subr.bf16.mxu0 %v5097_v10 }
0x116c   : > { %4760 = vmatpush3.bf16.msra.mxu1 %v5030_v36  ;;  %4763 = vmatprep.mubr.msk.bf16.mxu1 %vm5098_vm12, %v5097_v10 }
0x116d   : > { %4761 = vmatprep.subr.bf16.mxu1 %v5097_v10 }
0x116e   : > { %4754 = vmatpush3.bf16.msra.mxu0 %v5031_v60 }
0x116f   : > { %4767 = vmatprep.subr.bf16.mxu0 %v5097_v10 }
0x1170   : > { %4762 = vmatpush3.bf16.msra.mxu1 %v5032_v53 }
0x1171   : > { %4775 = vmatprep.subr.bf16.mxu1 %v5097_v10  ;;  %4756 = vmatmul.mubr.msk.bf16.vlgmr.msra.gmra.mrb[28].mxu0 %vm740_vm3, %v3689_v56 }
0x1172   : > { %4768 = vmatpush3.bf16.msra.mxu0 %v5033_v1  ;;  %4771 = vmatprep.mubr.msk.bf16.mxu0 %vm5098_vm12, %v5097_v10 }
0x1173   : > { %4764 = vmatmul.mubr.msk.bf16.vlgmr.msra.gmra.mrb[28].mxu1 %vm740_vm3, %v3754_v38  ;;  %4769 = vmatprep.subr.bf16.mxu0 %v5097_v10 }
0x1174   : > { %4783 = vmatprep.mubr.msk.bf16.mxu1 %vm5098_vm12, %v5097_v10  ;;  %4776 = vmatpush3.bf16.msra.mxu1 %v5035_v0 }
0x1175   : > { %4777 = vmatprep.subr.bf16.mxu1 %v5097_v10 }
0x1176   : > { %4770 = vmatpush3.bf16.msra.mxu0 %v5034_v39 }
0x1178   : > { %4778 = vmatpush3.bf16.msra.mxu1 %v5036_v16 }
0x1179   : > { %4772 = vmatmul.mubr.msk.bf16.vlgmr.msra.gmra.mrb[32].mxu0 %vm740_vm3, %v3822_v13  ;;  %4779 = vmatprep.subr.bf16.mxu1 %v5097_v10 }
0x117c   : > { %4780 = vmatpush3.bf16.msra.mxu1 %v5037_v8 }
0x117d   : > { %4781 = vmatprep.subr.bf16.mxu1 %v5097_v10 }
0x1180   : > { %4782 = vmatpush3.bf16.msra.mxu1 %v5038_v62 }
0x120c   : > { %v2837_v46 = vpop.f32.mrb[0].mxu0 }
0x120d   : > { %v4645_v63 = vpop.f32.mrb[1].mxu0 }
0x120e   : > { %v2895_v22 = vpop.f32.mrb[0].mxu1  ;;  %v2840_v31 = vpop.f32.mrb[2].mxu0 }
0x120f   : > { %v2896_v48 = vadd.f32 %v2895_v22, %v2837_v46  ;;  %v4653_v49 = vpop.f32.mrb[1].mxu1  ;;  %v4646_v2 = vpop.f32.mrb[3].mxu0 }
0x1210   : > { %v2898_v51 = vpop.f32.mrb[2].mxu1 }
0x1211   : > { %v4654_v3 = vpop.f32.mrb[3].mxu1 }
0x1214   : > { %v2959_v4 = vpop.f32.mrb[4].mxu0 }
0x1215   : > { %v2965_v6 = vadd.f32 %v2959_v4, %v2896_v48  ;;  %v4661_v55 = vpop.f32.mrb[5].mxu0 }
0x1216   : > { %v3024_v7 = vpop.f32.mrb[4].mxu1  ;;  %v2962_v61 = vpop.f32.mrb[6].mxu0 }
0x1217   : > { %v4669_v10 = vpop.f32.mrb[5].mxu1  ;;  %v3030_v9 = vadd.f32 %v3024_v7, %v2965_v6  ;;  %v4662_v20 = vpop.f32.mrb[7].mxu0 }
0x1218   : > { %v3027_v29 = vpop.f32.mrb[6].mxu1  ;;  %v4287_v20 = vld [vmem:[%s6160_s16] ss:$0 sm:$0xff] }
0x1219   : > { %v4670_v54 = vpop.f32.mrb[7].mxu1 }
0x121c   : > { %v3089_v11 = vpop.f32.mrb[8].mxu0 }
0x121d   : > { %v3095_v12 = vadd.f32 %v3089_v11, %v3030_v9  ;;  %v4677_v15 = vpop.f32.mrb[9].mxu0 }
0x121e   : > { %v3154_v17 = vpop.f32.mrb[8].mxu1  ;;  %v3092_v18 = vpop.f32.mrb[10].mxu0 }
0x121f   : > { %v4685_v21 = vpop.f32.mrb[9].mxu1  ;;  %v3160_v24 = vadd.f32 %v3154_v17, %v3095_v12  ;;  %v4678_v25 = vpop.f32.mrb[11].mxu0 }
0x1220   : > { %v3157_v14 = vpop.f32.mrb[10].mxu1 }
0x1221   : > { %v4686_v23 = vpop.f32.mrb[11].mxu1 }
0x1224   : > { %v3219_v27 = vpop.f32.mrb[12].mxu0 }
0x1225   : > { %v3225_v28 = vadd.f32 %v3219_v27, %v3160_v24  ;;  %v4693_v30 = vpop.f32.mrb[13].mxu0 }
0x1226   : > { %v3284_v32 = vpop.f32.mrb[12].mxu1  ;;  %v3222_v35 = vpop.f32.mrb[14].mxu0 }
0x1227   : > { %v4701_v37 = vpop.f32.mrb[13].mxu1  ;;  %v3290_v41 = vadd.f32 %v3284_v32, %v3225_v28  ;;  %v4694_v40 = vpop.f32.mrb[15].mxu0  ;;  %v4288_v32 = vld [vmem:[%s6161_s4] ss:$0 sm:$0xff] }
0x1228   : > { %v3287_v42 = vpop.f32.mrb[14].mxu1 }
0x1229   : > { %v4702_v43 = vpop.f32.mrb[15].mxu1 }
0x122c   : > { %v3350_v44 = vpop.f32.mrb[16].mxu0 }
0x122d   : > { %v3356_v19 = vadd.f32 %v3350_v44, %v3290_v41  ;;  %v4709_v34 = vpop.f32.mrb[17].mxu0 }
0x122e   : > { %v3414_v33 = vpop.f32.mrb[16].mxu1  ;;  %v3353_v36 = vpop.f32.mrb[18].mxu0 }
0x122f   : > { %v4717_v26 = vpop.f32.mrb[17].mxu1  ;;  %v3420_v50 = vadd.f32 %v3414_v33, %v3356_v19  ;;  %v4710_v60 = vpop.f32.mrb[19].mxu0 }
0x1230   : > { %v3417_v52 = vpop.f32.mrb[18].mxu1 }
0x1231   : > { %v4718_v45 = vpop.f32.mrb[19].mxu1 }
0x1234   : > { %v3479_v47 = vpop.f32.mrb[20].mxu0 }
0x1235   : > { %v3485_v53 = vadd.f32 %v3479_v47, %v3420_v50  ;;  %v4725_v57 = vpop.f32.mrb[21].mxu0 }
0x1236   : > { %v3544_v56 = vpop.f32.mrb[20].mxu1  ;;  %v3482_v1 = vpop.f32.mrb[22].mxu0 }
0x1237   : > { %v4733_v38 = vpop.f32.mrb[21].mxu1  ;;  %v3550_v58 = vadd.f32 %v3544_v56, %v3485_v53  ;;  %v4726_v59 = vpop.f32.mrb[23].mxu0 }
0x1238   : > { %v3547_v39 = vpop.f32.mrb[22].mxu1 }
0x1239   : > { %v4734_v5 = vpop.f32.mrb[23].mxu1 }
0x123c   : > { %v3609_v13 = vpop.f32.mrb[24].mxu0 }
0x123d   : > { %v3615_v0 = vadd.f32 %v3609_v13, %v3550_v58  ;;  %v4741_v16 = vpop.f32.mrb[25].mxu0 }
0x123e   : > { %v3674_v8 = vpop.f32.mrb[24].mxu1  ;;  %v3612_v62 = vpop.f32.mrb[26].mxu0 }
0x123f   : > { %v4749_v46 = vpop.f32.mrb[25].mxu1  ;;  %v3680_v63 = vadd.f32 %v3674_v8, %v3615_v0  ;;  %v4742_v22 = vpop.f32.mrb[27].mxu0 }
0x1240   : > { %v3677_v48 = vpop.f32.mrb[26].mxu1 }
0x1241   : > { %v4750_v31 = vpop.f32.mrb[27].mxu1 }
0x1244   : > { %v3739_v49 = vpop.f32.mrb[28].mxu0 }
0x1245   : > { %v3745_v2 = vadd.f32 %v3739_v49, %v3680_v63  ;;  %v4757_v51 = vpop.f32.mrb[29].mxu0 }
0x1246   : > { %v3804_v3 = vpop.f32.mrb[28].mxu1  ;;  %v3742_v4 = vpop.f32.mrb[30].mxu0 }
0x1247   : > { %v4765_v6 = vpop.f32.mrb[29].mxu1  ;;  %v3810_v55 = vadd.f32 %v3804_v3, %v3745_v2  ;;  %v4758_v7 = vpop.f32.mrb[31].mxu0 }
0x1248   : > { %v3807_v61 = vpop.f32.mrb[30].mxu1 }
0x1249   : > { %v4766_v10 = vpop.f32.mrb[31].mxu1 }
0x124c   : > { %v3872_v9 = vpop.f32.mrb[32].mxu0 }
0x124d   : > { %v3878_v29 = vadd.f32 %v3872_v9, %v3810_v55  ;;  %v4773_v54 = vpop.f32.mrb[33].mxu0 }
0x124e   : > { %v3875_v11 = vpop.f32.mrb[34].mxu0 }
0x124f   : > { %v3886_v12 = vadd.f32 %v4287_v20, %v3878_v29  ;;  %v4774_v15 = vpop.f32.mrb[35].mxu0 }
0x1251   : > { %v3887_v17 = vmul.f32 %v3886_v12, %v3886_v12 }
0x1253   : > { %v3888_v18 = vmul.f32 %v3887_v17, %v3886_v12 }
0x1255   : > { %v3889_v21 = vmul.f32 0.044715, %v3888_v18 }
0x1257   : > { %v3890_v24 = vadd.f32 %v3889_v21, %v3886_v12 }
0x1259   : > { %v3891_v25 = vmul.f32 0.7978846, %v3890_v24 }
0x125b   : > { %5039 = vtanh.f32 %v3891_v25 }
0x1265   : > { %v5040_v14 = vpop.eup %5039 }
0x1266   : > { %v3893_v23 = vadd.f32 1.0, %v5040_v14 }
0x1268   : > { %v3894_v27 = vmul.f32 0.5, %v3893_v23 }
0x126a   : > { %v3895_v28 = vmul.f32 %v3894_v27, %v3886_v12 }
0x126c   : > { %v3896_v30 = vpack.c.bf16 %v3895_v28, %v3895_v28 }
0x126e   : > { %4784 = vmatmul.mubr.msk.bf16.vlgmr.msra.gmra.mrb[32].mxu1 %vm3936_vm14, %v3896_v30 }
0x1341   : > { %v3974_v35 = vpop.f32.mrb[32].mxu1 }
0x1342   : > { %v3975_v37 = vadd.f32 %v4288_v32, %v3974_v35  ;;  %v4785_v41 = vpop.f32.mrb[33].mxu1 }
0x1343   : > { %v3977_v40 = vpop.f32.mrb[34].mxu1 }
0x1344   : > { %3981 = vst.msk [vmem:[#allocation4] sm:$0x3] %vm3980_vm15, %v3975_v37  ;;  %v4786_v42 = vpop.f32.mrb[35].mxu1 }
0x1345 PF: > { %p4823_p6 = scmp.eq.s32.totalorder %s5186_s19, 1  ;;  %s5099_s27 = smov [#allocation4]  }
0x1346   : > { %s3989_s22 = sshll.u32 %s5099_s27, 4  ;;  %s3990_s22 = int_to_ptr.vmem [resolvable:$true] %s3989_s22 }
0x1347   : > { %s5041_s25 = scalar_lea.vmem %s3990_s22, 32  ;;  %p5048_p10 = scmp.lt.s32.totalorder %s3990_s22, %s3990_s22 }
0x1348   : > { %p5042_p7 = scmp.ne.s32.totalorder %s3990_s22, %s5041_s25  ;;  %p5049_p11 = scmp.lt.s32.totalorder %s5041_s25, %s5041_s25 }
0x134a   : > { %p5043_p8 = pnand %p5042_p7, %p4823_p6  ;;  %p5050_p12 = por %p5049_p11, %p5048_p10 }
0x134c   : > { %p5044_p9 = pneg %p5043_p8 }
0x134e   : > { %p5051_p13 = pnand %p5050_p12, %p5044_p9 }
0x1350   : > { %5054 = shalt.err (!%p5051_p13)
}
0x1351   : > { %s6162_s21 = sld [smem:[#allocation12_spill]] }
0x1357   : > { %s5055_s17 = scalar_lea.hbm %s6162_s21, 32 }
0x1358   : > { %p5056_p0 = scmp.ne.s32.totalorder %s6162_s21, %s5055_s17  ;;  %p5061_p3 = scmp.lt.u32.totalorder %s5055_s17, %s6162_s21 }
0x135a   : > { %p5057_p1 = pnand %p5056_p0, %p4823_p6 }
0x135c   : > { %p5058_p2 = pneg %p5057_p1 }
0x135e   : > { %p5063_p4 = pnand %p5061_p3, %p5058_p2 }
0x1360   : > { %5066 = shalt.err (!%p5063_p4)
}
0x1361   : > { %4820 = dma.vmem_to_hbm [thread:$0]  (%p4823_p6), %s3990_s22, 32, %s6162_s21, [#allocation5]  }
0x1362   : > { %5072 = dma.done.wait (%p4823_p6), [#allocation5], 32  }
0x1363   : > { %5074 = vsyncadd (%p4823_p6), [#allocation5], 4294967264 }
0x1364 PF: > { %s6163_s20 = sld [smem:[#allocation7_spill]] }
0x136a   : > { %s26_s18 = sadd.s32 1, %s6163_s20  }
0x136b   : > { %p23_p5 = scmp.ge.s32.totalorder %s26_s18, 4  }
0x136d   :  { %25 = sbr.rel (!%p23_p5) target bundleno = 7 (0x7), region = 152 }
0x1374   :  { %4002 = vsyncpa [#allocation5], 1 }
0x1375   :  { %4004 = vsyncpa [#allocation5 + $0x1], 1 }

</bundles_post_ra>
